<compile_context>
chip_gen: v7x
topology: tpu7x:2x2x1
jax: 0.10.0
libtpu: 0.0.40
codegen_flags: <defaults>
</compile_context>

<pallas_src>
import jax
import jax.numpy as jnp
from jax import lax
from jax.experimental import pallas as pl
from jax.experimental.pallas import tpu as pltpu

KSIZE = 9            # FaceConv neighborhood_size + 1
NEG_SLOPE = 0.01     # torch.nn.LeakyReLU default
BN_EPS = 1e-5        # BatchNorm1d default


def _round_up(x, m):
    return (x + m - 1) // m * m


def _parallel():
    return pltpu.CompilerParams(dimension_semantics=("parallel",))


# ----------------------------- Pallas kernels ------------------------------

def _stats_partial_kernel(x_ref, o_ref):
    """Per-tile partial [sum; sum_sq] over rows (race-free under 'parallel')."""
    xf = x_ref[...].astype(jnp.float32)
    s0 = jnp.sum(xf, axis=0, keepdims=True)
    s1 = jnp.sum(xf * xf, axis=0, keepdims=True)
    o_ref[...] = jnp.concatenate([s0, s1], axis=0)[None]


def _bn_act_kernel(x_ref, sc_ref, sh_ref, rm_ref, o_ref):
    """BatchNorm affine + LeakyReLU applied ONCE per slab row; pad rows zeroed."""
    y = x_ref[...].astype(jnp.float32) * sc_ref[...] + sh_ref[...]
    y = jnp.maximum(y, NEG_SLOPE * y)          # LeakyReLU as mul+max (no select)
    o_ref[...] = (y * rm_ref[...]).astype(o_ref.dtype)


def _conv0_kernel(g_ref, w_ref, o_ref, st_ref):
    """conv_0: one 9*Cin-deep matmul; emit bf16 h + per-tile h stats partials."""
    h = jnp.dot(g_ref[...], w_ref[...], preferred_element_type=jnp.float32)
    hb = h.astype(jnp.bfloat16)
    o_ref[...] = hb
    hf = hb.astype(jnp.float32)
    s0 = jnp.sum(hf, axis=0, keepdims=True)
    s1 = jnp.sum(hf * hf, axis=0, keepdims=True)
    st_ref[...] = jnp.concatenate([s0, s1], axis=0)[None]


def _conv0_shortcut_kernel(g_ref, w_ref, gx_ref, ws_ref, bs_ref,
                           o_ref, res_ref, st_ref):
    """conv_0 + fused 1x9 nin_shortcut on the gathered raw input (2nd output)."""
    h = jnp.dot(g_ref[...], w_ref[...], preferred_element_type=jnp.float32)
    hb = h.astype(jnp.bfloat16)
    o_ref[...] = hb
    hf = hb.astype(jnp.float32)
    s0 = jnp.sum(hf, axis=0, keepdims=True)
    s1 = jnp.sum(hf * hf, axis=0, keepdims=True)
    st_ref[...] = jnp.concatenate([s0, s1], axis=0)[None]
    r = jnp.dot(gx_ref[...], ws_ref[...], preferred_element_type=jnp.float32)
    res_ref[...] = (r + bs_ref[...]).astype(res_ref.dtype)


def _conv1_kernel(g_ref, w_ref, b_ref, r_ref, rm_ref, o_ref):
    """conv_1: one 9*C-deep matmul + bias + residual + pad-row zeroing."""
    out = jnp.dot(g_ref[...], w_ref[...], preferred_element_type=jnp.float32)
    out = out + b_ref[...] + r_ref[...].astype(jnp.float32)
    o_ref[...] = (out * rm_ref[...]).astype(o_ref.dtype)


# ----------------------------- kernel wrappers ------------------------------

def channel_stats(slab, tm):
    """[sum, sum_sq] per channel of a zero-padded [NPAD, C] slab (partials + JAX reduce)."""
    npad, c = slab.shape
    nt = npad // tm
    part = pl.pallas_call(
        _stats_partial_kernel,
        out_shape=jax.ShapeDtypeStruct((nt, 2, c), jnp.float32),
        grid=(nt,),
        in_specs=[pl.BlockSpec((tm, c), lambda i: (i, 0))],
        out_specs=pl.BlockSpec((1, 2, c), lambda i: (i, 0, 0)),
        compiler_params=_parallel(),
    )(slab)
    return jnp.sum(part, axis=0)                       # [2, C]


def bn_act(slab, scale, shift, row_mask, tm):
    """Normalized + activated + pad-zeroed copy of the slab (bf16)."""
    npad, c = slab.shape
    return pl.pallas_call(
        _bn_act_kernel,
        out_shape=jax.ShapeDtypeStruct((npad, c), jnp.bfloat16),
        grid=(npad // tm,),
        in_specs=[pl.BlockSpec((tm, c), lambda i: (i, 0)),
                  pl.BlockSpec((1, c), lambda i: (0, 0)),
                  pl.BlockSpec((1, c), lambda i: (0, 0)),
                  pl.BlockSpec((tm, 1), lambda i: (i, 0))],
        out_specs=pl.BlockSpec((tm, c), lambda i: (i, 0)),
        compiler_params=_parallel(),
    )(slab, scale, shift, row_mask)


def faceconv0(gcat, wcat, *, gx=None, ws=None, bias_s=None, tm=256):
    """First FaceConv (no bias) on the gathered normalized slab [NPAD, 9*Cin].

    Outputs: bf16 h [NPAD, Cout]; (optional) bf16 nin_shortcut residual
    [NPAD, Cout]; per-tile h stats partials [num_tiles, 2, Cout] f32."""
    npad, kcin = gcat.shape
    cout = wcat.shape[1]
    nt = npad // tm
    shortcut = gx is not None

    operands = [gcat, wcat]
    in_specs = [pl.BlockSpec((tm, kcin), lambda i: (i, 0)),
                pl.BlockSpec((kcin, cout), lambda i: (0, 0))]     # weights resident
    out_shape = [jax.ShapeDtypeStruct((npad, cout), jnp.bfloat16)]
    out_specs = [pl.BlockSpec((tm, cout), lambda i: (i, 0))]
    flops = 2 * npad * kcin * cout
    if shortcut:
        kcin_s = gx.shape[1]
        operands += [gx, ws, bias_s]
        in_specs += [pl.BlockSpec((tm, kcin_s), lambda i: (i, 0)),
                     pl.BlockSpec((kcin_s, cout), lambda i: (0, 0)),
                     pl.BlockSpec((1, cout), lambda i: (0, 0))]
        out_shape.append(jax.ShapeDtypeStruct((npad, cout), jnp.bfloat16))
        out_specs.append(pl.BlockSpec((tm, cout), lambda i: (i, 0)))
        flops += 2 * npad * kcin_s * cout
    out_shape.append(jax.ShapeDtypeStruct((nt, 2, cout), jnp.float32))
    out_specs.append(pl.BlockSpec((1, 2, cout), lambda i: (i, 0, 0)))

    bytes_accessed = sum(int(op.size) * op.dtype.itemsize for op in operands)
    bytes_accessed += npad * cout * 2 * (2 if shortcut else 1) + nt * 2 * cout * 4

    kernel = _conv0_shortcut_kernel if shortcut else _conv0_kernel
    return pl.pallas_call(
        kernel,
        out_shape=tuple(out_shape),
        grid=(nt,),
        in_specs=in_specs,
        out_specs=tuple(out_specs),
        compiler_params=_parallel(),
        cost_estimate=pl.CostEstimate(flops=flops, transcendentals=0,
                                      bytes_accessed=bytes_accessed),
    )(*operands)


def faceconv1(gcat, wcat, bias, residual, row_mask, tm=256):
    """Second FaceConv + bias + residual add + pad-row zeroing, in one kernel."""
    npad, kcin = gcat.shape
    cout = wcat.shape[1]
    operands = [gcat, wcat, bias, residual, row_mask]
    bytes_accessed = (sum(int(op.size) * op.dtype.itemsize for op in operands)
                      + npad * cout * 2)
    return pl.pallas_call(
        _conv1_kernel,
        out_shape=jax.ShapeDtypeStruct((npad, cout), jnp.bfloat16),
        grid=(npad // tm,),
        in_specs=[pl.BlockSpec((tm, kcin), lambda i: (i, 0)),
                  pl.BlockSpec((kcin, cout), lambda i: (0, 0)),
                  pl.BlockSpec((1, cout), lambda i: (0, 0)),
                  pl.BlockSpec((tm, cout), lambda i: (i, 0)),
                  pl.BlockSpec((tm, 1), lambda i: (i, 0))],
        out_specs=pl.BlockSpec((tm, cout), lambda i: (i, 0)),
        compiler_params=_parallel(),
        cost_estimate=pl.CostEstimate(flops=2 * npad * kcin * cout,
                                      transcendentals=0,
                                      bytes_accessed=bytes_accessed),
    )(*operands)


# ----------------------------- module pieces -------------------------------

def bn_fold(sums, n_real, gamma, beta):
    """Fold training-mode BatchNorm ([sum, sum_sq] over real rows) to scale/shift."""
    mean = sums[0:1, :] / n_real
    var = sums[1:2, :] / n_real - mean * mean   # single-pass; fine at 2e-2 tol
    scale = gamma * lax.rsqrt(var + BN_EPS)
    return scale, beta - mean * scale


def fresnet_block(x_slab, p, lvl):
    """FResNetBlock.forward on a zero-padded [NPAD, Cin] bf16 slab."""
    tm, n = lvl["tm"], lvl["n_real"]
    neigh_flat, row_mask = lvl["neigh_flat"], lvl["row_mask"]
    npad, cin = x_slab.shape
    k = KSIZE
    cout = p["w0"].shape[-1]

    # norm_0 + activation applied once per row (pad rows forced to exact zero,
    # so pad-neighbor contributions vanish in the gather - no nmask needed).
    scale0, shift0 = bn_fold(channel_stats(x_slab, tm), n, p["g0"], p["b0"])
    y0 = bn_act(x_slab, scale0, shift0, row_mask, tm)

    # Gather + concat the 9-neighborhood into a lane-dense [NPAD, 9*Cin] slab.
    # TODO(synk): move this gather inside the conv kernel (scalar-prefetched
    # neighbor table + DMA row gather) to avoid materializing the 9x expansion.
    g0 = jnp.take(y0, neigh_flat, axis=0).reshape(npad, k * cin)
    w0 = p["w0"].reshape(k * cin, cout)

    if "ws" in p:   # nf_in != nf_out -> 1x9 nin_shortcut fused into conv_0
        gx = jnp.take(x_slab, neigh_flat, axis=0).reshape(npad, k * cin)
        ws = p["ws"].reshape(k * cin, cout)
        h, res, part_h = faceconv0(g0, w0, gx=gx, ws=ws, bias_s=p["bias_s"], tm=tm)
    else:           # identity residual
        h, part_h = faceconv0(g0, w0, tm=tm)
        res = x_slab

    # norm_1 stats come from conv_0's fused per-tile partials (h never re-read).
    scale1, shift1 = bn_fold(jnp.sum(part_h, axis=0), n, p["g1"], p["b1"])
    y1 = bn_act(h, scale1, shift1, row_mask, tm)
    g1 = jnp.take(y1, neigh_flat, axis=0).reshape(npad, k * cout)
    w1 = p["w1"].reshape(k * cout, cout)
    return faceconv1(g1, w1, p["bias1"], res, row_mask, tm=tm)


def prepare_level(neigh, n_real, pad_size, tm_max=256):
    """Pad the neighbor table / build masks once per level (reused by every conv).

    tm_max: use 256-512 for real graphs on v5e/v6e; keep <=256 on v7x (64 MiB
    VMEM) so gathered [TM, 9*C] tiles + resident [9*C, Cout] weights fit."""
    k = neigh.shape[1]
    npad = _round_up(max(pad_size, 8), 8)
    tm = min(_round_up(tm_max, 8), npad)
    npad = _round_up(npad, tm)
    # bookkeeping rows >= n_real point at a pad face (zero features -> zero contribution)
    neigh_full = jnp.full((npad, k), n_real, jnp.int32).at[:n_real].set(neigh)
    neigh_flat = neigh_full.reshape(-1)                                   # [NPAD*K]
    row_mask = (jnp.arange(npad) < n_real).astype(jnp.float32)[:, None]   # [NPAD, 1]
    return dict(neigh_full=neigh_full, neigh_flat=neigh_flat, row_mask=row_mask,
                npad=npad, tm=tm, n_real=n_real)


def to_slab(x, npad):
    n, _ = x.shape
    return jnp.zeros((npad, x.shape[1]), jnp.bfloat16).at[:n].set(
        x.astype(jnp.bfloat16))


# ----------------------------- parameter init ------------------------------

def faceconv_weight(key, cin, cout):
    w = jax.random.normal(key, (KSIZE, cin, cout), jnp.float32) / (KSIZE * cin) ** 0.5
    return w.astype(jnp.bfloat16)     # bf16 MXU operands; f32 accumulation in-kernel


def init_block(key, cin, cout):
    ks = jax.random.split(key, 9)
    p = {
        "g0": 1.0 + 0.1 * jax.random.normal(ks[0], (1, cin), jnp.float32),
        "b0": 0.1 * jax.random.normal(ks[1], (1, cin), jnp.float32),
        "w0": faceconv_weight(ks[2], cin, cout),   # no bias: canceled by norm_1
        "g1": 1.0 + 0.1 * jax.random.normal(ks[3], (1, cout), jnp.float32),
        "b1": 0.1 * jax.random.normal(ks[4], (1, cout), jnp.float32),
        "w1": faceconv_weight(ks[5], cout, cout),
        "bias1": 0.1 * jax.random.normal(ks[6], (1, cout), jnp.float32),
    }
    if cin != cout:
        p["ws"] = faceconv_weight(ks[7], cin, cout)
        p["bias_s"] = 0.1 * jax.random.normal(ks[8], (1, cout), jnp.float32)
    return p


# ----------------------------- pure-JAX reference ---------------------------

def _ref_bn_affine(slab, n_real, gamma, beta):
    xf = slab[:n_real].astype(jnp.float32)
    mean = jnp.mean(xf, axis=0, keepdims=True)
    var = jnp.mean(jnp.square(xf - mean), axis=0, keepdims=True)
    scale = gamma * lax.rsqrt(var + BN_EPS)
    return scale, beta - mean * scale


def fresnet_block_ref(x_slab, p, lvl):
    n, npad = lvl["n_real"], lvl["npad"]
    neigh_flat, rm = lvl["neigh_flat"], lvl["row_mask"]

    def bn_act_ref(slab, gamma, beta):
        s, t = _ref_bn_affine(slab, n, gamma, beta)
        y = slab.astype(jnp.float32) * s + t
        y = jnp.where(y >= 0.0, y, NEG_SLOPE * y)
        return (y * rm).astype(jnp.bfloat16)

    def faceconv_ref(slab, w, bias=None):
        g = jnp.take(slab, neigh_flat, axis=0).reshape(npad, -1)
        out = jnp.dot(g, w.reshape(-1, w.shape[-1]),
                      preferred_element_type=jnp.float32)
        return out if bias is None else out + bias

    y0 = bn_act_ref(x_slab, p["g0"], p["b0"])
    h = faceconv_ref(y0, p["w0"]).astype(jnp.bfloat16)
    y1 = bn_act_ref(h, p["g1"], p["b1"])
    h2 = faceconv_ref(y1, p["w1"], p["bias1"])
    if "ws" in p:
        res = faceconv_ref(x_slab, p["ws"], p["bias_s"]).astype(jnp.bfloat16)
    else:
        res = x_slab
    return ((h2 + res.astype(jnp.float32)) * rm).astype(jnp.bfloat16)


# --------------------------------- main -------------------------------------

if __name__ == "__main__":
    key = jax.random.PRNGKey(0)
    k_neigh, k_x, k_p0, k_p1 = jax.random.split(key, 4)

    # Small graph level: 96 real faces, padded face slots up to 112, 9-neighborhoods.
    n_faces, pad_size = 96, 112
    cin, cmid = 64, 128

    neigh = jax.random.randint(k_neigh, (n_faces, KSIZE), 0, pad_size, jnp.int32)
    # tm_max=64 exercises a multi-tile row grid at demo size; use 256-512 on real graphs.
    lvl = prepare_level(neigh, n_faces, pad_size, tm_max=64)

    x = jax.random.normal(k_x, (n_faces, cin), jnp.float32)
    x_slab = to_slab(x, lvl["npad"])

    params0 = init_block(k_p0, cin, cmid)    # nf_in != nf_out -> nin_shortcut path
    params1 = init_block(k_p1, cmid, cmid)   # nf_in == nf_out -> identity residual

    @jax.jit
    def forward(xs, p0, p1):
        h = fresnet_block(xs, p0, lvl)
        return fresnet_block(h, p1, lvl)

    out = jax.block_until_ready(forward(x_slab, params0, params1))

    ref = fresnet_block_ref(fresnet_block_ref(x_slab, params0, lvl), params1, lvl)
    ref = jax.block_until_ready(ref)

    o = out[:n_faces].astype(jnp.float32)
    r = ref[:n_faces].astype(jnp.float32)
    assert out.shape == (lvl["npad"], cmid), out.shape
    assert bool(jnp.all(jnp.isfinite(o)))
    assert bool(jnp.allclose(o, r, rtol=2e-2, atol=2e-2)), \
        float(jnp.max(jnp.abs(o - r)))

    print("KERNEL_OK")
</pallas_src>

<mosaic_0001>
module attributes {stable_mosaic.version = 11 : i64} {
  func.func @_stats_partial_kernel(%arg0: i32, %arg1: memref<64x64xbf16, #tpu.memory_space<vmem>>, %arg2: memref<1x2x64xf32, #tpu.memory_space<vmem>>) attributes {dimension_semantics = [#tpu.dimension_semantics<parallel>], iteration_bounds = array<i64: 2>, scalar_prefetch = 0 : i64, scratch_operands = 0 : i64, tpu.core_type = #tpu.core_type<tc>, window_params = [{transform_indices = @transform_0, window_bounds = array<i64: 64, 64>}, {transform_indices = @transform_1, window_bounds = array<i64: 1, 2, 64>}]} {
    %c0 = arith.constant 0 : index
    %c0_0 = arith.constant 0 : index
    %0 = vector.load %arg1[%c0, %c0_0] : memref<64x64xbf16, #tpu.memory_space<vmem>>, vector<64x64xbf16>
    %1 = arith.extf %0 : vector<64x64xbf16> to vector<64x64xf32>
    %cst = arith.constant dense<0.000000e+00> : vector<64xf32>
    %2 = vector.multi_reduction <add>, %1, %cst [0] : vector<64x64xf32> to vector<64xf32>
    %3 = vector.shape_cast %2 : vector<64xf32> to vector<1x64xf32>
    %4 = arith.mulf %1, %1 : vector<64x64xf32>
    %cst_1 = arith.constant dense<0.000000e+00> : vector<64xf32>
    %5 = vector.multi_reduction <add>, %4, %cst_1 [0] : vector<64x64xf32> to vector<64xf32>
    %6 = vector.shape_cast %5 : vector<64xf32> to vector<1x64xf32>
    %7 = tpu.concatenate %3, %6 in 0 : vector<1x64xf32>, vector<1x64xf32> -> vector<2x64xf32>
    %8 = vector.shape_cast %7 : vector<2x64xf32> to vector<1x2x64xf32>
    %c0_2 = arith.constant 0 : index
    %c0_3 = arith.constant 0 : index
    %c0_4 = arith.constant 0 : index
    %9 = vector.load %arg2[%c0_2, %c0_3, %c0_4] : memref<1x2x64xf32, #tpu.memory_space<vmem>>, vector<1x2x64xf32>
    tpu.vector_store %arg2[%c0_2, %c0_3, %c0_4], %8 {strides = array<i32>} : memref<1x2x64xf32, #tpu.memory_space<vmem>>, vector<1x2x64xf32>,
    return
  }
  func.func @transform_0(%arg0: i32) -> (i32, i32) {
    %c0_i32 = arith.constant 0 : i32
    %c0_i32_0 = arith.constant 0 : i32
    return %arg0, %c0_i32 : i32, i32
  }
  func.func @transform_1(%arg0: i32) -> (i32, i32, i32) {
    %c0_i32 = arith.constant 0 : i32
    %c0_i32_0 = arith.constant 0 : i32
    %c0_i32_1 = arith.constant 0 : i32
    return %arg0, %c0_i32, %c0_i32_0 : i32, i32, i32
  }
}

module attributes {stable_mosaic.version = 11 : i64} {
  func.func @_bn_act_kernel(%arg0: i32, %arg1: memref<64x64xbf16, #tpu.memory_space<vmem>>, %arg2: memref<1x64xf32, #tpu.memory_space<vmem>>, %arg3: memref<1x64xf32, #tpu.memory_space<vmem>>, %arg4: memref<64x1xf32, #tpu.memory_space<vmem>>, %arg5: memref<64x64xbf16, #tpu.memory_space<vmem>>) attributes {dimension_semantics = [#tpu.dimension_semantics<parallel>], iteration_bounds = array<i64: 2>, scalar_prefetch = 0 : i64, scratch_operands = 0 : i64, tpu.core_type = #tpu.core_type<tc>, window_params = [{transform_indices = @transform_0, window_bounds = array<i64: 64, 64>}, {pipeline_mode = #tpu.pipeline_mode<synchronous>, transform_indices = @transform_1, window_bounds = array<i64: 1, 64>}, {pipeline_mode = #tpu.pipeline_mode<synchronous>, transform_indices = @transform_2, window_bounds = array<i64: 1, 64>}, {transform_indices = @transform_3, window_bounds = array<i64: 64, 1>}, {transform_indices = @transform_4, window_bounds = array<i64: 64, 64>}]} {
    %c0 = arith.constant 0 : index
    %c0_0 = arith.constant 0 : index
    %0 = vector.load %arg1[%c0, %c0_0] : memref<64x64xbf16, #tpu.memory_space<vmem>>, vector<64x64xbf16>
    %1 = arith.extf %0 : vector<64x64xbf16> to vector<64x64xf32>
    %c0_1 = arith.constant 0 : index
    %c0_2 = arith.constant 0 : index
    %2 = vector.load %arg2[%c0_1, %c0_2] : memref<1x64xf32, #tpu.memory_space<vmem>>, vector<1x64xf32>
    %3 = vector.broadcast %2 : vector<1x64xf32> to vector<64x64xf32>
    %4 = arith.mulf %1, %3 : vector<64x64xf32>
    %c0_3 = arith.constant 0 : index
    %c0_4 = arith.constant 0 : index
    %5 = vector.load %arg3[%c0_3, %c0_4] : memref<1x64xf32, #tpu.memory_space<vmem>>, vector<1x64xf32>
    %6 = vector.broadcast %5 : vector<1x64xf32> to vector<64x64xf32>
    %7 = arith.addf %4, %6 : vector<64x64xf32>
    %cst = arith.constant 0.00999999977 : f32
    %8 = vector.broadcast %cst : f32 to vector<64x64xf32>
    %9 = arith.mulf %8, %7 : vector<64x64xf32>
    %10 = arith.maximumf %7, %9 : vector<64x64xf32>
    %c0_5 = arith.constant 0 : index
    %c0_6 = arith.constant 0 : index
    %11 = vector.load %arg4[%c0_5, %c0_6] : memref<64x1xf32, #tpu.memory_space<vmem>>, vector<64x1xf32>
    %12 = vector.broadcast %11 : vector<64x1xf32> to vector<64x64xf32>
    %13 = arith.mulf %10, %12 : vector<64x64xf32>
    %14 = arith.truncf %13 : vector<64x64xf32> to vector<64x64xbf16>
    %c0_7 = arith.constant 0 : index
    %c0_8 = arith.constant 0 : index
    %15 = vector.load %arg5[%c0_7, %c0_8] : memref<64x64xbf16, #tpu.memory_space<vmem>>, vector<64x64xbf16>
    tpu.vector_store %arg5[%c0_7, %c0_8], %14 {strides = array<i32>} : memref<64x64xbf16, #tpu.memory_space<vmem>>, vector<64x64xbf16>,
    return
  }
  func.func @transform_0(%arg0: i32) -> (i32, i32) {
    %c0_i32 = arith.constant 0 : i32
    %c0_i32_0 = arith.constant 0 : i32
    return %arg0, %c0_i32 : i32, i32
  }
  func.func @transform_1(%arg0: i32) -> (i32, i32) {
    %c0_i32 = arith.constant 0 : i32
    %c0_i32_0 = arith.constant 0 : i32
    %c0_i32_1 = arith.constant 0 : i32
    return %c0_i32, %c0_i32_0 : i32, i32
  }
  func.func @transform_2(%arg0: i32) -> (i32, i32) {
    %c0_i32 = arith.constant 0 : i32
    %c0_i32_0 = arith.constant 0 : i32
    %c0_i32_1 = arith.constant 0 : i32
    return %c0_i32, %c0_i32_0 : i32, i32
  }
  func.func @transform_3(%arg0: i32) -> (i32, i32) {
    %c0_i32 = arith.constant 0 : i32
    %c0_i32_0 = arith.constant 0 : i32
    return %arg0, %c0_i32 : i32, i32
  }
  func.func @transform_4(%arg0: i32) -> (i32, i32) {
    %c0_i32 = arith.constant 0 : i32
    %c0_i32_0 = arith.constant 0 : i32
    return %arg0, %c0_i32 : i32, i32
  }
}

module attributes {stable_mosaic.version = 11 : i64} {
  func.func @_conv0_shortcut_kernel(%arg0: i32, %arg1: memref<64x576xbf16, #tpu.memory_space<vmem>>, %arg2: memref<576x128xbf16, #tpu.memory_space<vmem>>, %arg3: memref<64x576xbf16, #tpu.memory_space<vmem>>, %arg4: memref<576x128xbf16, #tpu.memory_space<vmem>>, %arg5: memref<1x128xf32, #tpu.memory_space<vmem>>, %arg6: memref<64x128xbf16, #tpu.memory_space<vmem>>, %arg7: memref<64x128xbf16, #tpu.memory_space<vmem>>, %arg8: memref<1x2x128xf32, #tpu.memory_space<vmem>>) attributes {dimension_semantics = [#tpu.dimension_semantics<parallel>], iteration_bounds = array<i64: 2>, scalar_prefetch = 0 : i64, scratch_operands = 0 : i64, tpu.core_type = #tpu.core_type<tc>, window_params = [{transform_indices = @transform_0, window_bounds = array<i64: 64, 576>}, {pipeline_mode = #tpu.pipeline_mode<synchronous>, transform_indices = @transform_1, window_bounds = array<i64: 576, 128>}, {transform_indices = @transform_2, window_bounds = array<i64: 64, 576>}, {pipeline_mode = #tpu.pipeline_mode<synchronous>, transform_indices = @transform_3, window_bounds = array<i64: 576, 128>}, {pipeline_mode = #tpu.pipeline_mode<synchronous>, transform_indices = @transform_4, window_bounds = array<i64: 1, 128>}, {transform_indices = @transform_5, window_bounds = array<i64: 64, 128>}, {transform_indices = @transform_6, window_bounds = array<i64: 64, 128>}, {transform_indices = @transform_7, window_bounds = array<i64: 1, 2, 128>}]} {
    %c0 = arith.constant 0 : index
    %c0_0 = arith.constant 0 : index
    %0 = vector.load %arg1[%c0, %c0_0] : memref<64x576xbf16, #tpu.memory_space<vmem>>, vector<64x576xbf16>
    %c0_1 = arith.constant 0 : index
    %c0_2 = arith.constant 0 : index
    %1 = vector.load %arg2[%c0_1, %c0_2] : memref<576x128xbf16, #tpu.memory_space<vmem>>, vector<576x128xbf16>
    %cst = arith.constant dense<0.000000e+00> : vector<64x128xf32>
    %2 = tpu.matmul %0, %1, %cst {dimension_numbers = #tpu.dot_dimension_numbers<[1], [0], [0], [1], [0, 0, 1, 1], [], []>} : vector<64x576xbf16>, vector<576x128xbf16>, vector<64x128xf32> -> vector<64x128xf32>
    %3 = arith.truncf %2 : vector<64x128xf32> to vector<64x128xbf16>
    %c0_3 = arith.constant 0 : index
    %c0_4 = arith.constant 0 : index
    %4 = vector.load %arg6[%c0_3, %c0_4] : memref<64x128xbf16, #tpu.memory_space<vmem>>, vector<64x128xbf16>
    tpu.vector_store %arg6[%c0_3, %c0_4], %3 {strides = array<i32>} : memref<64x128xbf16, #tpu.memory_space<vmem>>, vector<64x128xbf16>,
    %5 = arith.extf %3 : vector<64x128xbf16> to vector<64x128xf32>
    %cst_5 = arith.constant dense<0.000000e+00> : vector<128xf32>
    %6 = vector.multi_reduction <add>, %5, %cst_5 [0] : vector<64x128xf32> to vector<128xf32>
    %7 = vector.shape_cast %6 : vector<128xf32> to vector<1x128xf32>
    %8 = arith.mulf %5, %5 : vector<64x128xf32>
    %cst_6 = arith.constant dense<0.000000e+00> : vector<128xf32>
    %9 = vector.multi_reduction <add>, %8, %cst_6 [0] : vector<64x128xf32> to vector<128xf32>
    %10 = vector.shape_cast %9 : vector<128xf32> to vector<1x128xf32>
    %11 = tpu.concatenate %7, %10 in 0 : vector<1x128xf32>, vector<1x128xf32> -> vector<2x128xf32>
    %12 = vector.shape_cast %11 : vector<2x128xf32> to vector<1x2x128xf32>
    %c0_7 = arith.constant 0 : index
    %c0_8 = arith.constant 0 : index
    %c0_9 = arith.constant 0 : index
    %13 = vector.load %arg8[%c0_7, %c0_8, %c0_9] : memref<1x2x128xf32, #tpu.memory_space<vmem>>, vector<1x2x128xf32>
    tpu.vector_store %arg8[%c0_7, %c0_8, %c0_9], %12 {strides = array<i32>} : memref<1x2x128xf32, #tpu.memory_space<vmem>>, vector<1x2x128xf32>,
    %c0_10 = arith.constant 0 : index
    %c0_11 = arith.constant 0 : index
    %14 = vector.load %arg3[%c0_10, %c0_11] : memref<64x576xbf16, #tpu.memory_space<vmem>>, vector<64x576xbf16>
    %c0_12 = arith.constant 0 : index
    %c0_13 = arith.constant 0 : index
    %15 = vector.load %arg4[%c0_12, %c0_13] : memref<576x128xbf16, #tpu.memory_space<vmem>>, vector<576x128xbf16>
    %cst_14 = arith.constant dense<0.000000e+00> : vector<64x128xf32>
    %16 = tpu.matmul %14, %15, %cst_14 {dimension_numbers = #tpu.dot_dimension_numbers<[1], [0], [0], [1], [0, 0, 1, 1], [], []>} : vector<64x576xbf16>, vector<576x128xbf16>, vector<64x128xf32> -> vector<64x128xf32>
    %c0_15 = arith.constant 0 : index
    %c0_16 = arith.constant 0 : index
    %17 = vector.load %arg5[%c0_15, %c0_16] : memref<1x128xf32, #tpu.memory_space<vmem>>, vector<1x128xf32>
    %18 = vector.broadcast %17 : vector<1x128xf32> to vector<64x128xf32>
    %19 = arith.addf %16, %18 : vector<64x128xf32>
    %20 = arith.truncf %19 : vector<64x128xf32> to vector<64x128xbf16>
    %c0_17 = arith.constant 0 : index
    %c0_18 = arith.constant 0 : index
    %21 = vector.load %arg7[%c0_17, %c0_18] : memref<64x128xbf16, #tpu.memory_space<vmem>>, vector<64x128xbf16>
    tpu.vector_store %arg7[%c0_17, %c0_18], %20 {strides = array<i32>} : memref<64x128xbf16, #tpu.memory_space<vmem>>, vector<64x128xbf16>,
    return
  }
  func.func @transform_0(%arg0: i32) -> (i32, i32) {
    %c0_i32 = arith.constant 0 : i32
    %c0_i32_0 = arith.constant 0 : i32
    return %arg0, %c0_i32 : i32, i32
  }
  func.func @transform_1(%arg0: i32) -> (i32, i32) {
    %c0_i32 = arith.constant 0 : i32
    %c0_i32_0 = arith.constant 0 : i32
    %c0_i32_1 = arith.constant 0 : i32
    return %c0_i32, %c0_i32_0 : i32, i32
  }
  func.func @transform_2(%arg0: i32) -> (i32, i32) {
    %c0_i32 = arith.constant 0 : i32
    %c0_i32_0 = arith.constant 0 : i32
    return %arg0, %c0_i32 : i32, i32
  }
  func.func @transform_3(%arg0: i32) -> (i32, i32) {
    %c0_i32 = arith.constant 0 : i32
    %c0_i32_0 = arith.constant 0 : i32
    %c0_i32_1 = arith.constant 0 : i32
    return %c0_i32, %c0_i32_0 : i32, i32
  }
  func.func @transform_4(%arg0: i32) -> (i32, i32) {
    %c0_i32 = arith.constant 0 : i32
    %c0_i32_0 = arith.constant 0 : i32
    %c0_i32_1 = arith.constant 0 : i32
    return %c0_i32, %c0_i32_0 : i32, i32
  }
  func.func @transform_5(%arg0: i32) -> (i32, i32) {
    %c0_i32 = arith.constant 0 : i32
    %c0_i32_0 = arith.constant 0 : i32
    return %arg0, %c0_i32 : i32, i32
  }
  func.func @transform_6(%arg0: i32) -> (i32, i32) {
    %c0_i32 = arith.constant 0 : i32
    %c0_i32_0 = arith.constant 0 : i32
    return %arg0, %c0_i32 : i32, i32
  }
  func.func @transform_7(%arg0: i32) -> (i32, i32, i32) {
    %c0_i32 = arith.constant 0 : i32
    %c0_i32_0 = arith.constant 0 : i32
    %c0_i32_1 = arith.constant 0 : i32
    return %arg0, %c0_i32, %c0_i32_0 : i32, i32, i32
  }
}

module attributes {stable_mosaic.version = 11 : i64} {
  func.func @_bn_act_kernel(%arg0: i32, %arg1: memref<64x128xbf16, #tpu.memory_space<vmem>>, %arg2: memref<1x128xf32, #tpu.memory_space<vmem>>, %arg3: memref<1x128xf32, #tpu.memory_space<vmem>>, %arg4: memref<64x1xf32, #tpu.memory_space<vmem>>, %arg5: memref<64x128xbf16, #tpu.memory_space<vmem>>) attributes {dimension_semantics = [#tpu.dimension_semantics<parallel>], iteration_bounds = array<i64: 2>, scalar_prefetch = 0 : i64, scratch_operands = 0 : i64, tpu.core_type = #tpu.core_type<tc>, window_params = [{transform_indices = @transform_0, window_bounds = array<i64: 64, 128>}, {pipeline_mode = #tpu.pipeline_mode<synchronous>, transform_indices = @transform_1, window_bounds = array<i64: 1, 128>}, {pipeline_mode = #tpu.pipeline_mode<synchronous>, transform_indices = @transform_2, window_bounds = array<i64: 1, 128>}, {transform_indices = @transform_3, window_bounds = array<i64: 64, 1>}, {transform_indices = @transform_4, window_bounds = array<i64: 64, 128>}]} {
    %c0 = arith.constant 0 : index
    %c0_0 = arith.constant 0 : index
    %0 = vector.load %arg1[%c0, %c0_0] : memref<64x128xbf16, #tpu.memory_space<vmem>>, vector<64x128xbf16>
    %1 = arith.extf %0 : vector<64x128xbf16> to vector<64x128xf32>
    %c0_1 = arith.constant 0 : index
    %c0_2 = arith.constant 0 : index
    %2 = vector.load %arg2[%c0_1, %c0_2] : memref<1x128xf32, #tpu.memory_space<vmem>>, vector<1x128xf32>
    %3 = vector.broadcast %2 : vector<1x128xf32> to vector<64x128xf32>
    %4 = arith.mulf %1, %3 : vector<64x128xf32>
    %c0_3 = arith.constant 0 : index
    %c0_4 = arith.constant 0 : index
    %5 = vector.load %arg3[%c0_3, %c0_4] : memref<1x128xf32, #tpu.memory_space<vmem>>, vector<1x128xf32>
    %6 = vector.broadcast %5 : vector<1x128xf32> to vector<64x128xf32>
    %7 = arith.addf %4, %6 : vector<64x128xf32>
    %cst = arith.constant 0.00999999977 : f32
    %8 = vector.broadcast %cst : f32 to vector<64x128xf32>
    %9 = arith.mulf %8, %7 : vector<64x128xf32>
    %10 = arith.maximumf %7, %9 : vector<64x128xf32>
    %c0_5 = arith.constant 0 : index
    %c0_6 = arith.constant 0 : index
    %11 = vector.load %arg4[%c0_5, %c0_6] : memref<64x1xf32, #tpu.memory_space<vmem>>, vector<64x1xf32>
    %12 = vector.broadcast %11 : vector<64x1xf32> to vector<64x128xf32>
    %13 = arith.mulf %10, %12 : vector<64x128xf32>
    %14 = arith.truncf %13 : vector<64x128xf32> to vector<64x128xbf16>
    %c0_7 = arith.constant 0 : index
    %c0_8 = arith.constant 0 : index
    %15 = vector.load %arg5[%c0_7, %c0_8] : memref<64x128xbf16, #tpu.memory_space<vmem>>, vector<64x128xbf16>
    tpu.vector_store %arg5[%c0_7, %c0_8], %14 {strides = array<i32>} : memref<64x128xbf16, #tpu.memory_space<vmem>>, vector<64x128xbf16>,
    return
  }
  func.func @transform_0(%arg0: i32) -> (i32, i32) {
    %c0_i32 = arith.constant 0 : i32
    %c0_i32_0 = arith.constant 0 : i32
    return %arg0, %c0_i32 : i32, i32
  }
  func.func @transform_1(%arg0: i32) -> (i32, i32) {
    %c0_i32 = arith.constant 0 : i32
    %c0_i32_0 = arith.constant 0 : i32
    %c0_i32_1 = arith.constant 0 : i32
    return %c0_i32, %c0_i32_0 : i32, i32
  }
  func.func @transform_2(%arg0: i32) -> (i32, i32) {
    %c0_i32 = arith.constant 0 : i32
    %c0_i32_0 = arith.constant 0 : i32
    %c0_i32_1 = arith.constant 0 : i32
    return %c0_i32, %c0_i32_0 : i32, i32
  }
  func.func @transform_3(%arg0: i32) -> (i32, i32) {
    %c0_i32 = arith.constant 0 : i32
    %c0_i32_0 = arith.constant 0 : i32
    return %arg0, %c0_i32 : i32, i32
  }
  func.func @transform_4(%arg0: i32) -> (i32, i32) {
    %c0_i32 = arith.constant 0 : i32
    %c0_i32_0 = arith.constant 0 : i32
    return %arg0, %c0_i32 : i32, i32
  }
}

module attributes {stable_mosaic.version = 11 : i64} {
  func.func @_conv1_kernel(%arg0: i32, %arg1: memref<64x1152xbf16, #tpu.memory_space<vmem>>, %arg2: memref<1152x128xbf16, #tpu.memory_space<vmem>>, %arg3: memref<1x128xf32, #tpu.memory_space<vmem>>, %arg4: memref<64x128xbf16, #tpu.memory_space<vmem>>, %arg5: memref<64x1xf32, #tpu.memory_space<vmem>>, %arg6: memref<64x128xbf16, #tpu.memory_space<vmem>>) attributes {dimension_semantics = [#tpu.dimension_semantics<parallel>], iteration_bounds = array<i64: 2>, scalar_prefetch = 0 : i64, scratch_operands = 0 : i64, tpu.core_type = #tpu.core_type<tc>, window_params = [{transform_indices = @transform_0, window_bounds = array<i64: 64, 1152>}, {pipeline_mode = #tpu.pipeline_mode<synchronous>, transform_indices = @transform_1, window_bounds = array<i64: 1152, 128>}, {pipeline_mode = #tpu.pipeline_mode<synchronous>, transform_indices = @transform_2, window_bounds = array<i64: 1, 128>}, {transform_indices = @transform_3, window_bounds = array<i64: 64, 128>}, {transform_indices = @transform_4, window_bounds = array<i64: 64, 1>}, {transform_indices = @transform_5, window_bounds = array<i64: 64, 128>}]} {
    %c0 = arith.constant 0 : index
    %c0_0 = arith.constant 0 : index
    %0 = vector.load %arg1[%c0, %c0_0] : memref<64x1152xbf16, #tpu.memory_space<vmem>>, vector<64x1152xbf16>
    %c0_1 = arith.constant 0 : index
    %c0_2 = arith.constant 0 : index
    %1 = vector.load %arg2[%c0_1, %c0_2] : memref<1152x128xbf16, #tpu.memory_space<vmem>>, vector<1152x128xbf16>
    %cst = arith.constant dense<0.000000e+00> : vector<64x128xf32>
    %2 = tpu.matmul %0, %1, %cst {dimension_numbers = #tpu.dot_dimension_numbers<[1], [0], [0], [1], [0, 0, 1, 1], [], []>} : vector<64x1152xbf16>, vector<1152x128xbf16>, vector<64x128xf32> -> vector<64x128xf32>
    %c0_3 = arith.constant 0 : index
    %c0_4 = arith.constant 0 : index
    %3 = vector.load %arg3[%c0_3, %c0_4] : memref<1x128xf32, #tpu.memory_space<vmem>>, vector<1x128xf32>
    %4 = vector.broadcast %3 : vector<1x128xf32> to vector<64x128xf32>
    %5 = arith.addf %2, %4 : vector<64x128xf32>
    %c0_5 = arith.constant 0 : index
    %c0_6 = arith.constant 0 : index
    %6 = vector.load %arg4[%c0_5, %c0_6] : memref<64x128xbf16, #tpu.memory_space<vmem>>, vector<64x128xbf16>
    %7 = arith.extf %6 : vector<64x128xbf16> to vector<64x128xf32>
    %8 = arith.addf %5, %7 : vector<64x128xf32>
    %c0_7 = arith.constant 0 : index
    %c0_8 = arith.constant 0 : index
    %9 = vector.load %arg5[%c0_7, %c0_8] : memref<64x1xf32, #tpu.memory_space<vmem>>, vector<64x1xf32>
    %10 = vector.broadcast %9 : vector<64x1xf32> to vector<64x128xf32>
    %11 = arith.mulf %8, %10 : vector<64x128xf32>
    %12 = arith.truncf %11 : vector<64x128xf32> to vector<64x128xbf16>
    %c0_9 = arith.constant 0 : index
    %c0_10 = arith.constant 0 : index
    %13 = vector.load %arg6[%c0_9, %c0_10] : memref<64x128xbf16, #tpu.memory_space<vmem>>, vector<64x128xbf16>
    tpu.vector_store %arg6[%c0_9, %c0_10], %12 {strides = array<i32>} : memref<64x128xbf16, #tpu.memory_space<vmem>>, vector<64x128xbf16>,
    return
  }
  func.func @transform_0(%arg0: i32) -> (i32, i32) {
    %c0_i32 = arith.constant 0 : i32
    %c0_i32_0 = arith.constant 0 : i32
    return %arg0, %c0_i32 : i32, i32
  }
  func.func @transform_1(%arg0: i32) -> (i32, i32) {
    %c0_i32 = arith.constant 0 : i32
    %c0_i32_0 = arith.constant 0 : i32
    %c0_i32_1 = arith.constant 0 : i32
    return %c0_i32, %c0_i32_0 : i32, i32
  }
  func.func @transform_2(%arg0: i32) -> (i32, i32) {
    %c0_i32 = arith.constant 0 : i32
    %c0_i32_0 = arith.constant 0 : i32
    %c0_i32_1 = arith.constant 0 : i32
    return %c0_i32, %c0_i32_0 : i32, i32
  }
  func.func @transform_3(%arg0: i32) -> (i32, i32) {
    %c0_i32 = arith.constant 0 : i32
    %c0_i32_0 = arith.constant 0 : i32
    return %arg0, %c0_i32 : i32, i32
  }
  func.func @transform_4(%arg0: i32) -> (i32, i32) {
    %c0_i32 = arith.constant 0 : i32
    %c0_i32_0 = arith.constant 0 : i32
    return %arg0, %c0_i32 : i32, i32
  }
  func.func @transform_5(%arg0: i32) -> (i32, i32) {
    %c0_i32 = arith.constant 0 : i32
    %c0_i32_0 = arith.constant 0 : i32
    return %arg0, %c0_i32 : i32, i32
  }
}

module attributes {stable_mosaic.version = 11 : i64} {
  func.func @_stats_partial_kernel(%arg0: i32, %arg1: memref<64x128xbf16, #tpu.memory_space<vmem>>, %arg2: memref<1x2x128xf32, #tpu.memory_space<vmem>>) attributes {dimension_semantics = [#tpu.dimension_semantics<parallel>], iteration_bounds = array<i64: 2>, scalar_prefetch = 0 : i64, scratch_operands = 0 : i64, tpu.core_type = #tpu.core_type<tc>, window_params = [{transform_indices = @transform_0, window_bounds = array<i64: 64, 128>}, {transform_indices = @transform_1, window_bounds = array<i64: 1, 2, 128>}]} {
    %c0 = arith.constant 0 : index
    %c0_0 = arith.constant 0 : index
    %0 = vector.load %arg1[%c0, %c0_0] : memref<64x128xbf16, #tpu.memory_space<vmem>>, vector<64x128xbf16>
    %1 = arith.extf %0 : vector<64x128xbf16> to vector<64x128xf32>
    %cst = arith.constant dense<0.000000e+00> : vector<128xf32>
    %2 = vector.multi_reduction <add>, %1, %cst [0] : vector<64x128xf32> to vector<128xf32>
    %3 = vector.shape_cast %2 : vector<128xf32> to vector<1x128xf32>
    %4 = arith.mulf %1, %1 : vector<64x128xf32>
    %cst_1 = arith.constant dense<0.000000e+00> : vector<128xf32>
    %5 = vector.multi_reduction <add>, %4, %cst_1 [0] : vector<64x128xf32> to vector<128xf32>
    %6 = vector.shape_cast %5 : vector<128xf32> to vector<1x128xf32>
    %7 = tpu.concatenate %3, %6 in 0 : vector<1x128xf32>, vector<1x128xf32> -> vector<2x128xf32>
    %8 = vector.shape_cast %7 : vector<2x128xf32> to vector<1x2x128xf32>
    %c0_2 = arith.constant 0 : index
    %c0_3 = arith.constant 0 : index
    %c0_4 = arith.constant 0 : index
    %9 = vector.load %arg2[%c0_2, %c0_3, %c0_4] : memref<1x2x128xf32, #tpu.memory_space<vmem>>, vector<1x2x128xf32>
    tpu.vector_store %arg2[%c0_2, %c0_3, %c0_4], %8 {strides = array<i32>} : memref<1x2x128xf32, #tpu.memory_space<vmem>>, vector<1x2x128xf32>,
    return
  }
  func.func @transform_0(%arg0: i32) -> (i32, i32) {
    %c0_i32 = arith.constant 0 : i32
    %c0_i32_0 = arith.constant 0 : i32
    return %arg0, %c0_i32 : i32, i32
  }
  func.func @transform_1(%arg0: i32) -> (i32, i32, i32) {
    %c0_i32 = arith.constant 0 : i32
    %c0_i32_0 = arith.constant 0 : i32
    %c0_i32_1 = arith.constant 0 : i32
    return %arg0, %c0_i32, %c0_i32_0 : i32, i32, i32
  }
}

module attributes {stable_mosaic.version = 11 : i64} {
  func.func @_conv0_kernel(%arg0: i32, %arg1: memref<64x1152xbf16, #tpu.memory_space<vmem>>, %arg2: memref<1152x128xbf16, #tpu.memory_space<vmem>>, %arg3: memref<64x128xbf16, #tpu.memory_space<vmem>>, %arg4: memref<1x2x128xf32, #tpu.memory_space<vmem>>) attributes {dimension_semantics = [#tpu.dimension_semantics<parallel>], iteration_bounds = array<i64: 2>, scalar_prefetch = 0 : i64, scratch_operands = 0 : i64, tpu.core_type = #tpu.core_type<tc>, window_params = [{transform_indices = @transform_0, window_bounds = array<i64: 64, 1152>}, {pipeline_mode = #tpu.pipeline_mode<synchronous>, transform_indices = @transform_1, window_bounds = array<i64: 1152, 128>}, {transform_indices = @transform_2, window_bounds = array<i64: 64, 128>}, {transform_indices = @transform_3, window_bounds = array<i64: 1, 2, 128>}]} {
    %c0 = arith.constant 0 : index
    %c0_0 = arith.constant 0 : index
    %0 = vector.load %arg1[%c0, %c0_0] : memref<64x1152xbf16, #tpu.memory_space<vmem>>, vector<64x1152xbf16>
    %c0_1 = arith.constant 0 : index
    %c0_2 = arith.constant 0 : index
    %1 = vector.load %arg2[%c0_1, %c0_2] : memref<1152x128xbf16, #tpu.memory_space<vmem>>, vector<1152x128xbf16>
    %cst = arith.constant dense<0.000000e+00> : vector<64x128xf32>
    %2 = tpu.matmul %0, %1, %cst {dimension_numbers = #tpu.dot_dimension_numbers<[1], [0], [0], [1], [0, 0, 1, 1], [], []>} : vector<64x1152xbf16>, vector<1152x128xbf16>, vector<64x128xf32> -> vector<64x128xf32>
    %3 = arith.truncf %2 : vector<64x128xf32> to vector<64x128xbf16>
    %c0_3 = arith.constant 0 : index
    %c0_4 = arith.constant 0 : index
    %4 = vector.load %arg3[%c0_3, %c0_4] : memref<64x128xbf16, #tpu.memory_space<vmem>>, vector<64x128xbf16>
    tpu.vector_store %arg3[%c0_3, %c0_4], %3 {strides = array<i32>} : memref<64x128xbf16, #tpu.memory_space<vmem>>, vector<64x128xbf16>,
    %5 = arith.extf %3 : vector<64x128xbf16> to vector<64x128xf32>
    %cst_5 = arith.constant dense<0.000000e+00> : vector<128xf32>
    %6 = vector.multi_reduction <add>, %5, %cst_5 [0] : vector<64x128xf32> to vector<128xf32>
    %7 = vector.shape_cast %6 : vector<128xf32> to vector<1x128xf32>
    %8 = arith.mulf %5, %5 : vector<64x128xf32>
    %cst_6 = arith.constant dense<0.000000e+00> : vector<128xf32>
    %9 = vector.multi_reduction <add>, %8, %cst_6 [0] : vector<64x128xf32> to vector<128xf32>
    %10 = vector.shape_cast %9 : vector<128xf32> to vector<1x128xf32>
    %11 = tpu.concatenate %7, %10 in 0 : vector<1x128xf32>, vector<1x128xf32> -> vector<2x128xf32>
    %12 = vector.shape_cast %11 : vector<2x128xf32> to vector<1x2x128xf32>
    %c0_7 = arith.constant 0 : index
    %c0_8 = arith.constant 0 : index
    %c0_9 = arith.constant 0 : index
    %13 = vector.load %arg4[%c0_7, %c0_8, %c0_9] : memref<1x2x128xf32, #tpu.memory_space<vmem>>, vector<1x2x128xf32>
    tpu.vector_store %arg4[%c0_7, %c0_8, %c0_9], %12 {strides = array<i32>} : memref<1x2x128xf32, #tpu.memory_space<vmem>>, vector<1x2x128xf32>,
    return
  }
  func.func @transform_0(%arg0: i32) -> (i32, i32) {
    %c0_i32 = arith.constant 0 : i32
    %c0_i32_0 = arith.constant 0 : i32
    return %arg0, %c0_i32 : i32, i32
  }
  func.func @transform_1(%arg0: i32) -> (i32, i32) {
    %c0_i32 = arith.constant 0 : i32
    %c0_i32_0 = arith.constant 0 : i32
    %c0_i32_1 = arith.constant 0 : i32
    return %c0_i32, %c0_i32_0 : i32, i32
  }
  func.func @transform_2(%arg0: i32) -> (i32, i32) {
    %c0_i32 = arith.constant 0 : i32
    %c0_i32_0 = arith.constant 0 : i32
    return %arg0, %c0_i32 : i32, i32
  }
  func.func @transform_3(%arg0: i32) -> (i32, i32, i32) {
    %c0_i32 = arith.constant 0 : i32
    %c0_i32_0 = arith.constant 0 : i32
    %c0_i32_1 = arith.constant 0 : i32
    return %arg0, %c0_i32, %c0_i32_0 : i32, i32, i32
  }
}

module attributes {stable_mosaic.version = 11 : i64} {
  func.func @_conv1_kernel(%arg0: i32, %arg1: memref<64x1152xbf16, #tpu.memory_space<vmem>>, %arg2: memref<1152x128xbf16, #tpu.memory_space<vmem>>, %arg3: memref<1x128xf32, #tpu.memory_space<vmem>>, %arg4: memref<64x128xbf16, #tpu.memory_space<vmem>>, %arg5: memref<64x1xf32, #tpu.memory_space<vmem>>, %arg6: memref<64x128xbf16, #tpu.memory_space<vmem>>) attributes {dimension_semantics = [#tpu.dimension_semantics<parallel>], iteration_bounds = array<i64: 2>, scalar_prefetch = 0 : i64, scratch_operands = 0 : i64, tpu.core_type = #tpu.core_type<tc>, window_params = [{transform_indices = @transform_0, window_bounds = array<i64: 64, 1152>}, {pipeline_mode = #tpu.pipeline_mode<synchronous>, transform_indices = @transform_1, window_bounds = array<i64: 1152, 128>}, {pipeline_mode = #tpu.pipeline_mode<synchronous>, transform_indices = @transform_2, window_bounds = array<i64: 1, 128>}, {transform_indices = @transform_3, window_bounds = array<i64: 64, 128>}, {transform_indices = @transform_4, window_bounds = array<i64: 64, 1>}, {transform_indices = @transform_5, window_bounds = array<i64: 64, 128>}]} {
    %c0 = arith.constant 0 : index
    %c0_0 = arith.constant 0 : index
    %0 = vector.load %arg1[%c0, %c0_0] : memref<64x1152xbf16, #tpu.memory_space<vmem>>, vector<64x1152xbf16>
    %c0_1 = arith.constant 0 : index
    %c0_2 = arith.constant 0 : index
    %1 = vector.load %arg2[%c0_1, %c0_2] : memref<1152x128xbf16, #tpu.memory_space<vmem>>, vector<1152x128xbf16>
    %cst = arith.constant dense<0.000000e+00> : vector<64x128xf32>
    %2 = tpu.matmul %0, %1, %cst {dimension_numbers = #tpu.dot_dimension_numbers<[1], [0], [0], [1], [0, 0, 1, 1], [], []>} : vector<64x1152xbf16>, vector<1152x128xbf16>, vector<64x128xf32> -> vector<64x128xf32>
    %c0_3 = arith.constant 0 : index
    %c0_4 = arith.constant 0 : index
    %3 = vector.load %arg3[%c0_3, %c0_4] : memref<1x128xf32, #tpu.memory_space<vmem>>, vector<1x128xf32>
    %4 = vector.broadcast %3 : vector<1x128xf32> to vector<64x128xf32>
    %5 = arith.addf %2, %4 : vector<64x128xf32>
    %c0_5 = arith.constant 0 : index
    %c0_6 = arith.constant 0 : index
    %6 = vector.load %arg4[%c0_5, %c0_6] : memref<64x128xbf16, #tpu.memory_space<vmem>>, vector<64x128xbf16>
    %7 = arith.extf %6 : vector<64x128xbf16> to vector<64x128xf32>
    %8 = arith.addf %5, %7 : vector<64x128xf32>
    %c0_7 = arith.constant 0 : index
    %c0_8 = arith.constant 0 : index
    %9 = vector.load %arg5[%c0_7, %c0_8] : memref<64x1xf32, #tpu.memory_space<vmem>>, vector<64x1xf32>
    %10 = vector.broadcast %9 : vector<64x1xf32> to vector<64x128xf32>
    %11 = arith.mulf %8, %10 : vector<64x128xf32>
    %12 = arith.truncf %11 : vector<64x128xf32> to vector<64x128xbf16>
    %c0_9 = arith.constant 0 : index
    %c0_10 = arith.constant 0 : index
    %13 = vector.load %arg6[%c0_9, %c0_10] : memref<64x128xbf16, #tpu.memory_space<vmem>>, vector<64x128xbf16>
    tpu.vector_store %arg6[%c0_9, %c0_10], %12 {strides = array<i32>} : memref<64x128xbf16, #tpu.memory_space<vmem>>, vector<64x128xbf16>,
    return
  }
  func.func @transform_0(%arg0: i32) -> (i32, i32) {
    %c0_i32 = arith.constant 0 : i32
    %c0_i32_0 = arith.constant 0 : i32
    return %arg0, %c0_i32 : i32, i32
  }
  func.func @transform_1(%arg0: i32) -> (i32, i32) {
    %c0_i32 = arith.constant 0 : i32
    %c0_i32_0 = arith.constant 0 : i32
    %c0_i32_1 = arith.constant 0 : i32
    return %c0_i32, %c0_i32_0 : i32, i32
  }
  func.func @transform_2(%arg0: i32) -> (i32, i32) {
    %c0_i32 = arith.constant 0 : i32
    %c0_i32_0 = arith.constant 0 : i32
    %c0_i32_1 = arith.constant 0 : i32
    return %c0_i32, %c0_i32_0 : i32, i32
  }
  func.func @transform_3(%arg0: i32) -> (i32, i32) {
    %c0_i32 = arith.constant 0 : i32
    %c0_i32_0 = arith.constant 0 : i32
    return %arg0, %c0_i32 : i32, i32
  }
  func.func @transform_4(%arg0: i32) -> (i32, i32) {
    %c0_i32 = arith.constant 0 : i32
    %c0_i32_0 = arith.constant 0 : i32
    return %arg0, %c0_i32 : i32, i32
  }
  func.func @transform_5(%arg0: i32) -> (i32, i32) {
    %c0_i32 = arith.constant 0 : i32
    %c0_i32_0 = arith.constant 0 : i32
    return %arg0, %c0_i32 : i32, i32
  }
}

</mosaic_0001>

<bundles_post_ra>
// kernel: forward.10
= control target key start
LH: loop header
LB: loop body
LE: loop exit
PB: predicated region body
PF: predicated region fallthrough
CT: control target
= control target key end

     0   :  { %s296_s6 = smov 0   ;;  %s334_s0 = inlined_call_operand.vmem [shape: bf16[128,64], index: 0, kind: input, shape index: {}]   ;;  %s335_s1 = inlined_call_operand.vmem [shape: f32[2,2,64], index: 1, kind: output, shape index: {}]  }
   0x1 LB: > { %s302_s7 = sadd.s32 4294967295, %s284_s6   ;;  %p245_p0 = scmp.ge.s32.totalorder %s284_s6, 1  ;;  %s284_s6 = sphi %s296_s6, %s11_s6  }
   0x2   : > { %p88_p1 = scmp.lt.s32.totalorder %s284_s6, 3 }
   0x4   : > { %p89_p2 = pnand %p245_p0, %p88_p1 }
   0x5   : > { %s246_s8 = sshll.u32 (!%p89_p2), %s302_s7, 3  ;;  %vm133_vm0 = vcmask (!%p89_p2), 523264   ;;  %p113_p4 = scmp.lt.s32.totalorder (!%p89_p2), %s302_s7, 1  ;;  %vm184_vm1 = vcmask (!%p89_p2), 1040384   ;;  %vm186_vm2 = vcmask (!%p89_p2), 517120  }
   0x6   : > { %92 = sbr.rel (%p89_p2) target bundleno = 51 (0x33), region = 24  ;;  %p108_p3 = scmp.lt.s32.totalorder (!%p89_p2), %s246_s8, 15 }
   0xd   : > { %s337_s8 = smov (!%p108_p3, %s246_s8), 15  ;;  %s339_s7 = smov (!%p113_p4, %s302_s7), 1 }
   0xe   : > { %s247_s9 = sshll.u32 %s337_s8, 2  ;;  %s248_s13 = sshll.u32 %s339_s7, 1 }
   0xf   : > { %s111_s12 = scalar_lea.vmem %s334_s0, %s247_s9  ;;  %s116_s16 = scalar_lea.vmem %s335_s1, %s248_s13 }
  0x10   : > { %v252_v0 = vld [vmem:[%s111_s12] sm:$0xff]   ;;  %v267_v1 = vld [vmem:[%s111_s12 + $0x8] sm:$0xff]   ;;  %v268_v2 = vld [vmem:[%s111_s12 + $0x10] sm:$0xff]  }
  0x11   : > { %v253_v3 = vunpack.c.l.bf16 %v252_v0  ;;  %v254_v4 = vunpack.c.h.bf16 %v252_v0  ;;  %v257_v5 = vunpack.c.l.bf16 %v267_v1  ;;  %v258_v6 = vunpack.c.h.bf16 %v267_v1  ;;  %v269_v8 = vld [vmem:[%s111_s12 + $0x18] sm:$0xff]  }
  0x12   : > { %v261_v7 = vunpack.c.l.bf16 %v268_v2  ;;  %v262_v12 = vunpack.c.h.bf16 %v268_v2  ;;  %v265_v18 = vunpack.c.l.bf16 %v269_v8  ;;  %v266_v28 = vunpack.c.h.bf16 %v269_v8 }
  0x13   : > { %v134_v9 = vsel %vm133_vm0, %v253_v3, 0.0  ;;  %v135_v10 = vsel %vm133_vm0, %v254_v4, 0.0  ;;  %v137_v11 = vsel %vm133_vm0, %v257_v5, 0.0  ;;  %v139_v14 = vsel %vm133_vm0, %v258_v6, 0.0 }
  0x14   : > { %v136_v13 = vadd.f32 %v135_v10, %v134_v9  ;;  %v155_v15 = vmul.f32 %v253_v3, %v253_v3  ;;  %v156_v16 = vmul.f32 %v254_v4, %v254_v4  ;;  %v157_v17 = vmul.f32 %v257_v5, %v257_v5 }
  0x15   : > { %v158_v20 = vmul.f32 %v258_v6, %v258_v6  ;;  %v141_v21 = vsel %vm133_vm0, %v261_v7, 0.0  ;;  %v159_v22 = vmul.f32 %v261_v7, %v261_v7  ;;  %v143_v29 = vsel %vm133_vm0, %v262_v12, 0.0 }
  0x16   : > { %v138_v19 = vadd.f32 %v137_v11, %v136_v13  ;;  %v163_v23 = vsel %vm133_vm0, %v155_v15, 0.0  ;;  %v164_v24 = vsel %vm133_vm0, %v156_v16, 0.0  ;;  %v166_v27 = vsel %vm133_vm0, %v157_v17, 0.0 }
  0x17   : > { %v165_v26 = vadd.f32 %v164_v24, %v163_v23  ;;  %v160_v30 = vmul.f32 %v262_v12, %v262_v12  ;;  %v168_v31 = vsel %vm133_vm0, %v158_v20, 0.0  ;;  %v145_v34 = vsel %vm133_vm0, %v265_v18, 0.0 }
  0x18   : > { %v140_v25 = vadd.f32 %v139_v14, %v138_v19  ;;  %v161_v35 = vmul.f32 %v265_v18, %v265_v18  ;;  %v170_v36 = vsel %vm133_vm0, %v159_v22, 0.0  ;;  %v147_v39 = vsel %vm133_vm0, %v266_v28, 0.0 }
  0x19   : > { %v167_v33 = vadd.f32 %v166_v27, %v165_v26  ;;  %v162_v40 = vmul.f32 %v266_v28, %v266_v28  ;;  %v172_v41 = vsel %vm133_vm0, %v160_v30, 0.0 }
  0x1a   : > { %v142_v32 = vadd.f32 %v141_v21, %v140_v25  ;;  %v174_v44 = vsel %vm133_vm0, %v161_v35, 0.0 }
  0x1b   : > { %v169_v38 = vadd.f32 %v168_v31, %v167_v33  ;;  %v176_v47 = vsel %vm133_vm0, %v162_v40, 0.0 }
  0x1c   : > { %v144_v37 = vadd.f32 %v143_v29, %v142_v32 }
  0x1d   : > { %v171_v43 = vadd.f32 %v170_v36, %v169_v38 }
  0x1e   : > { %v146_v42 = vadd.f32 %v145_v34, %v144_v37 }
  0x1f   : > { %v173_v46 = vadd.f32 %v172_v41, %v171_v43 }
  0x20   : > { %v148_v45 = vadd.f32 %v147_v39, %v146_v42 }
  0x21   : > { %v175_v49 = vadd.f32 %v174_v44, %v173_v46 }
  0x22   : > { %v149_v48 = vrot.slane %v148_v45, 4 }
  0x23   : > { %v177_v51 = vadd.f32 %v176_v47, %v175_v49 }
  0x24   : > { %v150_v50 = vadd.f32 %v149_v48, %v148_v45 }
  0x25   : > { %v178_v53 = vrot.slane %v177_v51, 4 }
  0x26   : > { %v151_v52 = vrot.slane %v150_v50, 2 }
  0x27   : > { %v179_v55 = vadd.f32 %v178_v53, %v177_v51 }
  0x28   : > { %v152_v54 = vadd.f32 %v151_v52, %v150_v50 }
  0x29   : > { %v180_v57 = vrot.slane %v179_v55, 2 }
  0x2a   : > { %v153_v56 = vrot.slane %v152_v54, 1 }
  0x2b   : > { %v181_v58 = vadd.f32 %v180_v57, %v179_v55 }
  0x2c   : > { %v154_v59 = vadd.f32 %v153_v56, %v152_v54 }
  0x2d   : > { %v182_v60 = vrot.slane %v181_v58, 1 }
  0x2f   : > { %v183_v61 = vadd.f32 %v182_v60, %v181_v58 }
  0x31   : > { %v185_v62 = vsel %vm184_vm1, %v154_v59, %v183_v61 }
  0x32   : > { %187 = vst.msk [vmem:[%s116_s16] sm:$0x3] %vm186_vm2, %v185_v62 }
  0x33 PF: > { %s11_s6 = sadd.s32 1, %s284_s6  }
  0x34   : > { %p8_p5 = scmp.ge.s32.totalorder %s11_s6, 4  }
  0x36   :  { %10 = sbr.rel (!%p8_p5) target bundleno = 1 (0x1), region = 54 }

// kernel: forward.11
= control target key start
LH: loop header
LB: loop body
LE: loop exit
PB: predicated region body
PF: predicated region fallthrough
CT: control target
= control target key end

     0   :  { %s545_s15 = smov 0   ;;  %s597_s0 = inlined_call_operand.vmem [shape: bf16[128,64], index: 0, kind: input, shape index: {}]   ;;  %s598_s1 = inlined_call_operand.vmem [shape: f32[1,64], index: 1, kind: input, shape index: {}]   ;;  %s599_s2 = inlined_call_operand.vmem [shape: f32[1,64], index: 2, kind: input, shape index: {}]   ;;  %s600_s3 = inlined_call_operand.vmem [shape: f32[128,1], index: 3, kind: input, shape index: {}]   ;;  %s601_s4 = inlined_call_operand.vmem [shape: bf16[128,64], index: 4, kind: output, shape index: {}]  }
   0x1 LB: > { %s450_s16 = sadd.s32 4294967295, %s517_s15   ;;  %p454_p0 = scmp.ge.s32.totalorder %s517_s15, 1  ;;  %s517_s15 = sphi %s545_s15, %s14_s15  }
   0x2   : > { %p174_p1 = scmp.lt.s32.totalorder %s517_s15, 3 }
   0x4   : > { %p175_p2 = pnand %p454_p0, %p174_p1 }
   0x5   : > { %s455_s17 = sshll.u32 (!%p175_p2), %s450_s16, 3  ;;  %v519_v0 = vmov (!%p175_p2), 0   ;;  %v461_v13 = vld [vmem:[%s598_s1] ss:$0 sm:$0xff] (!%p175_p2)  ;;  %vm373_vm0 = vcmask (!%p175_p2), 519168  }
   0x6   : > { %178 = sbr.rel (%p175_p2) target bundleno = 162 (0xa2), region = 36  ;;  %510 = vset.pattern.permute.xlu1 (!%p175_p2), %v519_v0  ;;  %509 = vset.pattern.permute.xlu0 (!%p175_p2), %v519_v0  ;;  %p206_p3 = scmp.lt.s32.totalorder (!%p175_p2), %s455_s17, 15  ;;  %v462_v19 = vld [vmem:[%s599_s2] ss:$0 sm:$0xff] (!%p175_p2) }
   0xd   : > { %s603_s17 = smov (!%p206_p3, %s455_s17), 15 }
   0xe   : > { %s458_s18 = sshll.u32 %s603_s17, 3  ;;  %s456_s22 = sshll.u32 %s603_s17, 2 }
   0xf   : > { %s215_s21 = scalar_lea.vmem %s600_s3, %s458_s18  ;;  %s209_s25 = scalar_lea.vmem %s597_s0, %s456_s22 }
  0x10   : > { %v287_v1 = vld [vmem:[%s215_s21 + $0x10] sm:$0xff]  ;;  %v285_v2 = vld [vmem:[%s215_s21] sm:$0xff]  ;;  %v288_v3 = vld [vmem:[%s215_s21 + $0x18] sm:$0xff]  ;;  %s576_s6 = scalar_lea.vmem %s601_s4, %s456_s22 }
  0x11   : > { %305 = vperm.xlu1 %510, %v287_v1   ;;  %295 = vperm.xlu0 %509, %v285_v2   ;;  %v286_v4 = vld [vmem:[%s215_s21 + $0x8] sm:$0xff]  ;;  %v289_v6 = vld [vmem:[%s215_s21 + $0x20] sm:$0xff]  ;;  %v292_v7 = vld [vmem:[%s215_s21 + $0x38] sm:$0xff] }
  0x12   : > { %v290_v5 = vld [vmem:[%s215_s21 + $0x28] sm:$0xff]  ;;  %v291_v8 = vld [vmem:[%s215_s21 + $0x30] sm:$0xff]  ;;  %v482_v10 = vld [vmem:[%s209_s25] sm:$0xff]  }
  0x13   : > { %v497_v9 = vld [vmem:[%s209_s25 + $0x8] sm:$0xff]   ;;  %v483_v12 = vunpack.c.l.bf16 %v482_v10  ;;  %v484_v17 = vunpack.c.h.bf16 %v482_v10  ;;  %v498_v18 = vld [vmem:[%s209_s25 + $0x10] sm:$0xff]   ;;  %v499_v26 = vld [vmem:[%s209_s25 + $0x18] sm:$0xff]  }
  0x14   : > { %v487_v11 = vunpack.c.l.bf16 %v497_v9  ;;  %v488_v14 = vunpack.c.h.bf16 %v497_v9  ;;  %v492_v21 = vunpack.c.h.bf16 %v498_v18  ;;  %v491_v25 = vunpack.c.l.bf16 %v498_v18 }
  0x15   : > { %310 = vperm.xlu1 %510, %v288_v3   ;;  %300 = vperm.xlu0 %509, %v286_v4   ;;  %v246_v16 = vmul.f32 %v483_v12, %v461_v13  ;;  %v247_v24 = vmul.f32 %v484_v17, %v461_v13  ;;  %v496_v29 = vunpack.c.h.bf16 %v499_v26  ;;  %v495_v30 = vunpack.c.l.bf16 %v499_v26 }
  0x16   : > { %v248_v15 = vmul.f32 %v487_v11, %v461_v13  ;;  %v249_v20 = vmul.f32 %v488_v14, %v461_v13  ;;  %v251_v28 = vmul.f32 %v492_v21, %v461_v13  ;;  %v250_v34 = vmul.f32 %v491_v25, %v461_v13 }
  0x17   : > { %v261_v23 = vadd.f32 %v462_v19, %v246_v16  ;;  %v262_v33 = vadd.f32 %v462_v19, %v247_v24  ;;  %v253_v37 = vmul.f32 %v496_v29, %v461_v13  ;;  %v252_v38 = vmul.f32 %v495_v30, %v461_v13 }
  0x18   : > { %v263_v22 = vadd.f32 %v462_v19, %v248_v15  ;;  %v264_v27 = vadd.f32 %v462_v19, %v249_v20  ;;  %v266_v36 = vadd.f32 %v462_v19, %v251_v28  ;;  %v265_v42 = vadd.f32 %v462_v19, %v250_v34 }
  0x19   : > { %320 = vperm.xlu1 %510, %v290_v5   ;;  %315 = vperm.xlu0 %509, %v289_v6   ;;  %v269_v32 = vmul.f32 0.01, %v261_v23  ;;  %v270_v41 = vmul.f32 0.01, %v262_v33  ;;  %v268_v47 = vadd.f32 %v462_v19, %v253_v37  ;;  %v267_v48 = vadd.f32 %v462_v19, %v252_v38 }
  0x1a   : > { %v271_v31 = vmul.f32 0.01, %v263_v22  ;;  %v272_v35 = vmul.f32 0.01, %v264_v27  ;;  %v274_v46 = vmul.f32 0.01, %v266_v36 }
  0x1b   : > { %v277_v40 = vmax.f32 %v261_v23, %v269_v32  ;;  %v278_v51 = vmax.f32 %v262_v33, %v270_v41  ;;  %v273_v52 = vmul.f32 0.01, %v265_v42  ;;  %v276_v58 = vmul.f32 0.01, %v268_v47 }
  0x1c   : > { %v279_v39 = vmax.f32 %v263_v22, %v271_v31  ;;  %v280_v45 = vmax.f32 %v264_v27, %v272_v35  ;;  %v282_v57 = vmax.f32 %v266_v36, %v274_v46  ;;  %v275_v62 = vmul.f32 0.01, %v267_v48 }
  0x1d   : > { %330 = vperm.xlu1 %510, %v292_v7   ;;  %325 = vperm.xlu0 %509, %v291_v8   ;;  %v281_v61 = vmax.f32 %v265_v42, %v273_v52  ;;  %v284_v5 = vmax.f32 %v268_v47, %v276_v58 }
  0x1e   : > { %v283_v6 = vmax.f32 %v267_v48, %v275_v62 }
  0x90   : > { %v306_v43 = vpop.permute.xlu1 %305  ;;  %v296_v44 = vpop.permute.xlu0 %295 }
  0x91   : > { %v335_v49 = vmul.f32 %v306_v43, %v279_v39  ;;  %v333_v50 = vmul.f32 %v296_v44, %v277_v40 }
  0x93   : > { %v475_v53 = vpack.c.bf16 %v335_v49, %v335_v49  ;;  %v473_v54 = vpack.c.bf16 %v333_v50, %v333_v50 }
  0x94   : > { %v311_v55 = vpop.permute.xlu1 %310  ;;  %v301_v56 = vpop.permute.xlu0 %300 }
  0x95   : > { %376 = vst.msk [vmem:[%s576_s6 + $0x8] sm:$0xf] %vm373_vm0, %v475_v53  ;;  %374 = vst.msk [vmem:[%s576_s6] sm:$0xf] %vm373_vm0, %v473_v54  ;;  %v336_v59 = vmul.f32 %v311_v55, %v280_v45  ;;  %v334_v60 = vmul.f32 %v301_v56, %v278_v51 }
  0x97   : > { %v476_v63 = vpack.c.bf16 %v336_v59, %v336_v59  ;;  %v474_v0 = vpack.c.bf16 %v334_v60, %v334_v60 }
  0x98   : > { %v321_v1 = vpop.permute.xlu1 %320  ;;  %v316_v2 = vpop.permute.xlu0 %315 }
  0x99   : > { %377 = vst.msk [vmem:[%s576_s6 + $0xc] sm:$0xf] %vm373_vm0, %v476_v63  ;;  %375 = vst.msk [vmem:[%s576_s6 + $0x4] sm:$0xf] %vm373_vm0, %v474_v0  ;;  %v338_v3 = vmul.f32 %v321_v1, %v282_v57  ;;  %v337_v4 = vmul.f32 %v316_v2, %v281_v61 }
  0x9b   : > { %v478_v7 = vpack.c.bf16 %v338_v3, %v338_v3  ;;  %v477_v8 = vpack.c.bf16 %v337_v4, %v337_v4 }
  0x9c   : > { %v331_v9 = vpop.permute.xlu1 %330  ;;  %v326_v10 = vpop.permute.xlu0 %325 }
  0x9d   : > { %379 = vst.msk [vmem:[%s576_s6 + $0x14] sm:$0xf] %vm373_vm0, %v478_v7  ;;  %378 = vst.msk [vmem:[%s576_s6 + $0x10] sm:$0xf] %vm373_vm0, %v477_v8  ;;  %v340_v11 = vmul.f32 %v331_v9, %v284_v5  ;;  %v339_v12 = vmul.f32 %v326_v10, %v283_v6 }
  0x9f   : > { %v480_v13 = vpack.c.bf16 %v340_v11, %v340_v11  ;;  %v479_v14 = vpack.c.bf16 %v339_v12, %v339_v12 }
  0xa1   : > { %381 = vst.msk [vmem:[%s576_s6 + $0x1c] sm:$0xf] %vm373_vm0, %v480_v13  ;;  %380 = vst.msk [vmem:[%s576_s6 + $0x18] sm:$0xf] %vm373_vm0, %v479_v14 }
  0xa2 PF: > { %s14_s15 = sadd.s32 1, %s517_s15  }
  0xa3   : > { %p11_p4 = scmp.ge.s32.totalorder %s14_s15, 4  }
  0xa5   :  { %13 = sbr.rel (!%p11_p4) target bundleno = 1 (0x1), region = 69 }

// kernel: forward.13
= control target key start
LH: loop header
LB: loop body
LE: loop exit
PB: predicated region body
PF: predicated region fallthrough
CT: control target
= control target key end

     0   :  { %s567_s15 = smov 0   ;;  %s601_s0 = inlined_call_operand.vmem [shape: bf16[128,128], index: 0, kind: input, shape index: {}]   ;;  %s602_s1 = inlined_call_operand.vmem [shape: f32[1,128], index: 1, kind: input, shape index: {}]   ;;  %s603_s2 = inlined_call_operand.vmem [shape: f32[1,128], index: 2, kind: input, shape index: {}]   ;;  %s604_s3 = inlined_call_operand.vmem [shape: f32[128,1], index: 3, kind: input, shape index: {}]   ;;  %s605_s4 = inlined_call_operand.vmem [shape: bf16[128,128], index: 4, kind: output, shape index: {}]  }
   0x1 LB: > { %s449_s16 = sadd.s32 4294967295, %s539_s15   ;;  %p453_p0 = scmp.ge.s32.totalorder %s539_s15, 1  ;;  %s539_s15 = sphi %s567_s15, %s14_s15  }
   0x2   : > { %p174_p1 = scmp.lt.s32.totalorder %s539_s15, 3 }
   0x4   : > { %p175_p2 = pnand %p453_p0, %p174_p1 }
   0x5   : > { %s454_s17 = sshll.u32 (!%p175_p2), %s449_s16, 3  ;;  %v541_v0 = vmov (!%p175_p2), 0   ;;  %v460_v12 = vld [vmem:[%s602_s1] ss:$0 sm:$0xff] (!%p175_p2) }
   0x6   : > { %178 = sbr.rel (%p175_p2) target bundleno = 162 (0xa2), region = 36  ;;  %532 = vset.pattern.permute.xlu1 (!%p175_p2), %v541_v0  ;;  %531 = vset.pattern.permute.xlu0 (!%p175_p2), %v541_v0  ;;  %p206_p3 = scmp.lt.s32.totalorder (!%p175_p2), %s454_s17, 15  ;;  %v461_v21 = vld [vmem:[%s603_s2] ss:$0 sm:$0xff] (!%p175_p2) }
   0xd   : > { %s607_s17 = smov (!%p206_p3, %s454_s17), 15 }
   0xe   : > { %s457_s18 = sshll.u32 %s607_s17, 3  ;;  %s455_s22 = sshll.u32 %s607_s17, 2 }
   0xf   : > { %s215_s21 = scalar_lea.vmem %s604_s3, %s457_s18  ;;  %s209_s25 = scalar_lea.vmem %s601_s0, %s455_s22 }
  0x10   : > { %v287_v1 = vld [vmem:[%s215_s21 + $0x10] sm:$0xff]  ;;  %v285_v2 = vld [vmem:[%s215_s21] sm:$0xff]  ;;  %v288_v3 = vld [vmem:[%s215_s21 + $0x18] sm:$0xff]  ;;  %s221_s6 = scalar_lea.vmem %s605_s4, %s455_s22 }
  0x11   : > { %305 = vperm.xlu1 %532, %v287_v1   ;;  %295 = vperm.xlu0 %531, %v285_v2   ;;  %v286_v4 = vld [vmem:[%s215_s21 + $0x8] sm:$0xff]  ;;  %v289_v6 = vld [vmem:[%s215_s21 + $0x20] sm:$0xff]  ;;  %v292_v7 = vld [vmem:[%s215_s21 + $0x38] sm:$0xff] }
  0x12   : > { %v290_v5 = vld [vmem:[%s215_s21 + $0x28] sm:$0xff]  ;;  %v291_v8 = vld [vmem:[%s215_s21 + $0x30] sm:$0xff]  ;;  %v481_v10 = vld [vmem:[%s209_s25] sm:$0xff]  }
  0x13   : > { %v516_v9 = vld [vmem:[%s209_s25 + $0x8] sm:$0xff]   ;;  %v482_v13 = vunpack.c.l.bf16 %v481_v10  ;;  %v483_v15 = vunpack.c.h.bf16 %v481_v10  ;;  %v517_v16 = vld [vmem:[%s209_s25 + $0x10] sm:$0xff]   ;;  %v518_v20 = vld [vmem:[%s209_s25 + $0x18] sm:$0xff]  }
  0x14   : > { %v486_v11 = vunpack.c.l.bf16 %v516_v9  ;;  %v487_v14 = vunpack.c.h.bf16 %v516_v9  ;;  %v491_v18 = vunpack.c.h.bf16 %v517_v16  ;;  %v490_v19 = vunpack.c.l.bf16 %v517_v16 }
  0x15   : > { %310 = vperm.xlu1 %532, %v288_v3   ;;  %300 = vperm.xlu0 %531, %v286_v4   ;;  %v246_v22 = vmul.f32 %v482_v13, %v460_v12  ;;  %v247_v24 = vmul.f32 %v483_v15, %v460_v12  ;;  %v495_v25 = vunpack.c.h.bf16 %v518_v20  ;;  %v494_v29 = vunpack.c.l.bf16 %v518_v20 }
  0x16   : > { %v248_v17 = vmul.f32 %v486_v11, %v460_v12  ;;  %v249_v23 = vmul.f32 %v487_v14, %v460_v12  ;;  %v251_v27 = vmul.f32 %v491_v18, %v460_v12  ;;  %v250_v28 = vmul.f32 %v490_v19, %v460_v12 }
  0x17   : > { %v261_v30 = vadd.f32 %v461_v21, %v246_v22  ;;  %v262_v32 = vadd.f32 %v461_v21, %v247_v24  ;;  %v253_v33 = vmul.f32 %v495_v25, %v460_v12  ;;  %v252_v37 = vmul.f32 %v494_v29, %v460_v12 }
  0x18   : > { %v263_v26 = vadd.f32 %v461_v21, %v248_v17  ;;  %v264_v31 = vadd.f32 %v461_v21, %v249_v23  ;;  %v266_v35 = vadd.f32 %v461_v21, %v251_v27  ;;  %v265_v36 = vadd.f32 %v461_v21, %v250_v28 }
  0x19   : > { %320 = vperm.xlu1 %532, %v290_v5   ;;  %315 = vperm.xlu0 %531, %v289_v6   ;;  %v269_v38 = vmul.f32 0.01, %v261_v30  ;;  %v270_v40 = vmul.f32 0.01, %v262_v32  ;;  %v268_v45 = vadd.f32 %v461_v21, %v253_v33  ;;  %v267_v46 = vadd.f32 %v461_v21, %v252_v37 }
  0x1a   : > { %v271_v34 = vmul.f32 0.01, %v263_v26  ;;  %v272_v39 = vmul.f32 0.01, %v264_v31  ;;  %v274_v43 = vmul.f32 0.01, %v266_v35 }
  0x1b   : > { %v273_v44 = vmul.f32 0.01, %v265_v36  ;;  %v277_v48 = vmax.f32 %v261_v30, %v269_v38  ;;  %v278_v50 = vmax.f32 %v262_v32, %v270_v40  ;;  %v276_v55 = vmul.f32 0.01, %v268_v45 }
  0x1c   : > { %v279_v47 = vmax.f32 %v263_v26, %v271_v34  ;;  %v280_v49 = vmax.f32 %v264_v31, %v272_v39  ;;  %v282_v53 = vmax.f32 %v266_v35, %v274_v43  ;;  %v275_v56 = vmul.f32 0.01, %v267_v46 }
  0x1d   : > { %330 = vperm.xlu1 %532, %v292_v7   ;;  %325 = vperm.xlu0 %531, %v291_v8   ;;  %v281_v54 = vmax.f32 %v265_v36, %v273_v44  ;;  %v284_v3 = vmax.f32 %v268_v45, %v276_v55 }
  0x1e   : > { %v283_v4 = vmax.f32 %v267_v46, %v275_v56 }
  0x90   : > { %v306_v41 = vpop.permute.xlu1 %305  ;;  %v296_v42 = vpop.permute.xlu0 %295 }
  0x91   : > { %v335_v57 = vmul.f32 %v306_v41, %v279_v47  ;;  %v333_v58 = vmul.f32 %v296_v42, %v277_v48 }
  0x94   : > { %v311_v51 = vpop.permute.xlu1 %310  ;;  %v301_v52 = vpop.permute.xlu0 %300 }
  0x95   : > { %v336_v59 = vmul.f32 %v311_v51, %v280_v49  ;;  %v334_v60 = vmul.f32 %v301_v52, %v278_v50 }
  0x97   : > { %v504_v61 = vpack.c.bf16 %v336_v59, %v335_v57  ;;  %v499_v62 = vpack.c.bf16 %v334_v60, %v333_v58 }
  0x98   : > { %v321_v63 = vpop.permute.xlu1 %320  ;;  %v316_v0 = vpop.permute.xlu0 %315 }
  0x99   : > { %519 = vst [vmem:[%s221_s6 + $0x8] sm:$0xff] %v504_v61   ;;  %500 = vst [vmem:[%s221_s6] sm:$0xff] %v499_v62   ;;  %v338_v1 = vmul.f32 %v321_v63, %v282_v53  ;;  %v337_v2 = vmul.f32 %v316_v0, %v281_v54 }
  0x9b   : > { %v509_v5 = vpack.c.bf16 %v338_v1, %v337_v2 }
  0x9c   : > { %v331_v6 = vpop.permute.xlu1 %330  ;;  %v326_v7 = vpop.permute.xlu0 %325 }
  0x9d   : > { %520 = vst [vmem:[%s221_s6 + $0x10] sm:$0xff] %v509_v5   ;;  %v340_v8 = vmul.f32 %v331_v6, %v284_v3  ;;  %v339_v9 = vmul.f32 %v326_v7, %v283_v4 }
  0x9f   : > { %v514_v10 = vpack.c.bf16 %v340_v8, %v339_v9 }
  0xa1   : > { %521 = vst [vmem:[%s221_s6 + $0x18] sm:$0xff] %v514_v10  }
  0xa2 PF: > { %s14_s15 = sadd.s32 1, %s539_s15  }
  0xa3   : > { %p11_p4 = scmp.ge.s32.totalorder %s14_s15, 4  }
  0xa5   :  { %13 = sbr.rel (!%p11_p4) target bundleno = 1 (0x1), region = 69 }

// kernel: forward.12
= control target key start
LH: loop header
LB: loop body
LE: loop exit
PB: predicated region body
PF: predicated region fallthrough
CT: control target
= control target key end

     0   :  { %s2447_s24 = smov 0   ;;  %s2807_s0 = inlined_call_operand.vmem [shape: bf16[128,576], index: 0, kind: input, shape index: {}]   ;;  %s2808_s1 = inlined_call_operand.vmem [shape: bf16[576,128], index: 1, kind: input, shape index: {}]   ;;  %s2809_s2 = inlined_call_operand.vmem [shape: bf16[128,576], index: 2, kind: input, shape index: {}]   ;;  %s2810_s3 = inlined_call_operand.vmem [shape: bf16[576,128], index: 3, kind: input, shape index: {}]   ;;  %s2811_s4 = inlined_call_operand.vmem [shape: f32[1,128], index: 4, kind: input, shape index: {}]   ;;  %s2812_s5 = inlined_call_operand.vmem [shape: bf16[128,128], index: 5, kind: output, shape index: {0}]   ;;  %s2813_s6 = inlined_call_operand.vmem [shape: bf16[128,128], index: 6, kind: output, shape index: {1}]   ;;  %s2814_s7 = inlined_call_operand.vmem [shape: f32[2,2,128], index: 7, kind: output, shape index: {2}]  }
   0x1 LB: > { %s2453_s25 = sadd.s32 4294967295, %s2405_s24   ;;  %p1843_p0 = scmp.ge.s32.totalorder %s2405_s24, 1  ;;  %s2405_s24 = sphi %s2447_s24, %s18_s24  }
   0x2   : > { %p256_p1 = scmp.lt.s32.totalorder %s2405_s24, 3 }
   0x4   : > { %p257_p2 = pnand %p1843_p0, %p256_p1 }
   0x5   : > { %v2271_v0 = vld [vmem:[%s2808_s1 + $0x40] sm:$0xff] (!%p257_p2)   ;;  %v2275_v4 = vld [vmem:[%s2808_s1 + $0x48] sm:$0xff] (!%p257_p2)   ;;  %v2279_v8 = vld [vmem:[%s2808_s1 + $0x50] sm:$0xff] (!%p257_p2)   ;;  %s1844_s12 = sshll.u32 (!%p257_p2), %s2453_s25, 3  ;;  %vm747_vm0 = vcmask (!%p257_p2), 523264   ;;  %p330_p4 = scmp.lt.s32.totalorder (!%p257_p2), %s2453_s25, 1 }
   0x6   : > { %260 = sbr.rel (%p257_p2) target bundleno = 351 (0x15f), region = 40  ;;  %v2272_v1 = vld [vmem:[%s2808_s1 + $0xc0] sm:$0xff] (!%p257_p2)   ;;  %2054 = vmatprep.subr.bf16.mxu0 (!%p257_p2), %v2271_v0  ;;  %v2276_v5 = vld [vmem:[%s2808_s1 + $0xc8] sm:$0xff] (!%p257_p2)   ;;  %v2280_v9 = vld [vmem:[%s2808_s1 + $0xd0] sm:$0xff] (!%p257_p2)   ;;  %p305_p3 = scmp.lt.s32.totalorder (!%p257_p2), %s1844_s12, 15  ;;  %vm1037_vm1 = vcmask (!%p257_p2), 1040384  }
   0x7   : > { %v2273_v2 = vld [vmem:[%s2808_s1] sm:$0xff] (!%p257_p2)   ;;  %2094 = vmatprep.subr.bf16.mxu1 (!%p257_p2), %v2272_v1  ;;  %v2277_v6 = vld [vmem:[%s2808_s1 + $0x8] sm:$0xff] (!%p257_p2)   ;;  %v2281_v10 = vld [vmem:[%s2808_s1 + $0x10] sm:$0xff] (!%p257_p2)  }
   0x8   : > { %v2274_v3 = vld [vmem:[%s2808_s1 + $0x80] sm:$0xff] (!%p257_p2)   ;;  %2055 = vmatpush3.bf16.msra.mxu0 (!%p257_p2), %v2273_v2  ;;  %v2278_v7 = vld [vmem:[%s2808_s1 + $0x88] sm:$0xff] (!%p257_p2)   ;;  %v2282_v11 = vld [vmem:[%s2808_s1 + $0x90] sm:$0xff] (!%p257_p2)  }
   0x9   : > { %2095 = vmatpush3.bf16.msra.mxu1 (!%p257_p2), %v2274_v3  ;;  %2056 = vmatprep.subr.bf16.mxu0 (!%p257_p2), %v2275_v4  ;;  %v2283_v12 = vld [vmem:[%s2808_s1 + $0x58] sm:$0xff] (!%p257_p2)   ;;  %v2287_v16 = vld [vmem:[%s2808_s1 + $0x60] sm:$0xff] (!%p257_p2)   ;;  %v2291_v20 = vld [vmem:[%s2808_s1 + $0x68] sm:$0xff] (!%p257_p2)  }
   0xa   : > { %2096 = vmatprep.subr.bf16.mxu1 (!%p257_p2), %v2276_v5  ;;  %v2284_v13 = vld [vmem:[%s2808_s1 + $0xd8] sm:$0xff] (!%p257_p2)   ;;  %v2288_v17 = vld [vmem:[%s2808_s1 + $0xe0] sm:$0xff] (!%p257_p2)   ;;  %v2292_v21 = vld [vmem:[%s2808_s1 + $0xe8] sm:$0xff] (!%p257_p2)  }
   0xb   : > { %v2285_v14 = vld [vmem:[%s2808_s1 + $0x18] sm:$0xff] (!%p257_p2)   ;;  %v2289_v18 = vld [vmem:[%s2808_s1 + $0x20] sm:$0xff] (!%p257_p2)   ;;  %v2293_v22 = vld [vmem:[%s2808_s1 + $0x28] sm:$0xff] (!%p257_p2)  }
   0xc   : > { %2057 = vmatpush3.bf16.msra.mxu0 (!%p257_p2), %v2277_v6  ;;  %v2286_v15 = vld [vmem:[%s2808_s1 + $0x98] sm:$0xff] (!%p257_p2)   ;;  %v2290_v19 = vld [vmem:[%s2808_s1 + $0xa0] sm:$0xff] (!%p257_p2)   ;;  %v2294_v23 = vld [vmem:[%s2808_s1 + $0xa8] sm:$0xff] (!%p257_p2)  }
   0xd   : > { %2097 = vmatpush3.bf16.msra.mxu1 %v2278_v7  ;;  %2058 = vmatprep.subr.bf16.mxu0 %v2279_v8  ;;  %s2816_s12 = smov (!%p305_p3, %s1844_s12), 15  ;;  %v2295_v24 = vld [vmem:[%s2808_s1 + $0x70] sm:$0xff]   ;;  %v2299_v28 = vld [vmem:[%s2808_s1 + $0x78] sm:$0xff]   ;;  %v2309_v36 = vld [vmem:[%s2808_s1 + $0x100] sm:$0xff]   ;;  %s2818_s25 = smov (!%p330_p4, %s2453_s25), 1 }
   0xe   : > { %2098 = vmatprep.subr.bf16.mxu1 %v2280_v9  ;;  %v2296_v25 = vld [vmem:[%s2808_s1 + $0xf0] sm:$0xff]   ;;  %s2262_s15 = smul.u32 20, %s2816_s12  ;;  %v2300_v29 = vld [vmem:[%s2808_s1 + $0xf8] sm:$0xff]   ;;  %v2310_v37 = vld [vmem:[%s2810_s3 + $0x40] sm:$0xff]   ;;  %s1852_s27 = sshll.u32 %s2818_s25, 1 }
   0xf   : > { %v2297_v26 = vld [vmem:[%s2808_s1 + $0x30] sm:$0xff]   ;;  %v2301_v30 = vld [vmem:[%s2808_s1 + $0x38] sm:$0xff]   ;;  %v2311_v38 = vld [vmem:[%s2810_s3] sm:$0xff]   ;;  %s333_s8 = scalar_lea.vmem %s2814_s7, %s1852_s27 }
  0x10   : > { %2059 = vmatpush3.bf16.msra.mxu0 %v2281_v10  ;;  %v2298_v27 = vld [vmem:[%s2808_s1 + $0xb0] sm:$0xff]   ;;  %s2556_s28 = scalar_lea.vmem %s2807_s0, %s2262_s15  ;;  %v2302_v31 = vld [vmem:[%s2808_s1 + $0xb8] sm:$0xff]   ;;  %v2316_v41 = vld [vmem:[%s2810_s3 + $0x48] sm:$0xff]   ;;  %s2648_s18 = scalar_lea.vmem %s2809_s2, %s2262_s15 }
  0x11   : > { %2099 = vmatpush3.bf16.msra.mxu1 %v2282_v11  ;;  %2060 = vmatprep.subr.bf16.mxu0 %v2283_v12  ;;  %v2303_v32 = vld [vmem:[%s2556_s28] ss:$20 sps:$4 sm:$0xff]   ;;  %v2305_v33 = vld [vmem:[%s2556_s28 + $0x4] ss:$20 sps:$4 sm:$0xff]   ;;  %v2306_v34 = vld [vmem:[%s2556_s28 + $0x8] ss:$20 sps:$4 sm:$0xff]  }
  0x12   : > { %2100 = vmatprep.subr.bf16.mxu1 %v2284_v13  ;;  %v2308_v35 = vld [vmem:[%s2556_s28 + $0xc] ss:$20 sps:$4 sm:$0xff]   ;;  %792 = vmatprep.mubr.bf16.mxu0 %v2305_v33  ;;  %v2314_v40 = vld [vmem:[%s2556_s28 + $0x34] ss:$20 sps:$4 sm:$0xff]   ;;  %v2318_v43 = vld [vmem:[%s2556_s28 + $0x30] ss:$20 sps:$4 sm:$0xff]  }
  0x13   : > { %857 = vmatprep.mubr.bf16.mxu1 %v2308_v35  ;;  %v2312_v39 = vld [vmem:[%s2556_s28 + $0x2c] ss:$20 sps:$4 sm:$0xff]   ;;  %v2317_v42 = vld [vmem:[%s2556_s28 + $0x28] ss:$20 sps:$4 sm:$0xff]   ;;  %v2321_v46 = vld [vmem:[%s2810_s3 + $0x50] sm:$0xff]  }
  0x14   : > { %2061 = vmatpush3.bf16.msra.mxu0 %v2285_v14  ;;  %v2319_v44 = vld [vmem:[%s2808_s1 + $0x108] sm:$0xff]   ;;  %v2322_v47 = vld [vmem:[%s2810_s3 + $0x10] sm:$0xff]   ;;  %v2327_v50 = vld [vmem:[%s2810_s3 + $0x58] sm:$0xff]  }
  0x15   : > { %2101 = vmatpush3.bf16.msra.mxu1 %v2286_v15  ;;  %2062 = vmatprep.subr.bf16.mxu0 %v2287_v16  ;;  %v2320_v45 = vld [vmem:[%s2810_s3 + $0x8] sm:$0xff]   ;;  %v2325_v49 = vld [vmem:[%s2556_s28 + $0x5c] ss:$20 sps:$4 sm:$0xff]   ;;  %v2332_v55 = vld [vmem:[%s2810_s3 + $0x60] sm:$0xff]  }
  0x16   : > { %2102 = vmatprep.subr.bf16.mxu1 %v2288_v17  ;;  %v2323_v48 = vld [vmem:[%s2556_s28 + $0x54] ss:$20 sps:$4 sm:$0xff]   ;;  %v2328_v51 = vld [vmem:[%s2556_s28 + $0x50] ss:$20 sps:$4 sm:$0xff]   ;;  %v2329_v52 = vld [vmem:[%s2556_s28 + $0x58] ss:$20 sps:$4 sm:$0xff]  }
  0x17   : > { %v2330_v53 = vld [vmem:[%s2808_s1 + $0x110] sm:$0xff]   ;;  %v2331_v54 = vld [vmem:[%s2810_s3 + $0x18] sm:$0xff]   ;;  %v2333_v56 = vld [vmem:[%s2810_s3 + $0x20] sm:$0xff]  }
  0x18   : > { %2063 = vmatpush3.bf16.msra.mxu0 %v2289_v18  ;;  %v2334_v57 = vld [vmem:[%s2556_s28 + $0x7c] ss:$20 sps:$4 sm:$0xff]   ;;  %v2336_v58 = vld [vmem:[%s2556_s28 + $0x84] ss:$20 sps:$4 sm:$0xff]   ;;  %v2338_v59 = vld [vmem:[%s2810_s3 + $0x68] sm:$0xff]  }
  0x19   : > { %2103 = vmatpush3.bf16.msra.mxu1 %v2290_v19  ;;  %2064 = vmatprep.subr.bf16.mxu0 %v2291_v20  ;;  %v2339_v60 = vld [vmem:[%s2556_s28 + $0x78] ss:$20 sps:$4 sm:$0xff]   ;;  %v2340_v61 = vld [vmem:[%s2556_s28 + $0x80] ss:$20 sps:$4 sm:$0xff]   ;;  %v2345_v2 = vld [vmem:[%s2556_s28 + $0x10] ss:$20 sps:$4 sm:$0xff]  }
  0x1a   : > { %2104 = vmatprep.subr.bf16.mxu1 %v2292_v21  ;;  %v2341_v62 = vld [vmem:[%s2808_s1 + $0x118] sm:$0xff]   ;;  %v2342_v63 = vld [vmem:[%s2810_s3 + $0x28] sm:$0xff]   ;;  %v2343_v0 = vld [vmem:[%s2810_s3 + $0x70] sm:$0xff]  }
  0x1b   : > { %v2344_v1 = vld [vmem:[%s2810_s3 + $0x30] sm:$0xff]   ;;  %v2346_v3 = vld [vmem:[%s2810_s3 + $0x78] sm:$0xff]   ;;  %v2347_v4 = vld [vmem:[%s2810_s3 + $0xc0] sm:$0xff]  }
  0x1c   : > { %2065 = vmatpush3.bf16.msra.mxu0 %v2293_v22  ;;  %v2348_v5 = vld [vmem:[%s2556_s28 + $0x38] ss:$20 sps:$4 sm:$0xff]   ;;  %v2350_v7 = vld [vmem:[%s2810_s3 + $0x80] sm:$0xff]   ;;  %v2357_v13 = vld [vmem:[%s2810_s3 + $0xd0] sm:$0xff]  }
  0x1d   : > { %2105 = vmatpush3.bf16.msra.mxu1 %v2294_v23  ;;  %2066 = vmatprep.subr.bf16.mxu0 %v2295_v24  ;;  %v2349_v6 = vld [vmem:[%s2810_s3 + $0x38] sm:$0xff]   ;;  %v2351_v8 = vld [vmem:[%s2648_s18] ss:$20 sps:$4 sm:$0xff]   ;;  %v2354_v10 = vld [vmem:[%s2810_s3 + $0xc8] sm:$0xff]  }
  0x1e   : > { %2106 = vmatprep.subr.bf16.mxu1 %v2296_v25  ;;  %v2353_v9 = vld [vmem:[%s2648_s18 + $0x4] ss:$20 sps:$4 sm:$0xff]   ;;  %v2355_v11 = vld [vmem:[%s2810_s3 + $0x88] sm:$0xff]   ;;  %v2356_v12 = vld [vmem:[%s2556_s28 + $0x60] ss:$20 sps:$4 sm:$0xff]  }
  0x1f   : > { %v2358_v14 = vld [vmem:[%s2556_s28 + $0x88] ss:$20 sps:$4 sm:$0xff]   ;;  %v2359_v15 = vld [vmem:[%s2810_s3 + $0x90] sm:$0xff]   ;;  %v2360_v16 = vld [vmem:[%s2648_s18 + $0x2c] ss:$20 sps:$4 sm:$0xff]  }
  0x20   : > { %2067 = vmatpush3.bf16.msra.mxu0 %v2297_v26  ;;  %v2362_v17 = vld [vmem:[%s2648_s18 + $0x28] ss:$20 sps:$4 sm:$0xff]   ;;  %v2365_v20 = vld [vmem:[%s2810_s3 + $0xe0] sm:$0xff]   ;;  %v2378_v33 = vld [vmem:[%s2648_s18 + $0x78] ss:$20 sps:$4 sm:$0xff]  }
  0x21   : > { %2107 = vmatpush3.bf16.msra.mxu1 %v2298_v27  ;;  %2068 = vmatprep.subr.bf16.mxu0 %v2299_v28  ;;  %v2363_v18 = vld [vmem:[%s2810_s3 + $0xd8] sm:$0xff]   ;;  %v2366_v21 = vld [vmem:[%s2810_s3 + $0xa0] sm:$0xff]   ;;  %v2367_v22 = vld [vmem:[%s2648_s18 + $0x54] ss:$20 sps:$4 sm:$0xff]  }
  0x22   : > { %2108 = vmatprep.subr.bf16.mxu1 %v2300_v29  ;;  %v2364_v19 = vld [vmem:[%s2810_s3 + $0x98] sm:$0xff]   ;;  %v2370_v23 = vld [vmem:[%s2810_s3 + $0xe8] sm:$0xff]   ;;  %v2371_v24 = vld [vmem:[%s2810_s3 + $0x100] sm:$0xff]  }
  0x23   : > { %v2369_v25 = vld [vmem:[%s2648_s18 + $0x50] ss:$20 sps:$4 sm:$0xff]   ;;  %v2372_v26 = vld [vmem:[%s2810_s3 + $0xa8] sm:$0xff]  }
  0x24   : > { %2069 = vmatpush3.bf16.msra.mxu0 %v2301_v30  ;;  %v2374_v27 = vld [vmem:[%s2810_s3 + $0x108] sm:$0xff]   ;;  %v2373_v28 = vld [vmem:[%s2810_s3 + $0xf0] sm:$0xff]  }
  0x25   : > { %2109 = vmatpush3.bf16.msra.mxu1 %v2302_v31  ;;  %2230 = vmatprep.subr.bf16.mxu0 %v2309_v36  ;;  %v2376_v29 = vld [vmem:[%s2648_s18 + $0x7c] ss:$20 sps:$4 sm:$0xff]   ;;  %v2384_v35 = vld [vmem:[%s2648_s18 + $0xc] ss:$20 sps:$4 sm:$0xff]  }
  0x26   : > { %2142 = vmatprep.subr.bf16.mxu1 %v2310_v37  ;;  %v2375_v30 = vld [vmem:[%s2810_s3 + $0xb0] sm:$0xff]  }
  0x27   : > { %793 = vmatmul.mubr.bf16.vlgmr.msra.gmra.mrb[0].mxu0 %v2303_v32  ;;  %v2380_v31 = vld [vmem:[%s2810_s3 + $0x110] sm:$0xff]   ;;  %v2379_v32 = vld [vmem:[%s2810_s3 + $0xf8] sm:$0xff]  }
  0x28   : > { %858 = vmatmul.mubr.bf16.vlgmr.msra.gmra.mrb[0].mxu1 %v2306_v34  ;;  %2231 = vmatpush3.bf16.msra.mxu0 %v2309_v36  ;;  %v2381_v34 = vld [vmem:[%s2810_s3 + $0xb8] sm:$0xff]   ;;  %v2386_v37 = vld [vmem:[%s2648_s18 + $0x10] ss:$20 sps:$4 sm:$0xff]  }
  0x29   : > { %2143 = vmatpush3.bf16.msra.mxu1 %v2311_v38  ;;  %800 = vmatprep.mubr.bf16.mxu0 %v2312_v39  ;;  %v2385_v36 = vld [vmem:[%s2810_s3 + $0x118] sm:$0xff]   ;;  %v2388_v39 = vld [vmem:[%s2648_s18 + $0x34] ss:$20 sps:$4 sm:$0xff]  }
  0x2a   : > { %865 = vmatprep.mubr.bf16.mxu1 %v2314_v40  ;;  %2144 = vmatprep.subr.bf16.mxu1 %v2316_v41  ;;  %v2382_v38 = vld [vmem:[%s2648_s18 + $0x8] ss:$20 sps:$4 sm:$0xff]   ;;  %v2387_v40 = vld [vmem:[%s2648_s18 + $0x38] ss:$20 sps:$4 sm:$0xff]   ;;  %v2394_v41 = vld [vmem:[%s2648_s18 + $0x60] ss:$20 sps:$4 sm:$0xff]  }
  0x2b   : > { %2232 = vmatprep.subr.bf16.mxu0 %v2319_v44 }
  0x2c   : > { %2233 = vmatpush3.bf16.msra.mxu0 %v2319_v44  ;;  %v2395_v44 = vld [vmem:[%s2648_s18 + $0x88] ss:$20 sps:$4 sm:$0xff]  }
  0x2d   : > { %2145 = vmatpush3.bf16.msra.mxu1 %v2320_v45  ;;  %2234 = vmatprep.subr.bf16.mxu0 %v2330_v53  ;;  %v2393_v45 = vld [vmem:[%s2648_s18 + $0x58] ss:$20 sps:$4 sm:$0xff]  }
  0x2e   : > { %2146 = vmatprep.subr.bf16.mxu1 %v2321_v46  ;;  %v2396_v46 = vld [vmem:[%s2648_s18 + $0x84] ss:$20 sps:$4 sm:$0xff]  }
  0x2f   : > { %801 = vmatmul.mubr.bf16.gmra.mrb[4].mxu0 %v2317_v42  ;;  %v2390_v42 = vld [vmem:[%s2648_s18 + $0x30] ss:$20 sps:$4 sm:$0xff]  }
  0x30   : > { %866 = vmatmul.mubr.bf16.gmra.mrb[4].mxu1 %v2318_v43  ;;  %808 = vmatprep.mubr.bf16.mxu0 %v2323_v48  ;;  %v2391_v43 = vld [vmem:[%s2648_s18 + $0x5c] ss:$20 sps:$4 sm:$0xff]  }
  0x31   : > { %873 = vmatprep.mubr.bf16.mxu1 %v2325_v49  ;;  %2147 = vmatpush3.bf16.msra.mxu1 %v2322_v47  ;;  %v2398_v47 = vld [vmem:[%s2648_s18 + $0x80] ss:$20 sps:$4 sm:$0xff]   ;;  %s1849_s18 = sshll.u32 %s2816_s12, 2 }
  0x32   : > { %2148 = vmatprep.subr.bf16.mxu1 %v2327_v50  ;;  %2235 = vmatpush3.bf16.msra.mxu0 %v2330_v53  ;;  %s2745_s15 = scalar_lea.vmem %s2812_s5, %s1849_s18  ;;  %s2788_s10 = scalar_lea.vmem %s2813_s6, %s1849_s18 }
  0x33   : > { %2236 = vmatprep.subr.bf16.mxu0 %v2341_v62 }
  0x35   : > { %2149 = vmatpush3.bf16.msra.mxu1 %v2331_v54 }
  0x36   : > { %2150 = vmatprep.subr.bf16.mxu1 %v2332_v55  ;;  %2237 = vmatpush3.bf16.msra.mxu0 %v2341_v62 }
  0x37   : > { %809 = vmatmul.mubr.bf16.gmra.mrb[8].mxu0 %v2328_v51  ;;  %2182 = vmatprep.subr.bf16.mxu0 %v2347_v4 }
  0x38   : > { %874 = vmatmul.mubr.bf16.gmra.mrb[8].mxu1 %v2329_v52  ;;  %816 = vmatprep.mubr.bf16.mxu0 %v2334_v57 }
  0x39   : > { %881 = vmatprep.mubr.bf16.mxu1 %v2336_v58  ;;  %2151 = vmatpush3.bf16.msra.mxu1 %v2333_v56 }
  0x3a   : > { %2152 = vmatprep.subr.bf16.mxu1 %v2338_v59 }
  0x3d   : > { %2153 = vmatpush3.bf16.msra.mxu1 %v2342_v63 }
  0x3e   : > { %2154 = vmatprep.subr.bf16.mxu1 %v2343_v0 }
  0x3f   : > { %817 = vmatmul.mubr.bf16.gmra.mrb[12].mxu0 %v2339_v60 }
  0x40   : > { %882 = vmatmul.mubr.bf16.gmra.mrb[12].mxu1 %v2340_v61  ;;  %2238 = vmatprep.mubr.msk.bf16.mxu0 %vm747_vm0, %v2345_v2 }
  0x41   : > { %2155 = vmatpush3.bf16.msra.mxu1 %v2344_v1  ;;  %1503 = vmatprep.mubr.bf16.mxu1 %v2353_v9 }
  0x42   : > { %2156 = vmatprep.subr.bf16.mxu1 %v2346_v3 }
  0x45   : > { %2157 = vmatpush3.bf16.msra.mxu1 %v2349_v6 }
  0x46   : > { %2246 = vmatprep.subr.bf16.mxu1 %v2371_v24 }
  0x47   : > { %2239 = vmatmul.mubr.msk.bf16.vlgmr.msra.gmra.mrb[16].mxu0 %vm747_vm0, %v2348_v5 }
  0x48   : > { %2183 = vmatpush3.bf16.msra.mxu0 %v2350_v7  ;;  %2242 = vmatprep.mubr.msk.bf16.mxu0 %vm747_vm0, %v2356_v12 }
  0x49   : > { %2184 = vmatprep.subr.bf16.mxu0 %v2354_v10  ;;  %1504 = vmatmul.mubr.bf16.vlgmr.msra.gmra.mrb[16].mxu1 %v2351_v8 }
  0x4a   : > { %1511 = vmatprep.mubr.bf16.mxu1 %v2360_v16  ;;  %2247 = vmatpush3.bf16.msra.mxu1 %v2371_v24 }
  0x4b   : > { %2248 = vmatprep.subr.bf16.mxu1 %v2374_v27 }
  0x4c   : > { %2185 = vmatpush3.bf16.msra.mxu0 %v2355_v11 }
  0x4d   : > { %2186 = vmatprep.subr.bf16.mxu0 %v2357_v13 }
  0x4e   : > { %2249 = vmatpush3.bf16.msra.mxu1 %v2374_v27 }
  0x4f   : > { %2243 = vmatmul.mubr.msk.bf16.gmra.mrb[20].mxu0 %vm747_vm0, %v2358_v14  ;;  %2250 = vmatprep.subr.bf16.mxu1 %v2380_v31 }
  0x50   : > { %2187 = vmatpush3.bf16.msra.mxu0 %v2359_v15  ;;  %1568 = vmatprep.mubr.bf16.mxu0 %v2384_v35 }
  0x51   : > { %2188 = vmatprep.subr.bf16.mxu0 %v2363_v18  ;;  %1512 = vmatmul.mubr.bf16.gmra.mrb[20].mxu1 %v2362_v17 }
  0x52   : > { %1519 = vmatprep.mubr.bf16.mxu1 %v2367_v22  ;;  %2251 = vmatpush3.bf16.msra.mxu1 %v2380_v31 }
  0x53   : > { %2252 = vmatprep.subr.bf16.mxu1 %v2385_v36 }
  0x54   : > { %2189 = vmatpush3.bf16.msra.mxu0 %v2364_v19 }
  0x55   : > { %2190 = vmatprep.subr.bf16.mxu0 %v2365_v20 }
  0x56   : > { %2253 = vmatpush3.bf16.msra.mxu1 %v2385_v36 }
  0x58   : > { %2191 = vmatpush3.bf16.msra.mxu0 %v2366_v21 }
  0x59   : > { %2192 = vmatprep.subr.bf16.mxu0 %v2370_v23  ;;  %1520 = vmatmul.mubr.bf16.gmra.mrb[24].mxu1 %v2369_v25 }
  0x5a   : > { %1527 = vmatprep.mubr.bf16.mxu1 %v2376_v29 }
  0x5c   : > { %2193 = vmatpush3.bf16.msra.mxu0 %v2372_v26 }
  0x5d   : > { %2194 = vmatprep.subr.bf16.mxu0 %v2373_v28 }
  0x60   : > { %2195 = vmatpush3.bf16.msra.mxu0 %v2375_v30 }
  0x61   : > { %2196 = vmatprep.subr.bf16.mxu0 %v2379_v32  ;;  %1528 = vmatmul.mubr.bf16.gmra.mrb[28].mxu1 %v2378_v33 }
  0x62   : > { %2254 = vmatprep.mubr.msk.bf16.mxu1 %vm747_vm0, %v2386_v37 }
  0x64   : > { %2197 = vmatpush3.bf16.msra.mxu0 %v2381_v34 }
  0x67   : > { %1569 = vmatmul.mubr.bf16.vlgmr.msra.gmra.mrb[24].mxu0 %v2382_v38 }
  0x68   : > { %1576 = vmatprep.mubr.bf16.mxu0 %v2388_v39 }
  0x69   : > { %2255 = vmatmul.mubr.msk.bf16.vlgmr.msra.gmra.mrb[32].mxu1 %vm747_vm0, %v2387_v40 }
  0x6a   : > { %2258 = vmatprep.mubr.msk.bf16.mxu1 %vm747_vm0, %v2394_v41 }
  0x6f   : > { %1577 = vmatmul.mubr.bf16.gmra.mrb[28].mxu0 %v2390_v42 }
  0x70   : > { %1584 = vmatprep.mubr.bf16.mxu0 %v2391_v43 }
  0x71   : > { %2259 = vmatmul.mubr.msk.bf16.gmra.mrb[36].mxu1 %vm747_vm0, %v2395_v44 }
  0x77   : > { %1585 = vmatmul.mubr.bf16.gmra.mrb[32].mxu0 %v2393_v45 }
  0x78   : > { %1592 = vmatprep.mubr.bf16.mxu0 %v2396_v46 }
  0x7f   : > { %1593 = vmatmul.mubr.bf16.gmra.mrb[36].mxu0 %v2398_v47 }
  0xfa   : > { %v2070_v48 = vpop.f32.mrb[0].mxu0 }
  0xfb   : > { %v2110_v49 = vpop.f32.mrb[0].mxu1  ;;  %v2071_v50 = vpop.f32.mrb[1].mxu0 }
  0xfc   : > { %v2072_v51 = vadd.f32 %v2071_v50, %v2070_v48  ;;  %v2111_v52 = vpop.f32.mrb[1].mxu1  ;;  %v2073_v53 = vpop.f32.mrb[2].mxu0 }
  0xfd   : > { %v2112_v54 = vadd.f32 %v2111_v52, %v2110_v49  ;;  %v2113_v55 = vpop.f32.mrb[2].mxu1  ;;  %v2074_v56 = vpop.f32.mrb[3].mxu0 }
  0xfe   : > { %v2075_v57 = vadd.f32 %v2074_v56, %v2073_v53  ;;  %v2114_v58 = vpop.f32.mrb[3].mxu1 }
  0xff   : > { %v2115_v59 = vadd.f32 %v2114_v58, %v2113_v55  ;;  %v860_v60 = vadd.f32 %v2112_v54, %v2072_v51 }
 0x101   : > { %v863_v61 = vadd.f32 %v2115_v59, %v2075_v57 }
 0x102   : > { %v2076_v62 = vpop.f32.mrb[4].mxu0 }
 0x103   : > { %v2116_v63 = vpop.f32.mrb[4].mxu1  ;;  %v2077_v0 = vpop.f32.mrb[5].mxu0 }
 0x104   : > { %v2078_v1 = vadd.f32 %v2077_v0, %v2076_v62  ;;  %v2117_v2 = vpop.f32.mrb[5].mxu1  ;;  %v2079_v3 = vpop.f32.mrb[6].mxu0 }
 0x105   : > { %v2118_v4 = vadd.f32 %v2117_v2, %v2116_v63  ;;  %v2119_v5 = vpop.f32.mrb[6].mxu1  ;;  %v2080_v6 = vpop.f32.mrb[7].mxu0 }
 0x106   : > { %v2081_v7 = vadd.f32 %v2080_v6, %v2079_v3  ;;  %v2120_v8 = vpop.f32.mrb[7].mxu1 }
 0x107   : > { %v2121_v9 = vadd.f32 %v2120_v8, %v2119_v5  ;;  %v868_v10 = vadd.f32 %v2118_v4, %v2078_v1 }
 0x109   : > { %v871_v11 = vadd.f32 %v2121_v9, %v2081_v7 }
 0x10a   : > { %v2082_v12 = vpop.f32.mrb[8].mxu0 }
 0x10b   : > { %v2122_v13 = vpop.f32.mrb[8].mxu1  ;;  %v2083_v14 = vpop.f32.mrb[9].mxu0 }
 0x10c   : > { %v2084_v15 = vadd.f32 %v2083_v14, %v2082_v12  ;;  %v2123_v16 = vpop.f32.mrb[9].mxu1  ;;  %v2085_v17 = vpop.f32.mrb[10].mxu0 }
 0x10d   : > { %v2124_v18 = vadd.f32 %v2123_v16, %v2122_v13  ;;  %v2125_v19 = vpop.f32.mrb[10].mxu1  ;;  %v2086_v20 = vpop.f32.mrb[11].mxu0 }
 0x10e   : > { %v2087_v21 = vadd.f32 %v2086_v20, %v2085_v17  ;;  %v2126_v22 = vpop.f32.mrb[11].mxu1 }
 0x10f   : > { %v2127_v23 = vadd.f32 %v2126_v22, %v2125_v19  ;;  %v876_v24 = vadd.f32 %v2124_v18, %v2084_v15 }
 0x111   : > { %v879_v25 = vadd.f32 %v2127_v23, %v2087_v21 }
 0x112   : > { %v2088_v26 = vpop.f32.mrb[12].mxu0 }
 0x113   : > { %v2128_v27 = vpop.f32.mrb[12].mxu1  ;;  %v2089_v28 = vpop.f32.mrb[13].mxu0 }
 0x114   : > { %v2090_v29 = vadd.f32 %v2089_v28, %v2088_v26  ;;  %v2129_v30 = vpop.f32.mrb[13].mxu1  ;;  %v2091_v31 = vpop.f32.mrb[14].mxu0 }
 0x115   : > { %v2130_v32 = vadd.f32 %v2129_v30, %v2128_v27  ;;  %v2131_v33 = vpop.f32.mrb[14].mxu1  ;;  %v2092_v34 = vpop.f32.mrb[15].mxu0 }
 0x116   : > { %v2093_v35 = vadd.f32 %v2092_v34, %v2091_v31  ;;  %v2132_v36 = vpop.f32.mrb[15].mxu1 }
 0x117   : > { %v2133_v37 = vadd.f32 %v2132_v36, %v2131_v33  ;;  %v884_v38 = vadd.f32 %v2130_v32, %v2090_v29 }
 0x119   : > { %v887_v39 = vadd.f32 %v2133_v37, %v2093_v35 }
 0x11a   : > { %v2240_v40 = vpop.f32.mrb[16].mxu0 }
 0x11b   : > { %v933_v41 = vadd.f32 %v2240_v40, %v868_v10  ;;  %v924_v42 = vpop.f32.mrb[17].mxu0 }
 0x11c   : > { %v925_v43 = vadd.f32 %v924_v42, %v860_v60  ;;  %v2241_v44 = vpop.f32.mrb[18].mxu0  ;;  %v2158_v49 = vpop.f32.mrb[16].mxu1 }
 0x11d   : > { %v936_v45 = vadd.f32 %v2241_v44, %v871_v11  ;;  %v927_v46 = vpop.f32.mrb[19].mxu0  ;;  %v2159_v51 = vpop.f32.mrb[17].mxu1 }
 0x11e   : > { %v928_v47 = vadd.f32 %v927_v46, %v863_v61  ;;  %v2748_v52 = vadd.f32 %v2159_v51, %v2158_v49  ;;  %v2161_v53 = vpop.f32.mrb[18].mxu1  ;;  %v2768_v51 = vld [vmem:[%s2811_s4] ss:$0 sm:$0xff] }
 0x11f   : > { %v956_v48 = vpack.c.bf16 %v936_v45, %v933_v41  ;;  %v2162_v58 = vpop.f32.mrb[19].mxu1 }
 0x120   : > { %v955_v50 = vpack.c.bf16 %v928_v47, %v925_v43  ;;  %v2751_v5 = vadd.f32 %v2162_v58, %v2161_v53 }
 0x121   : > { %2048 = vst [vmem:[%s2745_s15 + $0x8] sm:$0xff] %v956_v48   ;;  %v997_v54 = vunpack.c.l.bf16 %v956_v48  ;;  %v998_v59 = vunpack.c.h.bf16 %v956_v48 }
 0x122   : > { %2012 = vst [vmem:[%s2745_s15] sm:$0xff] %v955_v50   ;;  %v995_v55 = vunpack.c.l.bf16 %v955_v50  ;;  %v996_v56 = vunpack.c.h.bf16 %v955_v50  ;;  %v2244_v57 = vpop.f32.mrb[20].mxu0 }
 0x123   : > { %v949_v60 = vadd.f32 %v2244_v57, %v884_v38  ;;  %v940_v62 = vpop.f32.mrb[21].mxu0  ;;  %v1018_v6 = vmul.f32 %v997_v54, %v997_v54  ;;  %v1019_v12 = vmul.f32 %v998_v59, %v998_v59 }
 0x124   : > { %v1003_v63 = vadd.f32 %v996_v56, %v995_v55  ;;  %v1016_v0 = vmul.f32 %v995_v55, %v995_v55  ;;  %v1017_v61 = vmul.f32 %v996_v56, %v996_v56  ;;  %v941_v1 = vadd.f32 %v940_v62, %v876_v24  ;;  %v2245_v2 = vpop.f32.mrb[22].mxu0  ;;  %v2164_v11 = vpop.f32.mrb[20].mxu1 }
 0x125   : > { %v952_v3 = vadd.f32 %v2245_v2, %v887_v39  ;;  %v943_v4 = vpop.f32.mrb[23].mxu0  ;;  %v2165_v16 = vpop.f32.mrb[21].mxu1 }
 0x126   : > { %v1004_v7 = vadd.f32 %v1003_v63, %v997_v54  ;;  %v1024_v8 = vadd.f32 %v1017_v61, %v1016_v0  ;;  %v944_v9 = vadd.f32 %v943_v4, %v879_v25  ;;  %v2754_v17 = vadd.f32 %v2165_v16, %v2164_v11  ;;  %v2167_v18 = vpop.f32.mrb[22].mxu1 }
 0x127   : > { %v958_v10 = vpack.c.bf16 %v952_v3, %v949_v60  ;;  %v2168_v22 = vpop.f32.mrb[23].mxu1  ;;  %v1506_v0 = vadd.f32 %v2748_v52, %v2768_v51  ;;  %v1509_v4 = vadd.f32 %v2751_v5, %v2768_v51 }
 0x128   : > { %v1025_v13 = vadd.f32 %v1024_v8, %v1018_v6  ;;  %v957_v14 = vpack.c.bf16 %v944_v9, %v941_v1  ;;  %v1005_v15 = vadd.f32 %v1004_v7, %v998_v59  ;;  %v2757_v23 = vadd.f32 %v2168_v22, %v2167_v18 }
 0x129   : > { %2050 = vst [vmem:[%s2745_s15 + $0x18] sm:$0xff] %v958_v10   ;;  %v1001_v24 = vunpack.c.l.bf16 %v958_v10  ;;  %v1002_v27 = vunpack.c.h.bf16 %v958_v10 }
 0x12a   : > { %2049 = vst [vmem:[%s2745_s15 + $0x10] sm:$0xff] %v957_v14   ;;  %v999_v19 = vunpack.c.l.bf16 %v957_v14  ;;  %v1000_v20 = vunpack.c.h.bf16 %v957_v14  ;;  %v1026_v21 = vadd.f32 %v1025_v13, %v1019_v12 }
 0x12b   : > { %v1022_v32 = vmul.f32 %v1001_v24, %v1001_v24  ;;  %v1023_v38 = vmul.f32 %v1002_v27, %v1002_v27 }
 0x12c   : > { %v1006_v25 = vadd.f32 %v1005_v15, %v999_v19  ;;  %v1020_v26 = vmul.f32 %v999_v19, %v999_v19  ;;  %v1021_v29 = vmul.f32 %v1000_v20, %v1000_v20  ;;  %v2170_v31 = vpop.f32.mrb[24].mxu1  ;;  %v1514_v19 = vadd.f32 %v2754_v17, %v2768_v51 }
 0x12d   : > { %v2171_v35 = vpop.f32.mrb[25].mxu1 }
 0x12e   : > { %v1007_v28 = vadd.f32 %v1006_v25, %v1000_v20  ;;  %v1027_v30 = vadd.f32 %v1026_v21, %v1020_v26  ;;  %v2759_v36 = vadd.f32 %v2171_v35, %v2170_v31  ;;  %v2173_v37 = vpop.f32.mrb[26].mxu1  ;;  %v1517_v25 = vadd.f32 %v2757_v23, %v2768_v51 }
 0x12f   : > { %v2174_v41 = vpop.f32.mrb[27].mxu1 }
 0x130   : > { %v1008_v33 = vadd.f32 %v1007_v28, %v1001_v24  ;;  %v1028_v34 = vadd.f32 %v1027_v30, %v1021_v29  ;;  %v2761_v42 = vadd.f32 %v2174_v41, %v2173_v37  ;;  %v1522_v37 = vadd.f32 %v2759_v36, %v2768_v51 }
 0x132   : > { %v1009_v39 = vadd.f32 %v1008_v33, %v1002_v27  ;;  %v1029_v40 = vadd.f32 %v1028_v34, %v1022_v32  ;;  %v1525_v41 = vadd.f32 %v2761_v42, %v2768_v51 }
 0x134   : > { %v1010_v43 = vrot.slane %v1009_v39, 4  ;;  %v1030_v44 = vadd.f32 %v1029_v40, %v1023_v38  ;;  %v2176_v47 = vpop.f32.mrb[28].mxu1 }
 0x135   : > { %v2177_v50 = vpop.f32.mrb[29].mxu1 }
 0x136   : > { %v1011_v45 = vadd.f32 %v1010_v43, %v1009_v39  ;;  %v1031_v46 = vrot.slane %v1030_v44, 4  ;;  %v2770_v53 = vadd.f32 %v2177_v50, %v2176_v47  ;;  %v2179_v54 = vpop.f32.mrb[30].mxu1 }
 0x137   : > { %v2180_v58 = vpop.f32.mrb[31].mxu1 }
 0x138   : > { %v1012_v48 = vrot.slane %v1011_v45, 2  ;;  %v1032_v49 = vadd.f32 %v1031_v46, %v1030_v44  ;;  %v2772_v60 = vadd.f32 %v2180_v58, %v2179_v54  ;;  %v1530_v36 = vadd.f32 %v2770_v53, %v2768_v51 }
 0x13a   : > { %v1013_v55 = vadd.f32 %v1012_v48, %v1011_v45  ;;  %v1033_v56 = vrot.slane %v1032_v49, 2  ;;  %v2198_v57 = vpop.f32.mrb[24].mxu0 }
 0x13b   : > { %v2199_v59 = vpop.f32.mrb[25].mxu0 }
 0x13c   : > { %v1014_v62 = vrot.slane %v1013_v55, 1  ;;  %v1034_v63 = vadd.f32 %v1033_v56, %v1032_v49  ;;  %v2200_v61 = vadd.f32 %v2199_v59, %v2198_v57  ;;  %v2201_v1 = vpop.f32.mrb[26].mxu0  ;;  %v2256_v8 = vpop.f32.mrb[32].mxu1  ;;  %v1533_v57 = vadd.f32 %v2772_v60, %v2768_v51 }
 0x13d   : > { %v2202_v2 = vpop.f32.mrb[27].mxu0  ;;  %v1635_v52 = vpop.f32.mrb[33].mxu1 }
 0x13e   : > { %v1035_v3 = vrot.slane %v1034_v63, 1  ;;  %v2203_v6 = vadd.f32 %v2202_v2, %v2201_v1  ;;  %v1571_v7 = vadd.f32 %v2200_v61, %v1506_v0  ;;  %v1015_v9 = vadd.f32 %v1014_v62, %v1013_v55  ;;  %v2257_v13 = vpop.f32.mrb[34].mxu1 }
 0x13f   : > { %v1638_v15 = vpop.f32.mrb[35].mxu1 }
 0x140   : > { %v1036_v10 = vadd.f32 %v1035_v3, %v1034_v63  ;;  %v1574_v11 = vadd.f32 %v2203_v6, %v1509_v4  ;;  %v1636_v12 = vadd.f32 %v1635_v52, %v1571_v7 }
 0x142   : > { %v1038_v14 = vsel %vm1037_vm1, %v1015_v9, %v1036_v10  ;;  %v2204_v16 = vpop.f32.mrb[28].mxu0  ;;  %v1639_v5 = vadd.f32 %v1638_v15, %v1574_v11 }
 0x143   : > { %1039 = vst [vmem:[%s333_s8] sm:$0x3] %v1038_v14  ;;  %v2205_v18 = vpop.f32.mrb[29].mxu0 }
 0x144   : > { %v2206_v20 = vadd.f32 %v2205_v18, %v2204_v16  ;;  %v2207_v21 = vpop.f32.mrb[30].mxu0  ;;  %v2031_v22 = vpack.c.bf16 %v1639_v5, %v1636_v12  ;;  %v2260_v28 = vpop.f32.mrb[36].mxu1 }
 0x145   : > { %v2208_v24 = vpop.f32.mrb[31].mxu0  ;;  %v1651_v30 = vpop.f32.mrb[37].mxu1 }
 0x146   : > { %v1579_v26 = vadd.f32 %v2206_v20, %v1514_v19  ;;  %v2209_v27 = vadd.f32 %v2208_v24, %v2207_v21  ;;  %2032 = vst [vmem:[%s2788_s10] sm:$0xff] %v2031_v22   ;;  %v2261_v31 = vpop.f32.mrb[38].mxu1 }
 0x147   : > { %v1654_v34 = vpop.f32.mrb[39].mxu1 }
 0x148   : > { %v1644_v17 = vadd.f32 %v2256_v8, %v1579_v26  ;;  %v1582_v29 = vadd.f32 %v2209_v27, %v1517_v25 }
 0x14a   : > { %v1647_v32 = vadd.f32 %v2257_v13, %v1582_v29  ;;  %v2210_v33 = vpop.f32.mrb[32].mxu0 }
 0x14b   : > { %v2211_v35 = vpop.f32.mrb[33].mxu0 }
 0x14c   : > { %v2036_v38 = vpack.c.bf16 %v1647_v32, %v1644_v17  ;;  %v2212_v39 = vadd.f32 %v2211_v35, %v2210_v33  ;;  %v2213_v40 = vpop.f32.mrb[34].mxu0 }
 0x14d   : > { %v2214_v23 = vpop.f32.mrb[35].mxu0 }
 0x14e   : > { %2051 = vst [vmem:[%s2788_s10 + $0x8] sm:$0xff] %v2036_v38   ;;  %v2215_v43 = vadd.f32 %v2214_v23, %v2213_v40  ;;  %v1587_v44 = vadd.f32 %v2212_v39, %v1522_v37 }
 0x150   : > { %v1652_v45 = vadd.f32 %v1651_v30, %v1587_v44  ;;  %v1590_v46 = vadd.f32 %v2215_v43, %v1525_v41 }
 0x152   : > { %v1655_v47 = vadd.f32 %v1654_v34, %v1590_v46  ;;  %v2216_v48 = vpop.f32.mrb[36].mxu0 }
 0x153   : > { %v2217_v49 = vpop.f32.mrb[37].mxu0 }
 0x154   : > { %v2041_v50 = vpack.c.bf16 %v1655_v47, %v1652_v45  ;;  %v2218_v54 = vadd.f32 %v2217_v49, %v2216_v48  ;;  %v2219_v55 = vpop.f32.mrb[38].mxu0 }
 0x155   : > { %v2220_v56 = vpop.f32.mrb[39].mxu0 }
 0x156   : > { %2052 = vst [vmem:[%s2788_s10 + $0x10] sm:$0xff] %v2041_v50   ;;  %v1595_v42 = vadd.f32 %v2218_v54, %v1530_v36  ;;  %v2221_v58 = vadd.f32 %v2220_v56, %v2219_v55 }
 0x158   : > { %v1660_v59 = vadd.f32 %v2260_v28, %v1595_v42  ;;  %v1598_v62 = vadd.f32 %v2221_v58, %v1533_v57 }
 0x15a   : > { %v1663_v63 = vadd.f32 %v2261_v31, %v1598_v62 }
 0x15c   : > { %v2046_v0 = vpack.c.bf16 %v1663_v63, %v1660_v59 }
 0x15e   : > { %2053 = vst [vmem:[%s2788_s10 + $0x18] sm:$0xff] %v2046_v0  }
 0x15f PF: > { %s18_s24 = sadd.s32 1, %s2405_s24  }
 0x160   : > { %p15_p5 = scmp.ge.s32.totalorder %s18_s24, 4  }
 0x162   :  { %17 = sbr.rel (!%p15_p5) target bundleno = 1 (0x1), region = 97 }

// kernel: forward.15
= control target key start
LH: loop header
LB: loop body
LE: loop exit
PB: predicated region body
PF: predicated region fallthrough
CT: control target
= control target key end

     0   :  { %s278_s6 = smov 0   ;;  %s300_s0 = inlined_call_operand.vmem [shape: bf16[128,128], index: 0, kind: input, shape index: {}]   ;;  %s301_s1 = inlined_call_operand.vmem [shape: f32[2,2,128], index: 1, kind: output, shape index: {}]  }
   0x1 LB: > { %s284_s7 = sadd.s32 4294967295, %s266_s6   ;;  %p227_p0 = scmp.ge.s32.totalorder %s266_s6, 1  ;;  %s266_s6 = sphi %s278_s6, %s11_s6  }
   0x2   : > { %p88_p1 = scmp.lt.s32.totalorder %s266_s6, 3 }
   0x4   : > { %p89_p2 = pnand %p227_p0, %p88_p1 }
   0x5   : > { %s228_s8 = sshll.u32 (!%p89_p2), %s284_s7, 3  ;;  %p113_p4 = scmp.lt.s32.totalorder (!%p89_p2), %s284_s7, 1  ;;  %vm167_vm0 = vcmask (!%p89_p2), 1040384  }
   0x6   : > { %92 = sbr.rel (%p89_p2) target bundleno = 49 (0x31), region = 24  ;;  %p108_p3 = scmp.lt.s32.totalorder (!%p89_p2), %s228_s8, 15 }
   0xd   : > { %s303_s8 = smov (!%p108_p3, %s228_s8), 15  ;;  %s305_s7 = smov (!%p113_p4, %s284_s7), 1 }
   0xe   : > { %s229_s9 = sshll.u32 %s303_s8, 2  ;;  %s230_s13 = sshll.u32 %s305_s7, 1 }
   0xf   : > { %s111_s12 = scalar_lea.vmem %s300_s0, %s229_s9  ;;  %s116_s16 = scalar_lea.vmem %s301_s1, %s230_s13 }
  0x10   : > { %v234_v0 = vld [vmem:[%s111_s12] sm:$0xff]   ;;  %v249_v1 = vld [vmem:[%s111_s12 + $0x8] sm:$0xff]   ;;  %v250_v2 = vld [vmem:[%s111_s12 + $0x10] sm:$0xff]  }
  0x11   : > { %v235_v3 = vunpack.c.l.bf16 %v234_v0  ;;  %v236_v4 = vunpack.c.h.bf16 %v234_v0  ;;  %v239_v5 = vunpack.c.l.bf16 %v249_v1  ;;  %v240_v6 = vunpack.c.h.bf16 %v249_v1  ;;  %v251_v12 = vld [vmem:[%s111_s12 + $0x18] sm:$0xff]  }
  0x12   : > { %v243_v7 = vunpack.c.l.bf16 %v250_v2  ;;  %v244_v13 = vunpack.c.h.bf16 %v250_v2  ;;  %v247_v17 = vunpack.c.l.bf16 %v251_v12  ;;  %v248_v21 = vunpack.c.h.bf16 %v251_v12 }
  0x13   : > { %v133_v8 = vadd.f32 %v236_v4, %v235_v3  ;;  %v146_v9 = vmul.f32 %v235_v3, %v235_v3  ;;  %v147_v10 = vmul.f32 %v236_v4, %v236_v4  ;;  %v148_v11 = vmul.f32 %v239_v5, %v239_v5 }
  0x14   : > { %v149_v15 = vmul.f32 %v240_v6, %v240_v6  ;;  %v150_v19 = vmul.f32 %v243_v7, %v243_v7  ;;  %v151_v23 = vmul.f32 %v244_v13, %v244_v13  ;;  %v152_v26 = vmul.f32 %v247_v17, %v247_v17 }
  0x15   : > { %v134_v14 = vadd.f32 %v239_v5, %v133_v8  ;;  %v154_v16 = vadd.f32 %v147_v10, %v146_v9  ;;  %v153_v29 = vmul.f32 %v248_v21, %v248_v21 }
  0x17   : > { %v135_v18 = vadd.f32 %v240_v6, %v134_v14  ;;  %v155_v20 = vadd.f32 %v154_v16, %v148_v11 }
  0x19   : > { %v136_v22 = vadd.f32 %v243_v7, %v135_v18  ;;  %v156_v24 = vadd.f32 %v155_v20, %v149_v15 }
  0x1b   : > { %v137_v25 = vadd.f32 %v244_v13, %v136_v22  ;;  %v157_v27 = vadd.f32 %v156_v24, %v150_v19 }
  0x1d   : > { %v138_v28 = vadd.f32 %v247_v17, %v137_v25  ;;  %v158_v30 = vadd.f32 %v157_v27, %v151_v23 }
  0x1f   : > { %v139_v31 = vadd.f32 %v248_v21, %v138_v28  ;;  %v159_v32 = vadd.f32 %v158_v30, %v152_v26 }
  0x21   : > { %v140_v33 = vrot.slane %v139_v31, 4  ;;  %v160_v34 = vadd.f32 %v159_v32, %v153_v29 }
  0x23   : > { %v141_v35 = vadd.f32 %v140_v33, %v139_v31  ;;  %v161_v36 = vrot.slane %v160_v34, 4 }
  0x25   : > { %v142_v37 = vrot.slane %v141_v35, 2  ;;  %v162_v38 = vadd.f32 %v161_v36, %v160_v34 }
  0x27   : > { %v143_v39 = vadd.f32 %v142_v37, %v141_v35  ;;  %v163_v40 = vrot.slane %v162_v38, 2 }
  0x29   : > { %v144_v41 = vrot.slane %v143_v39, 1  ;;  %v164_v42 = vadd.f32 %v163_v40, %v162_v38 }
  0x2b   : > { %v145_v43 = vadd.f32 %v144_v41, %v143_v39  ;;  %v165_v44 = vrot.slane %v164_v42, 1 }
  0x2d   : > { %v166_v45 = vadd.f32 %v165_v44, %v164_v42 }
  0x2f   : > { %v168_v46 = vsel %vm167_vm0, %v145_v43, %v166_v45 }
  0x30   : > { %169 = vst [vmem:[%s116_s16] sm:$0x3] %v168_v46 }
  0x31 PF: > { %s11_s6 = sadd.s32 1, %s266_s6  }
  0x32   : > { %p8_p5 = scmp.ge.s32.totalorder %s11_s6, 4  }
  0x34   :  { %10 = sbr.rel (!%p8_p5) target bundleno = 1 (0x1), region = 54 }

// kernel: forward.14
= control target key start
LH: loop header
LB: loop body
LE: loop exit
PB: predicated region body
PF: predicated region fallthrough
CT: control target
= control target key end

     0   :  { %s2177_s18 = smov 0   ;;  %s2499_s0 = inlined_call_operand.vmem [shape: bf16[128,1152], index: 0, kind: input, shape index: {}]   ;;  %s2500_s1 = inlined_call_operand.vmem [shape: bf16[1152,128], index: 1, kind: input, shape index: {}]   ;;  %s2501_s2 = inlined_call_operand.vmem [shape: f32[1,128], index: 2, kind: input, shape index: {}]   ;;  %s2502_s3 = inlined_call_operand.vmem [shape: bf16[128,128], index: 3, kind: input, shape index: {}]   ;;  %s2503_s4 = inlined_call_operand.vmem [shape: f32[128,1], index: 4, kind: input, shape index: {}]   ;;  %s2504_s5 = inlined_call_operand.vmem [shape: bf16[128,128], index: 5, kind: output, shape index: {}]  }
   0x1 LB: > { %s1608_s19 = sadd.s32 4294967295, %s2144_s18   ;;  %p1612_p0 = scmp.ge.s32.totalorder %s2144_s18, 1  ;;  %s2144_s18 = sphi %s2177_s18, %s15_s18  }
   0x2   : > { %p211_p1 = scmp.lt.s32.totalorder %s2144_s18, 3 }
   0x4   : > { %p212_p2 = pnand %p1612_p0, %p211_p1 }
   0x5   : > { %v2014_v0 = vld [vmem:[%s2500_s1 + $0x40] sm:$0xff] (!%p212_p2)   ;;  %v2146_v4 = vmov (!%p212_p2), 0   ;;  %v2018_v5 = vld [vmem:[%s2500_s1 + $0x48] sm:$0xff] (!%p212_p2)   ;;  %v2022_v9 = vld [vmem:[%s2500_s1 + $0x50] sm:$0xff] (!%p212_p2)   ;;  %s1613_s27 = sshll.u32 (!%p212_p2), %s1608_s19, 3 }
   0x6   : > { %215 = sbr.rel (%p212_p2) target bundleno = 329 (0x149), region = 40  ;;  %v2015_v1 = vld [vmem:[%s2500_s1 + $0xc0] sm:$0xff] (!%p212_p2)   ;;  %1790 = vmatprep.subr.bf16.mxu0 (!%p212_p2), %v2014_v0  ;;  %2013 = vset.pattern.permute.xlu1 (!%p212_p2), %v2146_v4  ;;  %v2019_v6 = vld [vmem:[%s2500_s1 + $0xc8] sm:$0xff] (!%p212_p2)   ;;  %v2023_v10 = vld [vmem:[%s2500_s1 + $0xd0] sm:$0xff] (!%p212_p2)   ;;  %p251_p3 = scmp.lt.s32.totalorder (!%p212_p2), %s1613_s27, 15 }
   0x7   : > { %v2016_v2 = vld [vmem:[%s2500_s1] sm:$0xff] (!%p212_p2)   ;;  %1830 = vmatprep.subr.bf16.mxu1 (!%p212_p2), %v2015_v1  ;;  %2012 = vset.pattern.permute.xlu0 (!%p212_p2), %v2146_v4  ;;  %v2020_v7 = vld [vmem:[%s2500_s1 + $0x8] sm:$0xff] (!%p212_p2)   ;;  %v2024_v11 = vld [vmem:[%s2500_s1 + $0x10] sm:$0xff] (!%p212_p2)  }
   0x8   : > { %v2017_v3 = vld [vmem:[%s2500_s1 + $0x80] sm:$0xff] (!%p212_p2)   ;;  %1791 = vmatpush3.bf16.msra.mxu0 (!%p212_p2), %v2016_v2  ;;  %v2021_v8 = vld [vmem:[%s2500_s1 + $0x88] sm:$0xff] (!%p212_p2)   ;;  %v2025_v12 = vld [vmem:[%s2500_s1 + $0x90] sm:$0xff] (!%p212_p2)  }
   0x9   : > { %1831 = vmatpush3.bf16.msra.mxu1 (!%p212_p2), %v2017_v3  ;;  %1792 = vmatprep.subr.bf16.mxu0 (!%p212_p2), %v2018_v5  ;;  %v2026_v13 = vld [vmem:[%s2500_s1 + $0x58] sm:$0xff] (!%p212_p2)   ;;  %v2030_v17 = vld [vmem:[%s2500_s1 + $0x60] sm:$0xff] (!%p212_p2)   ;;  %v2034_v21 = vld [vmem:[%s2500_s1 + $0x68] sm:$0xff] (!%p212_p2)  }
   0xa   : > { %1832 = vmatprep.subr.bf16.mxu1 (!%p212_p2), %v2019_v6  ;;  %v2027_v14 = vld [vmem:[%s2500_s1 + $0xd8] sm:$0xff] (!%p212_p2)   ;;  %v2031_v18 = vld [vmem:[%s2500_s1 + $0xe0] sm:$0xff] (!%p212_p2)   ;;  %v2035_v22 = vld [vmem:[%s2500_s1 + $0xe8] sm:$0xff] (!%p212_p2)  }
   0xb   : > { %v2028_v15 = vld [vmem:[%s2500_s1 + $0x18] sm:$0xff] (!%p212_p2)   ;;  %v2032_v19 = vld [vmem:[%s2500_s1 + $0x20] sm:$0xff] (!%p212_p2)   ;;  %v2036_v23 = vld [vmem:[%s2500_s1 + $0x28] sm:$0xff] (!%p212_p2)  }
   0xc   : > { %1793 = vmatpush3.bf16.msra.mxu0 (!%p212_p2), %v2020_v7  ;;  %v2029_v16 = vld [vmem:[%s2500_s1 + $0x98] sm:$0xff] (!%p212_p2)   ;;  %v2033_v20 = vld [vmem:[%s2500_s1 + $0xa0] sm:$0xff] (!%p212_p2)   ;;  %v2037_v24 = vld [vmem:[%s2500_s1 + $0xa8] sm:$0xff] (!%p212_p2)  }
   0xd   : > { %1833 = vmatpush3.bf16.msra.mxu1 %v2021_v8  ;;  %1794 = vmatprep.subr.bf16.mxu0 %v2022_v9  ;;  %s2506_s27 = smov (!%p251_p3, %s1613_s27), 15  ;;  %v2038_v25 = vld [vmem:[%s2500_s1 + $0x70] sm:$0xff]   ;;  %v2042_v29 = vld [vmem:[%s2500_s1 + $0x78] sm:$0xff]   ;;  %v2052_v37 = vld [vmem:[%s2500_s1 + $0x140] sm:$0xff]  }
   0xe   : > { %1834 = vmatprep.subr.bf16.mxu1 %v2023_v10  ;;  %v2039_v26 = vld [vmem:[%s2500_s1 + $0xf0] sm:$0xff]   ;;  %s2002_s26 = smul.u32 36, %s2506_s27  ;;  %v2043_v30 = vld [vmem:[%s2500_s1 + $0xf8] sm:$0xff]   ;;  %v2053_v38 = vld [vmem:[%s2500_s1 + $0x1c0] sm:$0xff]   ;;  %s1618_s28 = sshll.u32 %s2506_s27, 3 }
   0xf   : > { %v2040_v27 = vld [vmem:[%s2500_s1 + $0x30] sm:$0xff]   ;;  %v2044_v31 = vld [vmem:[%s2500_s1 + $0x38] sm:$0xff]   ;;  %v2054_v39 = vld [vmem:[%s2500_s1 + $0x100] sm:$0xff]   ;;  %s2439_s8 = scalar_lea.vmem %s2503_s4, %s1618_s28 }
  0x10   : > { %1795 = vmatpush3.bf16.msra.mxu0 %v2024_v11  ;;  %v2041_v28 = vld [vmem:[%s2500_s1 + $0xb0] sm:$0xff]   ;;  %s2283_s12 = scalar_lea.vmem %s2499_s0, %s2002_s26  ;;  %v2045_v32 = vld [vmem:[%s2500_s1 + $0xb8] sm:$0xff]   ;;  %v2055_v40 = vld [vmem:[%s2500_s1 + $0x180] sm:$0xff]  }
  0x11   : > { %1835 = vmatpush3.bf16.msra.mxu1 %v2025_v12  ;;  %1796 = vmatprep.subr.bf16.mxu0 %v2026_v13  ;;  %v2046_v33 = vld [vmem:[%s2283_s12] ss:$36 sps:$4 sm:$0xff]   ;;  %v2049_v35 = vld [vmem:[%s2283_s12 + $0x8] ss:$36 sps:$4 sm:$0xff]   ;;  %v2062_v46 = vld [vmem:[%s2283_s12 + $0x54] ss:$36 sps:$4 sm:$0xff]  }
  0x12   : > { %1836 = vmatprep.subr.bf16.mxu1 %v2027_v14  ;;  %v2048_v34 = vld [vmem:[%s2283_s12 + $0x4] ss:$36 sps:$4 sm:$0xff]   ;;  %v2051_v36 = vld [vmem:[%s2283_s12 + $0xc] ss:$36 sps:$4 sm:$0xff]   ;;  %v2070_v53 = vld [vmem:[%s2500_s1 + $0x158] sm:$0xff]  }
  0x13   : > { %1115 = vmatprep.mubr.bf16.mxu0 %v2048_v34  ;;  %1180 = vmatprep.mubr.bf16.mxu1 %v2051_v36  ;;  %v2056_v41 = vld [vmem:[%s2500_s1 + $0x148] sm:$0xff]   ;;  %v2065_v48 = vld [vmem:[%s2283_s12 + $0x50] ss:$36 sps:$4 sm:$0xff]   ;;  %v2071_v54 = vld [vmem:[%s2500_s1 + $0x1d8] sm:$0xff]  }
  0x14   : > { %1797 = vmatpush3.bf16.msra.mxu0 %v2028_v15  ;;  %v2057_v42 = vld [vmem:[%s2500_s1 + $0x1c8] sm:$0xff]   ;;  %v2066_v49 = vld [vmem:[%s2500_s1 + $0x150] sm:$0xff]   ;;  %v2072_v55 = vld [vmem:[%s2500_s1 + $0x118] sm:$0xff]  }
  0x15   : > { %1837 = vmatpush3.bf16.msra.mxu1 %v2029_v16  ;;  %1798 = vmatprep.subr.bf16.mxu0 %v2030_v17  ;;  %v2058_v43 = vld [vmem:[%s2500_s1 + $0x108] sm:$0xff]   ;;  %v2067_v50 = vld [vmem:[%s2500_s1 + $0x1d0] sm:$0xff]   ;;  %v2073_v56 = vld [vmem:[%s2500_s1 + $0x198] sm:$0xff]  }
  0x16   : > { %1838 = vmatprep.subr.bf16.mxu1 %v2031_v18  ;;  %v2059_v44 = vld [vmem:[%s2500_s1 + $0x188] sm:$0xff]   ;;  %v2068_v51 = vld [vmem:[%s2500_s1 + $0x110] sm:$0xff]   ;;  %v2076_v58 = vld [vmem:[%s2283_s12 + $0x9c] ss:$36 sps:$4 sm:$0xff]  }
  0x17   : > { %v2060_v45 = vld [vmem:[%s2283_s12 + $0x4c] ss:$36 sps:$4 sm:$0xff]   ;;  %v2074_v57 = vld [vmem:[%s2283_s12 + $0x94] ss:$36 sps:$4 sm:$0xff]   ;;  %v2080_v61 = vld [vmem:[%s2500_s1 + $0x160] sm:$0xff]  }
  0x18   : > { %1799 = vmatpush3.bf16.msra.mxu0 %v2032_v19  ;;  %v2064_v47 = vld [vmem:[%s2283_s12 + $0x48] ss:$36 sps:$4 sm:$0xff]   ;;  %v2069_v52 = vld [vmem:[%s2500_s1 + $0x190] sm:$0xff]   ;;  %v2079_v60 = vld [vmem:[%s2283_s12 + $0x98] ss:$36 sps:$4 sm:$0xff]  }
  0x19   : > { %1839 = vmatpush3.bf16.msra.mxu1 %v2033_v20  ;;  %1800 = vmatprep.subr.bf16.mxu0 %v2034_v21  ;;  %v2078_v59 = vld [vmem:[%s2283_s12 + $0x90] ss:$36 sps:$4 sm:$0xff]   ;;  %v2081_v62 = vld [vmem:[%s2500_s1 + $0x1e0] sm:$0xff]   ;;  %v2084_v1 = vld [vmem:[%s2500_s1 + $0x168] sm:$0xff]  }
  0x1a   : > { %1840 = vmatprep.subr.bf16.mxu1 %v2035_v22  ;;  %v2082_v63 = vld [vmem:[%s2500_s1 + $0x120] sm:$0xff]   ;;  %v2085_v2 = vld [vmem:[%s2500_s1 + $0x1e8] sm:$0xff]   ;;  %v2092_v7 = vld [vmem:[%s2283_s12 + $0xd8] ss:$36 sps:$4 sm:$0xff]  }
  0x1b   : > { %v2083_v0 = vld [vmem:[%s2500_s1 + $0x1a0] sm:$0xff]   ;;  %v2086_v3 = vld [vmem:[%s2500_s1 + $0x128] sm:$0xff]   ;;  %v2094_v9 = vld [vmem:[%s2500_s1 + $0x170] sm:$0xff]  }
  0x1c   : > { %1801 = vmatpush3.bf16.msra.mxu0 %v2036_v23  ;;  %v2087_v4 = vld [vmem:[%s2500_s1 + $0x1a8] sm:$0xff]   ;;  %v2088_v5 = vld [vmem:[%s2283_s12 + $0xdc] ss:$36 sps:$4 sm:$0xff]   ;;  %v2095_v10 = vld [vmem:[%s2500_s1 + $0x1f0] sm:$0xff]  }
  0x1d   : > { %1841 = vmatpush3.bf16.msra.mxu1 %v2037_v24  ;;  %1802 = vmatprep.subr.bf16.mxu0 %v2038_v25  ;;  %v2090_v6 = vld [vmem:[%s2283_s12 + $0xe4] ss:$36 sps:$4 sm:$0xff]   ;;  %v2096_v11 = vld [vmem:[%s2500_s1 + $0x130] sm:$0xff]   ;;  %v2098_v13 = vld [vmem:[%s2500_s1 + $0x178] sm:$0xff]  }
  0x1e   : > { %1842 = vmatprep.subr.bf16.mxu1 %v2039_v26  ;;  %v2093_v8 = vld [vmem:[%s2283_s12 + $0xe0] ss:$36 sps:$4 sm:$0xff]   ;;  %v2097_v12 = vld [vmem:[%s2500_s1 + $0x1b0] sm:$0xff]   ;;  %v2099_v14 = vld [vmem:[%s2500_s1 + $0x1f8] sm:$0xff]  }
  0x1f   : > { %v2100_v15 = vld [vmem:[%s2500_s1 + $0x138] sm:$0xff]   ;;  %v2102_v17 = vld [vmem:[%s2283_s12 + $0x10] ss:$36 sps:$4 sm:$0xff]   ;;  %v2108_v21 = vld [vmem:[%s2500_s1 + $0x200] sm:$0xff]  }
  0x20   : > { %1803 = vmatpush3.bf16.msra.mxu0 %v2040_v27  ;;  %v2101_v16 = vld [vmem:[%s2500_s1 + $0x1b8] sm:$0xff]   ;;  %v2109_v22 = vld [vmem:[%s2500_s1 + $0x208] sm:$0xff]   ;;  %v2115_v26 = vld [vmem:[%s2283_s12 + $0x60] ss:$36 sps:$4 sm:$0xff]  }
  0x21   : > { %1843 = vmatpush3.bf16.msra.mxu1 %v2041_v28  ;;  %1804 = vmatprep.subr.bf16.mxu0 %v2042_v29  ;;  %v2104_v18 = vld [vmem:[%s2283_s12 + $0x14] ss:$36 sps:$4 sm:$0xff]   ;;  %v2107_v20 = vld [vmem:[%s2283_s12 + $0x1c] ss:$36 sps:$4 sm:$0xff]   ;;  %v2112_v24 = vld [vmem:[%s2283_s12 + $0x64] ss:$36 sps:$4 sm:$0xff]  }
  0x22   : > { %1844 = vmatprep.subr.bf16.mxu1 %v2043_v30  ;;  %v2105_v19 = vld [vmem:[%s2283_s12 + $0x18] ss:$36 sps:$4 sm:$0xff]   ;;  %v2116_v27 = vld [vmem:[%s2500_s1 + $0x210] sm:$0xff]   ;;  %v2118_v28 = vld [vmem:[%s2283_s12 + $0xa4] ss:$36 sps:$4 sm:$0xff]  }
  0x23   : > { %v2110_v23 = vld [vmem:[%s2283_s12 + $0x5c] ss:$36 sps:$4 sm:$0xff]   ;;  %v2120_v29 = vld [vmem:[%s2283_s12 + $0xac] ss:$36 sps:$4 sm:$0xff]  }
  0x24   : > { %1805 = vmatpush3.bf16.msra.mxu0 %v2044_v31  ;;  %v2114_v25 = vld [vmem:[%s2283_s12 + $0x58] ss:$36 sps:$4 sm:$0xff]   ;;  %v2122_v31 = vld [vmem:[%s2283_s12 + $0xa0] ss:$36 sps:$4 sm:$0xff]   ;;  %v2126_v34 = vld [vmem:[%s2283_s12 + $0xec] ss:$36 sps:$4 sm:$0xff]  }
  0x25   : > { %1845 = vmatpush3.bf16.msra.mxu1 %v2045_v32  ;;  %1870 = vmatprep.subr.bf16.mxu0 %v2052_v37  ;;  %v2117_v30 = vld [vmem:[%s2500_s1 + $0x218] sm:$0xff]   ;;  %v2123_v32 = vld [vmem:[%s2283_s12 + $0xa8] ss:$36 sps:$4 sm:$0xff]   ;;  %v1434_v37 = vld [vmem:[%s2439_s8 + $0x10] sm:$0xff] }
  0x26   : > { %1910 = vmatprep.subr.bf16.mxu1 %v2053_v38  ;;  %v2125_v36 = vld [vmem:[%s2500_s1 + $0x228] sm:$0xff]   ;;  %v1432_v38 = vld [vmem:[%s2439_s8] sm:$0xff]  ;;  %1452 = vperm.xlu1 %2013, %v1434_v37  }
  0x27   : > { %1116 = vmatmul.mubr.bf16.vlgmr.msra.gmra.mrb[0].mxu0 %v2046_v33  ;;  %v2124_v33 = vld [vmem:[%s2500_s1 + $0x220] sm:$0xff]   ;;  %1442 = vperm.xlu0 %2012, %v1432_v38  }
  0x28   : > { %1181 = vmatmul.mubr.bf16.vlgmr.msra.gmra.mrb[0].mxu1 %v2049_v35  ;;  %1871 = vmatpush3.bf16.msra.mxu0 %v2054_v39  ;;  %v2128_v35 = vld [vmem:[%s2283_s12 + $0xf4] ss:$36 sps:$4 sm:$0xff]   ;;  %v2130_v39 = vld [vmem:[%s2283_s12 + $0xe8] ss:$36 sps:$4 sm:$0xff]  }
  0x29   : > { %1911 = vmatpush3.bf16.msra.mxu1 %v2055_v40  ;;  %1872 = vmatprep.subr.bf16.mxu0 %v2056_v41  ;;  %v2132_v40 = vld [vmem:[%s2500_s1 + $0x230] sm:$0xff]  }
  0x2a   : > { %1912 = vmatprep.subr.bf16.mxu1 %v2057_v42  ;;  %1123 = vmatprep.mubr.bf16.mxu0 %v2060_v45  ;;  %v2131_v41 = vld [vmem:[%s2283_s12 + $0xf0] ss:$36 sps:$4 sm:$0xff]   ;;  %v2134_v42 = vld [vmem:[%s2283_s12 + $0x20] ss:$36 sps:$4 sm:$0xff]   ;;  %v1435_v45 = vld [vmem:[%s2439_s8 + $0x18] sm:$0xff] }
  0x2b   : > { %1188 = vmatprep.mubr.bf16.mxu1 %v2062_v46  ;;  %v1433_v46 = vld [vmem:[%s2439_s8 + $0x8] sm:$0xff]  ;;  %1457 = vperm.xlu1 %2013, %v1435_v45  }
  0x2c   : > { %1873 = vmatpush3.bf16.msra.mxu0 %v2058_v43  ;;  %v2135_v43 = vld [vmem:[%s2283_s12 + $0xb0] ss:$36 sps:$4 sm:$0xff]   ;;  %1447 = vperm.xlu0 %2012, %v1433_v46  }
  0x2d   : > { %1913 = vmatpush3.bf16.msra.mxu1 %v2059_v44  ;;  %1874 = vmatprep.subr.bf16.mxu0 %v2066_v49  ;;  %v2133_v44 = vld [vmem:[%s2500_s1 + $0x238] sm:$0xff]  }
  0x2e   : > { %1914 = vmatprep.subr.bf16.mxu1 %v2067_v50  ;;  %v2137_v49 = vld [vmem:[%s2283_s12 + $0xf8] ss:$36 sps:$4 sm:$0xff]   ;;  %v1436_v50 = vld [vmem:[%s2439_s8 + $0x20] sm:$0xff] }
  0x2f   : > { %1124 = vmatmul.mubr.bf16.gmra.mrb[4].mxu0 %v2064_v47  ;;  %v2136_v47 = vld [vmem:[%s2283_s12 + $0x68] ss:$36 sps:$4 sm:$0xff]   ;;  %s1616_s12 = sshll.u32 %s2506_s27, 2 }
  0x30   : > { %1189 = vmatmul.mubr.bf16.gmra.mrb[4].mxu1 %v2065_v48  ;;  %1875 = vmatpush3.bf16.msra.mxu0 %v2068_v51  ;;  %v1437_v48 = vld [vmem:[%s2439_s8 + $0x28] sm:$0xff]  ;;  %v1439_v51 = vld [vmem:[%s2439_s8 + $0x38] sm:$0xff]  ;;  %s261_s17 = scalar_lea.vmem %s2502_s3, %s1616_s12  ;;  %s273_s22 = scalar_lea.vmem %s2504_s5, %s1616_s12 }
  0x31   : > { %1915 = vmatpush3.bf16.msra.mxu1 %v2069_v52  ;;  %1876 = vmatprep.subr.bf16.mxu0 %v2070_v53  ;;  %v1438_v52 = vld [vmem:[%s2439_s8 + $0x30] sm:$0xff] }
  0x32   : > { %1916 = vmatprep.subr.bf16.mxu1 %v2071_v54  ;;  %1131 = vmatprep.mubr.bf16.mxu0 %v2074_v57 }
  0x33   : > { %1196 = vmatprep.mubr.bf16.mxu1 %v2076_v58  ;;  %1467 = vperm.xlu1 %2013, %v1437_v48  }
  0x34   : > { %1877 = vmatpush3.bf16.msra.mxu0 %v2072_v55  ;;  %1462 = vperm.xlu0 %2012, %v1436_v50   ;;  %v1621_v55 = vld [vmem:[%s2501_s2] ss:$0 sm:$0xff] }
  0x35   : > { %1917 = vmatpush3.bf16.msra.mxu1 %v2073_v56  ;;  %1878 = vmatprep.subr.bf16.mxu0 %v2080_v61 }
  0x36   : > { %1918 = vmatprep.subr.bf16.mxu1 %v2081_v62 }
  0x37   : > { %1132 = vmatmul.mubr.bf16.gmra.mrb[8].mxu0 %v2078_v59  ;;  %1477 = vperm.xlu1 %2013, %v1439_v51  }
  0x38   : > { %1197 = vmatmul.mubr.bf16.gmra.mrb[8].mxu1 %v2079_v60  ;;  %1879 = vmatpush3.bf16.msra.mxu0 %v2082_v63 }
  0x39   : > { %1919 = vmatpush3.bf16.msra.mxu1 %v2083_v0  ;;  %1880 = vmatprep.subr.bf16.mxu0 %v2084_v1 }
  0x3a   : > { %1920 = vmatprep.subr.bf16.mxu1 %v2085_v2  ;;  %1139 = vmatprep.mubr.bf16.mxu0 %v2088_v5 }
  0x3b   : > { %1204 = vmatprep.mubr.bf16.mxu1 %v2090_v6  ;;  %1472 = vperm.xlu0 %2012, %v1438_v52  }
  0x3c   : > { %1881 = vmatpush3.bf16.msra.mxu0 %v2086_v3 }
  0x3d   : > { %1921 = vmatpush3.bf16.msra.mxu1 %v2087_v4  ;;  %1882 = vmatprep.subr.bf16.mxu0 %v2094_v9 }
  0x3e   : > { %1922 = vmatprep.subr.bf16.mxu1 %v2095_v10 }
  0x3f   : > { %1140 = vmatmul.mubr.bf16.gmra.mrb[12].mxu0 %v2092_v7 }
  0x40   : > { %1205 = vmatmul.mubr.bf16.gmra.mrb[12].mxu1 %v2093_v8  ;;  %1883 = vmatpush3.bf16.msra.mxu0 %v2096_v11 }
  0x41   : > { %1923 = vmatpush3.bf16.msra.mxu1 %v2097_v12  ;;  %1884 = vmatprep.subr.bf16.mxu0 %v2098_v13 }
  0x42   : > { %1924 = vmatprep.subr.bf16.mxu1 %v2099_v14  ;;  %1245 = vmatprep.mubr.bf16.mxu0 %v2104_v18 }
  0x43   : > { %1310 = vmatprep.mubr.bf16.mxu1 %v2107_v20 }
  0x44   : > { %1885 = vmatpush3.bf16.msra.mxu0 %v2100_v15 }
  0x45   : > { %1925 = vmatpush3.bf16.msra.mxu1 %v2101_v16  ;;  %1962 = vmatprep.subr.bf16.mxu0 %v2108_v21 }
  0x46   : > { %1986 = vmatprep.subr.bf16.mxu1 %v2108_v21 }
  0x47   : > { %1246 = vmatmul.mubr.bf16.vlgmr.msra.gmra.mrb[16].mxu0 %v2102_v17 }
  0x48   : > { %1311 = vmatmul.mubr.bf16.vlgmr.msra.gmra.mrb[16].mxu1 %v2105_v19  ;;  %1963 = vmatpush3.bf16.msra.mxu0 %v2108_v21 }
  0x49   : > { %1994 = vmatpush3.bf16.msra.mxu1 %v2108_v21  ;;  %1964 = vmatprep.subr.bf16.mxu0 %v2109_v22 }
  0x4a   : > { %1987 = vmatprep.subr.bf16.mxu1 %v2109_v22  ;;  %1253 = vmatprep.mubr.bf16.mxu0 %v2110_v23 }
  0x4b   : > { %1318 = vmatprep.mubr.bf16.mxu1 %v2112_v24 }
  0x4c   : > { %1965 = vmatpush3.bf16.msra.mxu0 %v2109_v22 }
  0x4d   : > { %1995 = vmatpush3.bf16.msra.mxu1 %v2109_v22  ;;  %1966 = vmatprep.subr.bf16.mxu0 %v2116_v27 }
  0x4e   : > { %1988 = vmatprep.subr.bf16.mxu1 %v2116_v27 }
  0x4f   : > { %1254 = vmatmul.mubr.bf16.gmra.mrb[20].mxu0 %v2114_v25 }
  0x50   : > { %1319 = vmatmul.mubr.bf16.gmra.mrb[20].mxu1 %v2115_v26  ;;  %1261 = vmatprep.mubr.bf16.mxu0 %v2118_v28 }
  0x51   : > { %1967 = vmatpush3.bf16.msra.mxu0 %v2116_v27  ;;  %1326 = vmatprep.mubr.bf16.mxu1 %v2120_v29 }
  0x52   : > { %1996 = vmatpush3.bf16.msra.mxu1 %v2116_v27  ;;  %1968 = vmatprep.subr.bf16.mxu0 %v2117_v30 }
  0x53   : > { %1989 = vmatprep.subr.bf16.mxu1 %v2117_v30 }
  0x55   : > { %1969 = vmatpush3.bf16.msra.mxu0 %v2117_v30 }
  0x56   : > { %1997 = vmatpush3.bf16.msra.mxu1 %v2117_v30  ;;  %1970 = vmatprep.subr.bf16.mxu0 %v2124_v33 }
  0x57   : > { %1262 = vmatmul.mubr.bf16.gmra.mrb[24].mxu0 %v2122_v31  ;;  %1990 = vmatprep.subr.bf16.mxu1 %v2124_v33 }
  0x58   : > { %1327 = vmatmul.mubr.bf16.gmra.mrb[24].mxu1 %v2123_v32  ;;  %1269 = vmatprep.mubr.bf16.mxu0 %v2126_v34 }
  0x59   : > { %1971 = vmatpush3.bf16.msra.mxu0 %v2124_v33  ;;  %1334 = vmatprep.mubr.bf16.mxu1 %v2128_v35 }
  0x5a   : > { %1998 = vmatpush3.bf16.msra.mxu1 %v2124_v33  ;;  %1972 = vmatprep.subr.bf16.mxu0 %v2125_v36 }
  0x5b   : > { %1991 = vmatprep.subr.bf16.mxu1 %v2125_v36 }
  0x5d   : > { %1973 = vmatpush3.bf16.msra.mxu0 %v2125_v36 }
  0x5e   : > { %1999 = vmatpush3.bf16.msra.mxu1 %v2125_v36  ;;  %1974 = vmatprep.subr.bf16.mxu0 %v2132_v40 }
  0x5f   : > { %1270 = vmatmul.mubr.bf16.gmra.mrb[28].mxu0 %v2130_v39  ;;  %1992 = vmatprep.subr.bf16.mxu1 %v2132_v40 }
  0x60   : > { %1335 = vmatmul.mubr.bf16.gmra.mrb[28].mxu1 %v2131_v41  ;;  %1978 = vmatprep.mubr.bf16.mxu0 %v2134_v42 }
  0x61   : > { %1975 = vmatpush3.bf16.msra.mxu0 %v2132_v40  ;;  %1982 = vmatprep.mubr.bf16.mxu1 %v2135_v43 }
  0x62   : > { %2000 = vmatpush3.bf16.msra.mxu1 %v2132_v40  ;;  %1976 = vmatprep.subr.bf16.mxu0 %v2133_v44 }
  0x63   : > { %1993 = vmatprep.subr.bf16.mxu1 %v2133_v44 }
  0x65   : > { %1977 = vmatpush3.bf16.msra.mxu0 %v2133_v44 }
  0x66   : > { %2001 = vmatpush3.bf16.msra.mxu1 %v2133_v44 }
  0x68   : > { %1979 = vmatmul.mubr.bf16.vlgmr.msra.gmra.mrb[32].mxu0 %v2136_v47 }
  0x69   : > { %1983 = vmatmul.mubr.bf16.vlgmr.msra.gmra.mrb[32].mxu1 %v2137_v49 }
  0xfa   : > { %v1806_v53 = vpop.f32.mrb[0].mxu0 }
  0xfb   : > { %v1846_v54 = vpop.f32.mrb[0].mxu1  ;;  %v1807_v56 = vpop.f32.mrb[1].mxu0 }
  0xfc   : > { %v1808_v57 = vadd.f32 %v1807_v56, %v1806_v53  ;;  %v1847_v58 = vpop.f32.mrb[1].mxu1  ;;  %v1809_v59 = vpop.f32.mrb[2].mxu0 }
  0xfd   : > { %v1848_v60 = vadd.f32 %v1847_v58, %v1846_v54  ;;  %v1849_v61 = vpop.f32.mrb[2].mxu1  ;;  %v1810_v62 = vpop.f32.mrb[3].mxu0 }
  0xfe   : > { %v1118_v63 = vadd.f32 %v1808_v57, %v1621_v55  ;;  %v1811_v0 = vadd.f32 %v1810_v62, %v1809_v59  ;;  %v1850_v1 = vpop.f32.mrb[3].mxu1 }
  0xff   : > { %v1851_v2 = vadd.f32 %v1850_v1, %v1849_v61 }
 0x100   : > { %v1183_v3 = vadd.f32 %v1848_v60, %v1118_v63  ;;  %v1121_v4 = vadd.f32 %v1811_v0, %v1621_v55 }
 0x102   : > { %v1186_v5 = vadd.f32 %v1851_v2, %v1121_v4  ;;  %v1812_v6 = vpop.f32.mrb[4].mxu0 }
 0x103   : > { %v1852_v7 = vpop.f32.mrb[4].mxu1  ;;  %v1813_v8 = vpop.f32.mrb[5].mxu0 }
 0x104   : > { %v1814_v9 = vadd.f32 %v1813_v8, %v1812_v6  ;;  %v1853_v10 = vpop.f32.mrb[5].mxu1  ;;  %v1815_v11 = vpop.f32.mrb[6].mxu0 }
 0x105   : > { %v1854_v12 = vadd.f32 %v1853_v10, %v1852_v7  ;;  %v1855_v13 = vpop.f32.mrb[6].mxu1  ;;  %v1816_v14 = vpop.f32.mrb[7].mxu0 }
 0x106   : > { %v1126_v15 = vadd.f32 %v1814_v9, %v1621_v55  ;;  %v1817_v16 = vadd.f32 %v1816_v14, %v1815_v11  ;;  %v1856_v17 = vpop.f32.mrb[7].mxu1 }
 0x107   : > { %v1857_v18 = vadd.f32 %v1856_v17, %v1855_v13 }
 0x108   : > { %v1191_v19 = vadd.f32 %v1854_v12, %v1126_v15  ;;  %v1129_v20 = vadd.f32 %v1817_v16, %v1621_v55 }
 0x10a   : > { %v1194_v21 = vadd.f32 %v1857_v18, %v1129_v20  ;;  %v1818_v22 = vpop.f32.mrb[8].mxu0 }
 0x10b   : > { %v1858_v23 = vpop.f32.mrb[8].mxu1  ;;  %v1819_v24 = vpop.f32.mrb[9].mxu0 }
 0x10c   : > { %v1820_v25 = vadd.f32 %v1819_v24, %v1818_v22  ;;  %v1859_v26 = vpop.f32.mrb[9].mxu1  ;;  %v1821_v27 = vpop.f32.mrb[10].mxu0 }
 0x10d   : > { %v1860_v28 = vadd.f32 %v1859_v26, %v1858_v23  ;;  %v1861_v29 = vpop.f32.mrb[10].mxu1  ;;  %v1822_v30 = vpop.f32.mrb[11].mxu0 }
 0x10e   : > { %v1134_v31 = vadd.f32 %v1820_v25, %v1621_v55  ;;  %v1823_v32 = vadd.f32 %v1822_v30, %v1821_v27  ;;  %v1862_v33 = vpop.f32.mrb[11].mxu1  ;;  %v2474_v25 = vpop.permute.xlu1 %1452 }
 0x10f   : > { %v1863_v34 = vadd.f32 %v1862_v33, %v1861_v29 }
 0x110   : > { %v1199_v35 = vadd.f32 %v1860_v28, %v1134_v31  ;;  %v1137_v36 = vadd.f32 %v1823_v32, %v1621_v55 }
 0x112   : > { %v2464_v37 = vadd.f32 %v1863_v34, %v1137_v36  ;;  %v1824_v38 = vpop.f32.mrb[12].mxu0 }
 0x113   : > { %v1864_v39 = vpop.f32.mrb[12].mxu1  ;;  %v1825_v40 = vpop.f32.mrb[13].mxu0 }
 0x114   : > { %v1865_v41 = vpop.f32.mrb[13].mxu1  ;;  %v1826_v42 = vadd.f32 %v1825_v40, %v1824_v38  ;;  %v1827_v44 = vpop.f32.mrb[14].mxu0 }
 0x115   : > { %v1866_v43 = vadd.f32 %v1865_v41, %v1864_v39  ;;  %v1867_v45 = vpop.f32.mrb[14].mxu1  ;;  %v1828_v46 = vpop.f32.mrb[15].mxu0 }
 0x116   : > { %v1868_v47 = vpop.f32.mrb[15].mxu1  ;;  %v1142_v48 = vadd.f32 %v1826_v42, %v1621_v55  ;;  %v1829_v49 = vadd.f32 %v1828_v46, %v1827_v44 }
 0x117   : > { %v1869_v50 = vadd.f32 %v1868_v47, %v1867_v45 }
 0x118   : > { %v2466_v51 = vadd.f32 %v1866_v43, %v1142_v48  ;;  %v1145_v52 = vadd.f32 %v1829_v49, %v1621_v55  ;;  %v1458_v43 = vpop.permute.xlu1 %1457 }
 0x11a   : > { %v2468_v53 = vadd.f32 %v1869_v50, %v1145_v52  ;;  %v1886_v54 = vpop.f32.mrb[16].mxu0 }
 0x11b   : > { %v1887_v56 = vpop.f32.mrb[17].mxu0  ;;  %v1926_v57 = vpop.f32.mrb[16].mxu1 }
 0x11c   : > { %v1888_v58 = vadd.f32 %v1887_v56, %v1886_v54  ;;  %v1889_v59 = vpop.f32.mrb[18].mxu0  ;;  %v1927_v60 = vpop.f32.mrb[17].mxu1 }
 0x11d   : > { %v1890_v61 = vpop.f32.mrb[19].mxu0  ;;  %v1928_v63 = vadd.f32 %v1927_v60, %v1926_v57  ;;  %v1929_v0 = vpop.f32.mrb[18].mxu1 }
 0x11e   : > { %v1248_v62 = vadd.f32 %v1888_v58, %v1183_v3  ;;  %v1891_v1 = vadd.f32 %v1890_v61, %v1889_v59  ;;  %v1930_v2 = vpop.f32.mrb[19].mxu1  ;;  %v1784_v59 = vld [vmem:[%s261_s17 + $0x8] sm:$0xff]   ;;  %v1786_v61 = vld [vmem:[%s261_s17 + $0x18] sm:$0xff]  }
 0x11f   : > { %v1931_v6 = vadd.f32 %v1930_v2, %v1929_v0  ;;  %v1754_v2 = vunpack.c.l.bf16 %v1784_v59 }
 0x120   : > { %v1251_v4 = vadd.f32 %v1891_v1, %v1186_v5  ;;  %v2470_v7 = vadd.f32 %v1928_v63, %v1248_v62  ;;  %v1749_v62 = vld [vmem:[%s261_s17] sm:$0xff]   ;;  %v1785_v63 = vld [vmem:[%s261_s17 + $0x10] sm:$0xff]   ;;  %v1468_v1 = vpop.permute.xlu1 %1467 }
 0x122   : > { %v1892_v8 = vpop.f32.mrb[20].mxu0  ;;  %v2472_v55 = vadd.f32 %v1931_v6, %v1251_v4 }
 0x123   : > { %v1893_v9 = vpop.f32.mrb[21].mxu0  ;;  %v1932_v10 = vpop.f32.mrb[20].mxu1 }
 0x124   : > { %v1894_v11 = vadd.f32 %v1893_v9, %v1892_v8  ;;  %v1895_v12 = vpop.f32.mrb[22].mxu0  ;;  %v1933_v13 = vpop.f32.mrb[21].mxu1  ;;  %v1762_v8 = vunpack.c.l.bf16 %v1786_v61  ;;  %v1750_v9 = vunpack.c.l.bf16 %v1749_v62 }
 0x125   : > { %v1896_v14 = vpop.f32.mrb[23].mxu0  ;;  %v1934_v16 = vadd.f32 %v1933_v13, %v1932_v10  ;;  %v1935_v3 = vpop.f32.mrb[22].mxu1  ;;  %v1755_v13 = vunpack.c.h.bf16 %v1784_v59 }
 0x126   : > { %v1256_v15 = vadd.f32 %v1894_v11, %v1191_v19  ;;  %v1897_v17 = vadd.f32 %v1896_v14, %v1895_v12  ;;  %v1936_v18 = vpop.f32.mrb[23].mxu1  ;;  %v1758_v12 = vunpack.c.l.bf16 %v1785_v63 }
 0x127   : > { %v1937_v22 = vadd.f32 %v1936_v18, %v1935_v3  ;;  %v1763_v3 = vunpack.c.h.bf16 %v1786_v61 }
 0x128   : > { %v1259_v20 = vadd.f32 %v1897_v17, %v1194_v21  ;;  %v1321_v5 = vadd.f32 %v1934_v16, %v1256_v15  ;;  %v2476_v21 = vpop.permute.xlu0 %1442  ;;  %v1751_v17 = vunpack.c.h.bf16 %v1749_v62 }
 0x12a   : > { %v1898_v23 = vpop.f32.mrb[24].mxu0  ;;  %v1324_v24 = vadd.f32 %v1937_v22, %v1259_v20 }
 0x12b   : > { %v1899_v26 = vpop.f32.mrb[25].mxu0  ;;  %v1938_v27 = vpop.f32.mrb[24].mxu1 }
 0x12c   : > { %v1900_v28 = vadd.f32 %v1899_v26, %v1898_v23  ;;  %v1901_v29 = vpop.f32.mrb[26].mxu0  ;;  %v1939_v30 = vpop.f32.mrb[25].mxu1 }
 0x12d   : > { %v1902_v31 = vpop.f32.mrb[27].mxu0  ;;  %v1940_v19 = vadd.f32 %v1939_v30, %v1938_v27  ;;  %v1941_v33 = vpop.f32.mrb[26].mxu1  ;;  %v1759_v27 = vunpack.c.h.bf16 %v1785_v63 }
 0x12e   : > { %v1264_v32 = vadd.f32 %v1900_v28, %v1199_v35  ;;  %v1903_v34 = vadd.f32 %v1902_v31, %v1901_v29  ;;  %v1942_v36 = vpop.f32.mrb[27].mxu1  ;;  %v1448_v49 = vpop.permute.xlu0 %1447 }
 0x12f   : > { %v1943_v39 = vadd.f32 %v1942_v36, %v1941_v33  ;;  %v1478_v36 = vpop.permute.xlu1 %1477 }
 0x130   : > { %v1267_v38 = vadd.f32 %v1903_v34, %v2464_v37  ;;  %v1329_v40 = vadd.f32 %v1940_v19, %v1264_v32 }
 0x132   : > { %v1904_v41 = vpop.f32.mrb[28].mxu0  ;;  %v1332_v42 = vadd.f32 %v1943_v39, %v1267_v38  ;;  %v1463_v4 = vpop.permute.xlu0 %1462 }
 0x133   : > { %v1905_v44 = vpop.f32.mrb[29].mxu0  ;;  %v1944_v45 = vpop.f32.mrb[28].mxu1 }
 0x134   : > { %v1906_v46 = vadd.f32 %v1905_v44, %v1904_v41  ;;  %v1907_v47 = vpop.f32.mrb[30].mxu0  ;;  %v1945_v35 = vpop.f32.mrb[29].mxu1 }
 0x135   : > { %v1908_v48 = vpop.f32.mrb[31].mxu0  ;;  %v1946_v50 = vadd.f32 %v1945_v35, %v1944_v45  ;;  %v1947_v52 = vpop.f32.mrb[30].mxu1 }
 0x136   : > { %v1272_v37 = vadd.f32 %v1906_v46, %v2466_v51  ;;  %v1909_v54 = vadd.f32 %v1908_v48, %v1907_v47  ;;  %v1948_v56 = vpop.f32.mrb[31].mxu1  ;;  %v1473_v38 = vpop.permute.xlu0 %1472 }
 0x137   : > { %v1949_v58 = vadd.f32 %v1948_v56, %v1947_v52 }
 0x138   : > { %v1275_v57 = vadd.f32 %v1909_v54, %v2468_v53  ;;  %v1337_v60 = vadd.f32 %v1946_v50, %v1272_v37 }
 0x13a   : > { %v1340_v0 = vadd.f32 %v1949_v58, %v1275_v57 }
 0x13b   : > { %v1980_v6 = vpop.f32.mrb[32].mxu0 }
 0x13c   : > { %v1386_v51 = vadd.f32 %v1980_v6, %v1321_v5  ;;  %v1984_v10 = vpop.f32.mrb[32].mxu1  ;;  %v1377_v11 = vpop.f32.mrb[33].mxu0 }
 0x13d   : > { %v1402_v14 = vadd.f32 %v1984_v10, %v1337_v60  ;;  %v1378_v53 = vadd.f32 %v1377_v11, %v2470_v7  ;;  %v1393_v15 = vpop.f32.mrb[33].mxu1  ;;  %v1981_v16 = vpop.f32.mrb[34].mxu0 }
 0x13e   : > { %v1426_v18 = vadd.f32 %v1754_v2, %v1386_v51  ;;  %v1394_v20 = vadd.f32 %v1393_v15, %v1329_v40  ;;  %v1389_v22 = vadd.f32 %v1981_v16, %v1324_v24  ;;  %v1985_v23 = vpop.f32.mrb[34].mxu1  ;;  %v1380_v26 = vpop.f32.mrb[35].mxu0 }
 0x13f   : > { %v1430_v28 = vadd.f32 %v1762_v8, %v1402_v14  ;;  %v1424_v5 = vadd.f32 %v1750_v9, %v1378_v53  ;;  %v1405_v29 = vadd.f32 %v1985_v23, %v1340_v0  ;;  %v1381_v30 = vadd.f32 %v1380_v26, %v2472_v55  ;;  %v1396_v31 = vpop.f32.mrb[35].mxu1 }
 0x140   : > { %v1428_v32 = vadd.f32 %v1758_v12, %v1394_v20  ;;  %v1427_v19 = vadd.f32 %v1755_v13, %v1389_v22  ;;  %v1397_v7 = vadd.f32 %v1396_v31, %v1332_v42  ;;  %v1482_v39 = vmul.f32 %v2474_v25, %v1426_v18 }
 0x141   : > { %v1431_v33 = vadd.f32 %v1763_v3, %v1405_v29  ;;  %v1425_v34 = vadd.f32 %v1751_v17, %v1381_v30  ;;  %v1486_v41 = vmul.f32 %v1473_v38, %v1430_v28  ;;  %v1480_v55 = vmul.f32 %v2476_v21, %v1424_v5 }
 0x142   : > { %v1483_v24 = vmul.f32 %v1458_v43, %v1427_v19  ;;  %v1429_v40 = vadd.f32 %v1759_v27, %v1397_v7  ;;  %v1484_v46 = vmul.f32 %v1463_v4, %v1428_v32 }
 0x143   : > { %v1487_v44 = vmul.f32 %v1478_v36, %v1431_v33  ;;  %v1481_v45 = vmul.f32 %v1448_v49, %v1425_v34 }
 0x144   : > { %v1772_v42 = vpack.c.bf16 %v1483_v24, %v1482_v39  ;;  %v1485_v47 = vmul.f32 %v1468_v1, %v1429_v40 }
 0x145   : > { %v1782_v35 = vpack.c.bf16 %v1487_v44, %v1486_v41  ;;  %v1767_v48 = vpack.c.bf16 %v1481_v45, %v1480_v55 }
 0x146   : > { %1787 = vst [vmem:[%s273_s22 + $0x8] sm:$0xff] %v1772_v42   ;;  %v1777_v37 = vpack.c.bf16 %v1485_v47, %v1484_v46 }
 0x147   : > { %1789 = vst [vmem:[%s273_s22 + $0x18] sm:$0xff] %v1782_v35   ;;  %1768 = vst [vmem:[%s273_s22] sm:$0xff] %v1767_v48  }
 0x148   : > { %1788 = vst [vmem:[%s273_s22 + $0x10] sm:$0xff] %v1777_v37  }
 0x149 PF: > { %s15_s18 = sadd.s32 1, %s2144_s18  }
 0x14a   : > { %p12_p4 = scmp.ge.s32.totalorder %s15_s18, 4  }
 0x14c   :  { %14 = sbr.rel (!%p12_p4) target bundleno = 1 (0x1), region = 76 }

// kernel: forward.17
= control target key start
LH: loop header
LB: loop body
LE: loop exit
PB: predicated region body
PF: predicated region fallthrough
CT: control target
= control target key end

     0   :  { %s2018_s12 = smov 0   ;;  %s2304_s0 = inlined_call_operand.vmem [shape: bf16[128,1152], index: 0, kind: input, shape index: {}]   ;;  %s2305_s1 = inlined_call_operand.vmem [shape: bf16[1152,128], index: 1, kind: input, shape index: {}]   ;;  %s2306_s2 = inlined_call_operand.vmem [shape: bf16[128,128], index: 2, kind: output, shape index: {0}]   ;;  %s2307_s3 = inlined_call_operand.vmem [shape: f32[2,2,128], index: 3, kind: output, shape index: {1}]  }
   0x1 LB: > { %s2024_s13 = sadd.s32 4294967295, %s1996_s12   ;;  %p1490_p0 = scmp.ge.s32.totalorder %s1996_s12, 1  ;;  %s1996_s12 = sphi %s2018_s12, %s14_s12  }
   0x2   : > { %p142_p1 = scmp.lt.s32.totalorder %s1996_s12, 3 }
   0x4   : > { %p143_p2 = pnand %p1490_p0, %p142_p1 }
   0x5   : > { %v1866_v0 = vld [vmem:[%s2305_s1 + $0x40] sm:$0xff] (!%p143_p2)   ;;  %v1870_v4 = vld [vmem:[%s2305_s1 + $0x48] sm:$0xff] (!%p143_p2)   ;;  %v1874_v8 = vld [vmem:[%s2305_s1 + $0x50] sm:$0xff] (!%p143_p2)   ;;  %s1491_s19 = sshll.u32 (!%p143_p2), %s2024_s13, 3  ;;  %p184_p4 = scmp.lt.s32.totalorder (!%p143_p2), %s2024_s13, 1  ;;  %vm1396_vm0 = vcmask (!%p143_p2), 1040384  }
   0x6   : > { %146 = sbr.rel (%p143_p2) target bundleno = 355 (0x163), region = 28  ;;  %v1867_v1 = vld [vmem:[%s2305_s1 + $0xc0] sm:$0xff] (!%p143_p2)   ;;  %1645 = vmatprep.subr.bf16.mxu0 (!%p143_p2), %v1866_v0  ;;  %v1871_v5 = vld [vmem:[%s2305_s1 + $0xc8] sm:$0xff] (!%p143_p2)   ;;  %v1875_v9 = vld [vmem:[%s2305_s1 + $0xd0] sm:$0xff] (!%p143_p2)   ;;  %p172_p3 = scmp.lt.s32.totalorder (!%p143_p2), %s1491_s19, 15 }
   0x7   : > { %v1868_v2 = vld [vmem:[%s2305_s1] sm:$0xff] (!%p143_p2)   ;;  %1685 = vmatprep.subr.bf16.mxu1 (!%p143_p2), %v1867_v1  ;;  %v1872_v6 = vld [vmem:[%s2305_s1 + $0x8] sm:$0xff] (!%p143_p2)   ;;  %v1876_v10 = vld [vmem:[%s2305_s1 + $0x10] sm:$0xff] (!%p143_p2)  }
   0x8   : > { %v1869_v3 = vld [vmem:[%s2305_s1 + $0x80] sm:$0xff] (!%p143_p2)   ;;  %1646 = vmatpush3.bf16.msra.mxu0 (!%p143_p2), %v1868_v2  ;;  %v1873_v7 = vld [vmem:[%s2305_s1 + $0x88] sm:$0xff] (!%p143_p2)   ;;  %v1877_v11 = vld [vmem:[%s2305_s1 + $0x90] sm:$0xff] (!%p143_p2)  }
   0x9   : > { %1686 = vmatpush3.bf16.msra.mxu1 (!%p143_p2), %v1869_v3  ;;  %1647 = vmatprep.subr.bf16.mxu0 (!%p143_p2), %v1870_v4  ;;  %v1878_v12 = vld [vmem:[%s2305_s1 + $0x58] sm:$0xff] (!%p143_p2)   ;;  %v1882_v16 = vld [vmem:[%s2305_s1 + $0x60] sm:$0xff] (!%p143_p2)   ;;  %v1886_v20 = vld [vmem:[%s2305_s1 + $0x68] sm:$0xff] (!%p143_p2)  }
   0xa   : > { %1687 = vmatprep.subr.bf16.mxu1 (!%p143_p2), %v1871_v5  ;;  %v1879_v13 = vld [vmem:[%s2305_s1 + $0xd8] sm:$0xff] (!%p143_p2)   ;;  %v1883_v17 = vld [vmem:[%s2305_s1 + $0xe0] sm:$0xff] (!%p143_p2)   ;;  %v1887_v21 = vld [vmem:[%s2305_s1 + $0xe8] sm:$0xff] (!%p143_p2)  }
   0xb   : > { %v1880_v14 = vld [vmem:[%s2305_s1 + $0x18] sm:$0xff] (!%p143_p2)   ;;  %v1884_v18 = vld [vmem:[%s2305_s1 + $0x20] sm:$0xff] (!%p143_p2)   ;;  %v1888_v22 = vld [vmem:[%s2305_s1 + $0x28] sm:$0xff] (!%p143_p2)  }
   0xc   : > { %1648 = vmatpush3.bf16.msra.mxu0 (!%p143_p2), %v1872_v6  ;;  %v1881_v15 = vld [vmem:[%s2305_s1 + $0x98] sm:$0xff] (!%p143_p2)   ;;  %v1885_v19 = vld [vmem:[%s2305_s1 + $0xa0] sm:$0xff] (!%p143_p2)   ;;  %v1889_v23 = vld [vmem:[%s2305_s1 + $0xa8] sm:$0xff] (!%p143_p2)  }
   0xd   : > { %1688 = vmatpush3.bf16.msra.mxu1 %v1873_v7  ;;  %1649 = vmatprep.subr.bf16.mxu0 %v1874_v8  ;;  %s2309_s19 = smov (!%p172_p3, %s1491_s19), 15  ;;  %v1890_v24 = vld [vmem:[%s2305_s1 + $0x70] sm:$0xff]   ;;  %v1894_v28 = vld [vmem:[%s2305_s1 + $0x78] sm:$0xff]   ;;  %v1904_v36 = vld [vmem:[%s2305_s1 + $0x140] sm:$0xff]   ;;  %s2311_s13 = smov (!%p184_p4, %s2024_s13), 1 }
   0xe   : > { %1689 = vmatprep.subr.bf16.mxu1 %v1875_v9  ;;  %v1891_v25 = vld [vmem:[%s2305_s1 + $0xf0] sm:$0xff]   ;;  %s1857_s17 = smul.u32 36, %s2309_s19  ;;  %v1895_v29 = vld [vmem:[%s2305_s1 + $0xf8] sm:$0xff]   ;;  %v1905_v37 = vld [vmem:[%s2305_s1 + $0x1c0] sm:$0xff]  }
   0xf   : > { %v1892_v26 = vld [vmem:[%s2305_s1 + $0x30] sm:$0xff]   ;;  %v1896_v30 = vld [vmem:[%s2305_s1 + $0x38] sm:$0xff]   ;;  %v1906_v38 = vld [vmem:[%s2305_s1 + $0x100] sm:$0xff]  }
  0x10   : > { %1650 = vmatpush3.bf16.msra.mxu0 %v1876_v10  ;;  %v1893_v27 = vld [vmem:[%s2305_s1 + $0xb0] sm:$0xff]   ;;  %s2125_s29 = scalar_lea.vmem %s2304_s0, %s1857_s17  ;;  %v1897_v31 = vld [vmem:[%s2305_s1 + $0xb8] sm:$0xff]   ;;  %v1907_v39 = vld [vmem:[%s2305_s1 + $0x180] sm:$0xff]  }
  0x11   : > { %1690 = vmatpush3.bf16.msra.mxu1 %v1877_v11  ;;  %1651 = vmatprep.subr.bf16.mxu0 %v1878_v12  ;;  %v1898_v32 = vld [vmem:[%s2125_s29] ss:$36 sps:$4 sm:$0xff]   ;;  %v1901_v34 = vld [vmem:[%s2125_s29 + $0x8] ss:$36 sps:$4 sm:$0xff]   ;;  %v1914_v45 = vld [vmem:[%s2125_s29 + $0x54] ss:$36 sps:$4 sm:$0xff]  }
  0x12   : > { %1691 = vmatprep.subr.bf16.mxu1 %v1879_v13  ;;  %v1900_v33 = vld [vmem:[%s2125_s29 + $0x4] ss:$36 sps:$4 sm:$0xff]   ;;  %v1903_v35 = vld [vmem:[%s2125_s29 + $0xc] ss:$36 sps:$4 sm:$0xff]   ;;  %v1922_v52 = vld [vmem:[%s2305_s1 + $0x158] sm:$0xff]  }
  0x13   : > { %1021 = vmatprep.mubr.bf16.mxu0 %v1900_v33  ;;  %1086 = vmatprep.mubr.bf16.mxu1 %v1903_v35  ;;  %v1908_v40 = vld [vmem:[%s2305_s1 + $0x148] sm:$0xff]   ;;  %v1917_v47 = vld [vmem:[%s2125_s29 + $0x50] ss:$36 sps:$4 sm:$0xff]   ;;  %v1923_v53 = vld [vmem:[%s2305_s1 + $0x1d8] sm:$0xff]  }
  0x14   : > { %1652 = vmatpush3.bf16.msra.mxu0 %v1880_v14  ;;  %v1909_v41 = vld [vmem:[%s2305_s1 + $0x1c8] sm:$0xff]   ;;  %v1918_v48 = vld [vmem:[%s2305_s1 + $0x150] sm:$0xff]   ;;  %v1924_v54 = vld [vmem:[%s2305_s1 + $0x118] sm:$0xff]  }
  0x15   : > { %1692 = vmatpush3.bf16.msra.mxu1 %v1881_v15  ;;  %1653 = vmatprep.subr.bf16.mxu0 %v1882_v16  ;;  %v1910_v42 = vld [vmem:[%s2305_s1 + $0x108] sm:$0xff]   ;;  %v1919_v49 = vld [vmem:[%s2305_s1 + $0x1d0] sm:$0xff]   ;;  %v1925_v55 = vld [vmem:[%s2305_s1 + $0x198] sm:$0xff]  }
  0x16   : > { %1693 = vmatprep.subr.bf16.mxu1 %v1883_v17  ;;  %v1911_v43 = vld [vmem:[%s2305_s1 + $0x188] sm:$0xff]   ;;  %v1920_v50 = vld [vmem:[%s2305_s1 + $0x110] sm:$0xff]   ;;  %v1928_v57 = vld [vmem:[%s2125_s29 + $0x9c] ss:$36 sps:$4 sm:$0xff]  }
  0x17   : > { %v1912_v44 = vld [vmem:[%s2125_s29 + $0x4c] ss:$36 sps:$4 sm:$0xff]   ;;  %v1926_v56 = vld [vmem:[%s2125_s29 + $0x94] ss:$36 sps:$4 sm:$0xff]   ;;  %v1932_v60 = vld [vmem:[%s2305_s1 + $0x160] sm:$0xff]  }
  0x18   : > { %1654 = vmatpush3.bf16.msra.mxu0 %v1884_v18  ;;  %v1916_v46 = vld [vmem:[%s2125_s29 + $0x48] ss:$36 sps:$4 sm:$0xff]   ;;  %v1921_v51 = vld [vmem:[%s2305_s1 + $0x190] sm:$0xff]   ;;  %v1931_v59 = vld [vmem:[%s2125_s29 + $0x98] ss:$36 sps:$4 sm:$0xff]  }
  0x19   : > { %1694 = vmatpush3.bf16.msra.mxu1 %v1885_v19  ;;  %1655 = vmatprep.subr.bf16.mxu0 %v1886_v20  ;;  %v1930_v58 = vld [vmem:[%s2125_s29 + $0x90] ss:$36 sps:$4 sm:$0xff]   ;;  %v1933_v61 = vld [vmem:[%s2305_s1 + $0x1e0] sm:$0xff]   ;;  %v1936_v0 = vld [vmem:[%s2305_s1 + $0x168] sm:$0xff]  }
  0x1a   : > { %1695 = vmatprep.subr.bf16.mxu1 %v1887_v21  ;;  %v1934_v62 = vld [vmem:[%s2305_s1 + $0x120] sm:$0xff]   ;;  %v1937_v1 = vld [vmem:[%s2305_s1 + $0x1e8] sm:$0xff]   ;;  %v1944_v6 = vld [vmem:[%s2125_s29 + $0xd8] ss:$36 sps:$4 sm:$0xff]  }
  0x1b   : > { %v1935_v63 = vld [vmem:[%s2305_s1 + $0x1a0] sm:$0xff]   ;;  %v1938_v2 = vld [vmem:[%s2305_s1 + $0x128] sm:$0xff]   ;;  %v1946_v8 = vld [vmem:[%s2305_s1 + $0x170] sm:$0xff]  }
  0x1c   : > { %1656 = vmatpush3.bf16.msra.mxu0 %v1888_v22  ;;  %v1939_v3 = vld [vmem:[%s2305_s1 + $0x1a8] sm:$0xff]   ;;  %v1940_v4 = vld [vmem:[%s2125_s29 + $0xdc] ss:$36 sps:$4 sm:$0xff]   ;;  %v1947_v9 = vld [vmem:[%s2305_s1 + $0x1f0] sm:$0xff]  }
  0x1d   : > { %1696 = vmatpush3.bf16.msra.mxu1 %v1889_v23  ;;  %1657 = vmatprep.subr.bf16.mxu0 %v1890_v24  ;;  %v1942_v5 = vld [vmem:[%s2125_s29 + $0xe4] ss:$36 sps:$4 sm:$0xff]   ;;  %v1948_v10 = vld [vmem:[%s2305_s1 + $0x130] sm:$0xff]   ;;  %v1950_v12 = vld [vmem:[%s2305_s1 + $0x178] sm:$0xff]  }
  0x1e   : > { %1697 = vmatprep.subr.bf16.mxu1 %v1891_v25  ;;  %v1945_v7 = vld [vmem:[%s2125_s29 + $0xe0] ss:$36 sps:$4 sm:$0xff]   ;;  %v1949_v11 = vld [vmem:[%s2305_s1 + $0x1b0] sm:$0xff]   ;;  %v1951_v13 = vld [vmem:[%s2305_s1 + $0x1f8] sm:$0xff]  }
  0x1f   : > { %v1952_v14 = vld [vmem:[%s2305_s1 + $0x138] sm:$0xff]   ;;  %v1954_v16 = vld [vmem:[%s2125_s29 + $0x10] ss:$36 sps:$4 sm:$0xff]   ;;  %v1960_v20 = vld [vmem:[%s2305_s1 + $0x200] sm:$0xff]  }
  0x20   : > { %1658 = vmatpush3.bf16.msra.mxu0 %v1892_v26  ;;  %v1953_v15 = vld [vmem:[%s2305_s1 + $0x1b8] sm:$0xff]   ;;  %v1961_v21 = vld [vmem:[%s2305_s1 + $0x208] sm:$0xff]   ;;  %v1967_v25 = vld [vmem:[%s2125_s29 + $0x60] ss:$36 sps:$4 sm:$0xff]  }
  0x21   : > { %1698 = vmatpush3.bf16.msra.mxu1 %v1893_v27  ;;  %1659 = vmatprep.subr.bf16.mxu0 %v1894_v28  ;;  %v1956_v17 = vld [vmem:[%s2125_s29 + $0x14] ss:$36 sps:$4 sm:$0xff]   ;;  %v1959_v19 = vld [vmem:[%s2125_s29 + $0x1c] ss:$36 sps:$4 sm:$0xff]   ;;  %v1964_v23 = vld [vmem:[%s2125_s29 + $0x64] ss:$36 sps:$4 sm:$0xff]  }
  0x22   : > { %1699 = vmatprep.subr.bf16.mxu1 %v1895_v29  ;;  %v1957_v18 = vld [vmem:[%s2125_s29 + $0x18] ss:$36 sps:$4 sm:$0xff]   ;;  %v1968_v26 = vld [vmem:[%s2305_s1 + $0x210] sm:$0xff]   ;;  %v1970_v27 = vld [vmem:[%s2125_s29 + $0xa4] ss:$36 sps:$4 sm:$0xff]  }
  0x23   : > { %v1962_v22 = vld [vmem:[%s2125_s29 + $0x5c] ss:$36 sps:$4 sm:$0xff]   ;;  %v1972_v28 = vld [vmem:[%s2125_s29 + $0xac] ss:$36 sps:$4 sm:$0xff]  }
  0x24   : > { %1660 = vmatpush3.bf16.msra.mxu0 %v1896_v30  ;;  %v1966_v24 = vld [vmem:[%s2125_s29 + $0x58] ss:$36 sps:$4 sm:$0xff]   ;;  %v1974_v30 = vld [vmem:[%s2125_s29 + $0xa0] ss:$36 sps:$4 sm:$0xff]   ;;  %v1978_v33 = vld [vmem:[%s2125_s29 + $0xec] ss:$36 sps:$4 sm:$0xff]  }
  0x25   : > { %1700 = vmatpush3.bf16.msra.mxu1 %v1897_v31  ;;  %1725 = vmatprep.subr.bf16.mxu0 %v1904_v36  ;;  %v1969_v29 = vld [vmem:[%s2305_s1 + $0x218] sm:$0xff]   ;;  %v1975_v31 = vld [vmem:[%s2125_s29 + $0xa8] ss:$36 sps:$4 sm:$0xff]  }
  0x26   : > { %1765 = vmatprep.subr.bf16.mxu1 %v1905_v37  ;;  %v1977_v35 = vld [vmem:[%s2305_s1 + $0x228] sm:$0xff]   ;;  %v1984_v37 = vld [vmem:[%s2305_s1 + $0x230] sm:$0xff]  }
  0x27   : > { %1022 = vmatmul.mubr.bf16.vlgmr.msra.gmra.mrb[0].mxu0 %v1898_v32  ;;  %v1976_v32 = vld [vmem:[%s2305_s1 + $0x220] sm:$0xff]   ;;  %v1982_v36 = vld [vmem:[%s2125_s29 + $0xe8] ss:$36 sps:$4 sm:$0xff]  }
  0x28   : > { %1087 = vmatmul.mubr.bf16.vlgmr.msra.gmra.mrb[0].mxu1 %v1901_v34  ;;  %1726 = vmatpush3.bf16.msra.mxu0 %v1906_v38  ;;  %v1980_v34 = vld [vmem:[%s2125_s29 + $0xf4] ss:$36 sps:$4 sm:$0xff]  }
  0x29   : > { %1766 = vmatpush3.bf16.msra.mxu1 %v1907_v39  ;;  %1727 = vmatprep.subr.bf16.mxu0 %v1908_v40  ;;  %v1983_v38 = vld [vmem:[%s2125_s29 + $0xf0] ss:$36 sps:$4 sm:$0xff]   ;;  %v1986_v39 = vld [vmem:[%s2125_s29 + $0x20] ss:$36 sps:$4 sm:$0xff]  }
  0x2a   : > { %1767 = vmatprep.subr.bf16.mxu1 %v1909_v41  ;;  %1029 = vmatprep.mubr.bf16.mxu0 %v1912_v44  ;;  %v1987_v40 = vld [vmem:[%s2125_s29 + $0xb0] ss:$36 sps:$4 sm:$0xff]   ;;  %v1985_v41 = vld [vmem:[%s2305_s1 + $0x238] sm:$0xff]  }
  0x2b   : > { %1094 = vmatprep.mubr.bf16.mxu1 %v1914_v45 }
  0x2c   : > { %1728 = vmatpush3.bf16.msra.mxu0 %v1910_v42  ;;  %v1988_v42 = vld [vmem:[%s2125_s29 + $0x68] ss:$36 sps:$4 sm:$0xff]  }
  0x2d   : > { %1768 = vmatpush3.bf16.msra.mxu1 %v1911_v43  ;;  %1729 = vmatprep.subr.bf16.mxu0 %v1918_v48  ;;  %v1989_v43 = vld [vmem:[%s2125_s29 + $0xf8] ss:$36 sps:$4 sm:$0xff]   ;;  %s1494_s29 = sshll.u32 %s2309_s19, 2  ;;  %s1495_s19 = sshll.u32 %s2311_s13, 1 }
  0x2e   : > { %1769 = vmatprep.subr.bf16.mxu1 %v1919_v49  ;;  %s182_s23 = scalar_lea.vmem %s2306_s2, %s1494_s29  ;;  %s187_s26 = scalar_lea.vmem %s2307_s3, %s1495_s19 }
  0x2f   : > { %1030 = vmatmul.mubr.bf16.gmra.mrb[4].mxu0 %v1916_v46 }
  0x30   : > { %1095 = vmatmul.mubr.bf16.gmra.mrb[4].mxu1 %v1917_v47  ;;  %1730 = vmatpush3.bf16.msra.mxu0 %v1920_v50 }
  0x31   : > { %1770 = vmatpush3.bf16.msra.mxu1 %v1921_v51  ;;  %1731 = vmatprep.subr.bf16.mxu0 %v1922_v52 }
  0x32   : > { %1771 = vmatprep.subr.bf16.mxu1 %v1923_v53  ;;  %1037 = vmatprep.mubr.bf16.mxu0 %v1926_v56 }
  0x33   : > { %1102 = vmatprep.mubr.bf16.mxu1 %v1928_v57 }
  0x34   : > { %1732 = vmatpush3.bf16.msra.mxu0 %v1924_v54 }
  0x35   : > { %1772 = vmatpush3.bf16.msra.mxu1 %v1925_v55  ;;  %1733 = vmatprep.subr.bf16.mxu0 %v1932_v60 }
  0x36   : > { %1773 = vmatprep.subr.bf16.mxu1 %v1933_v61 }
  0x37   : > { %1038 = vmatmul.mubr.bf16.gmra.mrb[8].mxu0 %v1930_v58 }
  0x38   : > { %1103 = vmatmul.mubr.bf16.gmra.mrb[8].mxu1 %v1931_v59  ;;  %1734 = vmatpush3.bf16.msra.mxu0 %v1934_v62 }
  0x39   : > { %1774 = vmatpush3.bf16.msra.mxu1 %v1935_v63  ;;  %1735 = vmatprep.subr.bf16.mxu0 %v1936_v0 }
  0x3a   : > { %1775 = vmatprep.subr.bf16.mxu1 %v1937_v1  ;;  %1045 = vmatprep.mubr.bf16.mxu0 %v1940_v4 }
  0x3b   : > { %1110 = vmatprep.mubr.bf16.mxu1 %v1942_v5 }
  0x3c   : > { %1736 = vmatpush3.bf16.msra.mxu0 %v1938_v2 }
  0x3d   : > { %1776 = vmatpush3.bf16.msra.mxu1 %v1939_v3  ;;  %1737 = vmatprep.subr.bf16.mxu0 %v1946_v8 }
  0x3e   : > { %1777 = vmatprep.subr.bf16.mxu1 %v1947_v9 }
  0x3f   : > { %1046 = vmatmul.mubr.bf16.gmra.mrb[12].mxu0 %v1944_v6 }
  0x40   : > { %1111 = vmatmul.mubr.bf16.gmra.mrb[12].mxu1 %v1945_v7  ;;  %1738 = vmatpush3.bf16.msra.mxu0 %v1948_v10 }
  0x41   : > { %1778 = vmatpush3.bf16.msra.mxu1 %v1949_v11  ;;  %1739 = vmatprep.subr.bf16.mxu0 %v1950_v12 }
  0x42   : > { %1779 = vmatprep.subr.bf16.mxu1 %v1951_v13  ;;  %1151 = vmatprep.mubr.bf16.mxu0 %v1956_v17 }
  0x43   : > { %1216 = vmatprep.mubr.bf16.mxu1 %v1959_v19 }
  0x44   : > { %1740 = vmatpush3.bf16.msra.mxu0 %v1952_v14 }
  0x45   : > { %1780 = vmatpush3.bf16.msra.mxu1 %v1953_v15  ;;  %1817 = vmatprep.subr.bf16.mxu0 %v1960_v20 }
  0x46   : > { %1841 = vmatprep.subr.bf16.mxu1 %v1960_v20 }
  0x47   : > { %1152 = vmatmul.mubr.bf16.vlgmr.msra.gmra.mrb[16].mxu0 %v1954_v16 }
  0x48   : > { %1217 = vmatmul.mubr.bf16.vlgmr.msra.gmra.mrb[16].mxu1 %v1957_v18  ;;  %1818 = vmatpush3.bf16.msra.mxu0 %v1960_v20 }
  0x49   : > { %1849 = vmatpush3.bf16.msra.mxu1 %v1960_v20  ;;  %1819 = vmatprep.subr.bf16.mxu0 %v1961_v21 }
  0x4a   : > { %1842 = vmatprep.subr.bf16.mxu1 %v1961_v21  ;;  %1159 = vmatprep.mubr.bf16.mxu0 %v1962_v22 }
  0x4b   : > { %1224 = vmatprep.mubr.bf16.mxu1 %v1964_v23 }
  0x4c   : > { %1820 = vmatpush3.bf16.msra.mxu0 %v1961_v21 }
  0x4d   : > { %1850 = vmatpush3.bf16.msra.mxu1 %v1961_v21  ;;  %1821 = vmatprep.subr.bf16.mxu0 %v1968_v26 }
  0x4e   : > { %1843 = vmatprep.subr.bf16.mxu1 %v1968_v26 }
  0x4f   : > { %1160 = vmatmul.mubr.bf16.gmra.mrb[20].mxu0 %v1966_v24 }
  0x50   : > { %1225 = vmatmul.mubr.bf16.gmra.mrb[20].mxu1 %v1967_v25  ;;  %1167 = vmatprep.mubr.bf16.mxu0 %v1970_v27 }
  0x51   : > { %1822 = vmatpush3.bf16.msra.mxu0 %v1968_v26  ;;  %1232 = vmatprep.mubr.bf16.mxu1 %v1972_v28 }
  0x52   : > { %1851 = vmatpush3.bf16.msra.mxu1 %v1968_v26  ;;  %1823 = vmatprep.subr.bf16.mxu0 %v1969_v29 }
  0x53   : > { %1844 = vmatprep.subr.bf16.mxu1 %v1969_v29 }
  0x55   : > { %1824 = vmatpush3.bf16.msra.mxu0 %v1969_v29 }
  0x56   : > { %1852 = vmatpush3.bf16.msra.mxu1 %v1969_v29  ;;  %1825 = vmatprep.subr.bf16.mxu0 %v1976_v32 }
  0x57   : > { %1168 = vmatmul.mubr.bf16.gmra.mrb[24].mxu0 %v1974_v30  ;;  %1845 = vmatprep.subr.bf16.mxu1 %v1976_v32 }
  0x58   : > { %1233 = vmatmul.mubr.bf16.gmra.mrb[24].mxu1 %v1975_v31  ;;  %1175 = vmatprep.mubr.bf16.mxu0 %v1978_v33 }
  0x59   : > { %1826 = vmatpush3.bf16.msra.mxu0 %v1976_v32  ;;  %1240 = vmatprep.mubr.bf16.mxu1 %v1980_v34 }
  0x5a   : > { %1853 = vmatpush3.bf16.msra.mxu1 %v1976_v32  ;;  %1827 = vmatprep.subr.bf16.mxu0 %v1977_v35 }
  0x5b   : > { %1846 = vmatprep.subr.bf16.mxu1 %v1977_v35 }
  0x5d   : > { %1828 = vmatpush3.bf16.msra.mxu0 %v1977_v35 }
  0x5e   : > { %1854 = vmatpush3.bf16.msra.mxu1 %v1977_v35  ;;  %1829 = vmatprep.subr.bf16.mxu0 %v1984_v37 }
  0x5f   : > { %1176 = vmatmul.mubr.bf16.gmra.mrb[28].mxu0 %v1982_v36  ;;  %1847 = vmatprep.subr.bf16.mxu1 %v1984_v37 }
  0x60   : > { %1241 = vmatmul.mubr.bf16.gmra.mrb[28].mxu1 %v1983_v38  ;;  %1833 = vmatprep.mubr.bf16.mxu0 %v1986_v39 }
  0x61   : > { %1830 = vmatpush3.bf16.msra.mxu0 %v1984_v37  ;;  %1837 = vmatprep.mubr.bf16.mxu1 %v1987_v40 }
  0x62   : > { %1855 = vmatpush3.bf16.msra.mxu1 %v1984_v37  ;;  %1831 = vmatprep.subr.bf16.mxu0 %v1985_v41 }
  0x63   : > { %1848 = vmatprep.subr.bf16.mxu1 %v1985_v41 }
  0x65   : > { %1832 = vmatpush3.bf16.msra.mxu0 %v1985_v41 }
  0x66   : > { %1856 = vmatpush3.bf16.msra.mxu1 %v1985_v41 }
  0x68   : > { %1834 = vmatmul.mubr.bf16.vlgmr.msra.gmra.mrb[32].mxu0 %v1988_v42 }
  0x69   : > { %1838 = vmatmul.mubr.bf16.vlgmr.msra.gmra.mrb[32].mxu1 %v1989_v43 }
  0xfa   : > { %v1661_v44 = vpop.f32.mrb[0].mxu0 }
  0xfb   : > { %v1701_v45 = vpop.f32.mrb[0].mxu1  ;;  %v1662_v46 = vpop.f32.mrb[1].mxu0 }
  0xfc   : > { %v1663_v47 = vadd.f32 %v1662_v46, %v1661_v44  ;;  %v1702_v48 = vpop.f32.mrb[1].mxu1  ;;  %v1664_v49 = vpop.f32.mrb[2].mxu0 }
  0xfd   : > { %v1703_v50 = vadd.f32 %v1702_v48, %v1701_v45  ;;  %v1704_v51 = vpop.f32.mrb[2].mxu1  ;;  %v1665_v52 = vpop.f32.mrb[3].mxu0 }
  0xfe   : > { %v1666_v53 = vadd.f32 %v1665_v52, %v1664_v49  ;;  %v1705_v54 = vpop.f32.mrb[3].mxu1 }
  0xff   : > { %v1089_v55 = vadd.f32 %v1703_v50, %v1663_v47  ;;  %v1706_v56 = vadd.f32 %v1705_v54, %v1704_v51 }
 0x101   : > { %v1092_v57 = vadd.f32 %v1706_v56, %v1666_v53 }
 0x102   : > { %v1667_v58 = vpop.f32.mrb[4].mxu0 }
 0x103   : > { %v1707_v59 = vpop.f32.mrb[4].mxu1  ;;  %v1668_v60 = vpop.f32.mrb[5].mxu0 }
 0x104   : > { %v1669_v61 = vadd.f32 %v1668_v60, %v1667_v58  ;;  %v1708_v62 = vpop.f32.mrb[5].mxu1  ;;  %v1670_v63 = vpop.f32.mrb[6].mxu0 }
 0x105   : > { %v1709_v0 = vadd.f32 %v1708_v62, %v1707_v59  ;;  %v1710_v1 = vpop.f32.mrb[6].mxu1  ;;  %v1671_v2 = vpop.f32.mrb[7].mxu0 }
 0x106   : > { %v1672_v3 = vadd.f32 %v1671_v2, %v1670_v63  ;;  %v1711_v4 = vpop.f32.mrb[7].mxu1 }
 0x107   : > { %v1097_v5 = vadd.f32 %v1709_v0, %v1669_v61  ;;  %v1712_v6 = vadd.f32 %v1711_v4, %v1710_v1 }
 0x109   : > { %v1100_v7 = vadd.f32 %v1712_v6, %v1672_v3 }
 0x10a   : > { %v1673_v8 = vpop.f32.mrb[8].mxu0 }
 0x10b   : > { %v1713_v9 = vpop.f32.mrb[8].mxu1  ;;  %v1674_v10 = vpop.f32.mrb[9].mxu0 }
 0x10c   : > { %v1675_v11 = vadd.f32 %v1674_v10, %v1673_v8  ;;  %v1714_v12 = vpop.f32.mrb[9].mxu1  ;;  %v1676_v13 = vpop.f32.mrb[10].mxu0 }
 0x10d   : > { %v1715_v14 = vadd.f32 %v1714_v12, %v1713_v9  ;;  %v1716_v15 = vpop.f32.mrb[10].mxu1  ;;  %v1677_v16 = vpop.f32.mrb[11].mxu0 }
 0x10e   : > { %v1678_v17 = vadd.f32 %v1677_v16, %v1676_v13  ;;  %v1717_v18 = vpop.f32.mrb[11].mxu1 }
 0x10f   : > { %v1105_v19 = vadd.f32 %v1715_v14, %v1675_v11  ;;  %v1718_v20 = vadd.f32 %v1717_v18, %v1716_v15 }
 0x111   : > { %v1108_v21 = vadd.f32 %v1718_v20, %v1678_v17 }
 0x112   : > { %v1679_v22 = vpop.f32.mrb[12].mxu0 }
 0x113   : > { %v1719_v23 = vpop.f32.mrb[12].mxu1  ;;  %v1680_v24 = vpop.f32.mrb[13].mxu0 }
 0x114   : > { %v1720_v25 = vpop.f32.mrb[13].mxu1  ;;  %v1681_v26 = vadd.f32 %v1680_v24, %v1679_v22  ;;  %v1682_v28 = vpop.f32.mrb[14].mxu0 }
 0x115   : > { %v1721_v27 = vadd.f32 %v1720_v25, %v1719_v23  ;;  %v1722_v29 = vpop.f32.mrb[14].mxu1  ;;  %v1683_v30 = vpop.f32.mrb[15].mxu0 }
 0x116   : > { %v1723_v31 = vpop.f32.mrb[15].mxu1  ;;  %v1684_v33 = vadd.f32 %v1683_v30, %v1682_v28 }
 0x117   : > { %v1113_v32 = vadd.f32 %v1721_v27, %v1681_v26  ;;  %v1724_v34 = vadd.f32 %v1723_v31, %v1722_v29 }
 0x119   : > { %v1116_v35 = vadd.f32 %v1724_v34, %v1684_v33 }
 0x11a   : > { %v1741_v36 = vpop.f32.mrb[16].mxu0 }
 0x11b   : > { %v1742_v37 = vpop.f32.mrb[17].mxu0  ;;  %v1781_v40 = vpop.f32.mrb[16].mxu1 }
 0x11c   : > { %v1743_v38 = vadd.f32 %v1742_v37, %v1741_v36  ;;  %v1744_v39 = vpop.f32.mrb[18].mxu0  ;;  %v1782_v42 = vpop.f32.mrb[17].mxu1 }
 0x11d   : > { %v1745_v41 = vpop.f32.mrb[19].mxu0  ;;  %v1783_v45 = vadd.f32 %v1782_v42, %v1781_v40  ;;  %v1784_v46 = vpop.f32.mrb[18].mxu1 }
 0x11e   : > { %v1154_v43 = vadd.f32 %v1743_v38, %v1089_v55  ;;  %v1746_v44 = vadd.f32 %v1745_v41, %v1744_v39  ;;  %v1785_v47 = vpop.f32.mrb[19].mxu1 }
 0x11f   : > { %v1786_v49 = vadd.f32 %v1785_v47, %v1784_v46 }
 0x120   : > { %v1157_v48 = vadd.f32 %v1746_v44, %v1092_v57  ;;  %v1219_v50 = vadd.f32 %v1783_v45, %v1154_v43 }
 0x122   : > { %v1747_v51 = vpop.f32.mrb[20].mxu0  ;;  %v2289_v52 = vadd.f32 %v1786_v49, %v1157_v48 }
 0x123   : > { %v1748_v53 = vpop.f32.mrb[21].mxu0  ;;  %v1787_v58 = vpop.f32.mrb[20].mxu1 }
 0x124   : > { %v1749_v54 = vadd.f32 %v1748_v53, %v1747_v51  ;;  %v1750_v56 = vpop.f32.mrb[22].mxu0  ;;  %v1788_v60 = vpop.f32.mrb[21].mxu1 }
 0x125   : > { %v1751_v59 = vpop.f32.mrb[23].mxu0  ;;  %v1789_v63 = vadd.f32 %v1788_v60, %v1787_v58  ;;  %v1790_v55 = vpop.f32.mrb[22].mxu1 }
 0x126   : > { %v1162_v61 = vadd.f32 %v1749_v54, %v1097_v5  ;;  %v1752_v62 = vadd.f32 %v1751_v59, %v1750_v56  ;;  %v1791_v0 = vpop.f32.mrb[23].mxu1 }
 0x127   : > { %v1792_v2 = vadd.f32 %v1791_v0, %v1790_v55 }
 0x128   : > { %v1165_v1 = vadd.f32 %v1752_v62, %v1100_v7  ;;  %v1227_v3 = vadd.f32 %v1789_v63, %v1162_v61 }
 0x12a   : > { %v1753_v57 = vpop.f32.mrb[24].mxu0  ;;  %v1230_v4 = vadd.f32 %v1792_v2, %v1165_v1 }
 0x12b   : > { %v1754_v6 = vpop.f32.mrb[25].mxu0  ;;  %v1793_v10 = vpop.f32.mrb[24].mxu1 }
 0x12c   : > { %v1755_v8 = vadd.f32 %v1754_v6, %v1753_v57  ;;  %v1756_v9 = vpop.f32.mrb[26].mxu0  ;;  %v1794_v12 = vpop.f32.mrb[25].mxu1 }
 0x12d   : > { %v1757_v11 = vpop.f32.mrb[27].mxu0  ;;  %v1795_v15 = vadd.f32 %v1794_v12, %v1793_v10  ;;  %v1796_v16 = vpop.f32.mrb[26].mxu1 }
 0x12e   : > { %v1170_v13 = vadd.f32 %v1755_v8, %v1105_v19  ;;  %v1758_v14 = vadd.f32 %v1757_v11, %v1756_v9  ;;  %v1797_v5 = vpop.f32.mrb[27].mxu1 }
 0x12f   : > { %v1798_v18 = vadd.f32 %v1797_v5, %v1796_v16 }
 0x130   : > { %v1173_v17 = vadd.f32 %v1758_v14, %v1108_v21  ;;  %v1235_v20 = vadd.f32 %v1795_v15, %v1170_v13 }
 0x132   : > { %v1759_v22 = vpop.f32.mrb[28].mxu0  ;;  %v1238_v7 = vadd.f32 %v1798_v18, %v1173_v17 }
 0x133   : > { %v1760_v23 = vpop.f32.mrb[29].mxu0  ;;  %v1799_v26 = vpop.f32.mrb[28].mxu1 }
 0x134   : > { %v1761_v24 = vadd.f32 %v1760_v23, %v1759_v22  ;;  %v1762_v25 = vpop.f32.mrb[30].mxu0  ;;  %v1800_v28 = vpop.f32.mrb[29].mxu1 }
 0x135   : > { %v1763_v27 = vpop.f32.mrb[31].mxu0  ;;  %v1801_v31 = vadd.f32 %v1800_v28, %v1799_v26  ;;  %v1802_v19 = vpop.f32.mrb[30].mxu1 }
 0x136   : > { %v1178_v29 = vadd.f32 %v1761_v24, %v1113_v32  ;;  %v1764_v30 = vadd.f32 %v1763_v27, %v1762_v25  ;;  %v1803_v33 = vpop.f32.mrb[31].mxu1 }
 0x137   : > { %v1804_v36 = vadd.f32 %v1803_v33, %v1802_v19 }
 0x138   : > { %v1181_v34 = vadd.f32 %v1764_v30, %v1116_v35  ;;  %v1243_v37 = vadd.f32 %v1801_v31, %v1178_v29 }
 0x13a   : > { %v1246_v21 = vadd.f32 %v1804_v36, %v1181_v34 }
 0x13b   : > { %v1835_v38 = vpop.f32.mrb[32].mxu0 }
 0x13c   : > { %v1292_v39 = vadd.f32 %v1835_v38, %v1227_v3  ;;  %v1839_v40 = vpop.f32.mrb[32].mxu1  ;;  %v1283_v41 = vpop.f32.mrb[33].mxu0 }
 0x13d   : > { %v1308_v42 = vadd.f32 %v1839_v40, %v1243_v37  ;;  %v1284_v43 = vadd.f32 %v1283_v41, %v1219_v50  ;;  %v1299_v44 = vpop.f32.mrb[33].mxu1  ;;  %v1836_v45 = vpop.f32.mrb[34].mxu0 }
 0x13e   : > { %v1300_v46 = vadd.f32 %v1299_v44, %v1235_v20  ;;  %v1295_v47 = vadd.f32 %v1836_v45, %v1230_v4  ;;  %v1840_v32 = vpop.f32.mrb[34].mxu1  ;;  %v1286_v48 = vpop.f32.mrb[35].mxu0 }
 0x13f   : > { %v1311_v35 = vadd.f32 %v1840_v32, %v1246_v21  ;;  %v1287_v49 = vadd.f32 %v1286_v48, %v2289_v52  ;;  %v1302_v51 = vpop.f32.mrb[35].mxu1 }
 0x140   : > { %v1315_v53 = vpack.c.bf16 %v1295_v47, %v1292_v39  ;;  %v1303_v54 = vadd.f32 %v1302_v51, %v1238_v7 }
 0x141   : > { %v1317_v56 = vpack.c.bf16 %v1311_v35, %v1308_v42  ;;  %v1314_v58 = vpack.c.bf16 %v1287_v49, %v1284_v43 }
 0x142   : > { %1642 = vst [vmem:[%s182_s23 + $0x8] sm:$0xff] %v1315_v53   ;;  %v1316_v50 = vpack.c.bf16 %v1303_v54, %v1300_v46  ;;  %v1356_v61 = vunpack.c.l.bf16 %v1315_v53  ;;  %v1357_v55 = vunpack.c.h.bf16 %v1315_v53 }
 0x143   : > { %1644 = vst [vmem:[%s182_s23 + $0x18] sm:$0xff] %v1317_v56   ;;  %1626 = vst [vmem:[%s182_s23] sm:$0xff] %v1314_v58   ;;  %v1354_v59 = vunpack.c.l.bf16 %v1314_v58  ;;  %v1355_v60 = vunpack.c.h.bf16 %v1314_v58  ;;  %v1360_v10 = vunpack.c.l.bf16 %v1317_v56  ;;  %v1361_v14 = vunpack.c.h.bf16 %v1317_v56 }
 0x144   : > { %1643 = vst [vmem:[%s182_s23 + $0x10] sm:$0xff] %v1316_v50   ;;  %v1377_v2 = vmul.f32 %v1356_v61, %v1356_v61  ;;  %v1358_v3 = vunpack.c.l.bf16 %v1316_v50  ;;  %v1378_v4 = vmul.f32 %v1357_v55, %v1357_v55  ;;  %v1359_v8 = vunpack.c.h.bf16 %v1316_v50 }
 0x145   : > { %v1362_v62 = vadd.f32 %v1355_v60, %v1354_v59  ;;  %v1375_v63 = vmul.f32 %v1354_v59, %v1354_v59  ;;  %v1376_v0 = vmul.f32 %v1355_v60, %v1355_v60  ;;  %v1381_v17 = vmul.f32 %v1360_v10, %v1360_v10 }
 0x146   : > { %v1379_v11 = vmul.f32 %v1358_v3, %v1358_v3  ;;  %v1380_v15 = vmul.f32 %v1359_v8, %v1359_v8  ;;  %v1382_v22 = vmul.f32 %v1361_v14, %v1361_v14 }
 0x147   : > { %v1363_v1 = vadd.f32 %v1362_v62, %v1356_v61  ;;  %v1383_v52 = vadd.f32 %v1376_v0, %v1375_v63 }
 0x149   : > { %v1364_v57 = vadd.f32 %v1363_v1, %v1357_v55  ;;  %v1384_v6 = vadd.f32 %v1383_v52, %v1377_v2 }
 0x14b   : > { %v1365_v9 = vadd.f32 %v1364_v57, %v1358_v3  ;;  %v1385_v12 = vadd.f32 %v1384_v6, %v1378_v4 }
 0x14d   : > { %v1366_v13 = vadd.f32 %v1365_v9, %v1359_v8  ;;  %v1386_v16 = vadd.f32 %v1385_v12, %v1379_v11 }
 0x14f   : > { %v1367_v5 = vadd.f32 %v1366_v13, %v1360_v10  ;;  %v1387_v18 = vadd.f32 %v1386_v16, %v1380_v15 }
 0x151   : > { %v1368_v20 = vadd.f32 %v1367_v5, %v1361_v14  ;;  %v1388_v7 = vadd.f32 %v1387_v18, %v1381_v17 }
 0x153   : > { %v1369_v23 = vrot.slane %v1368_v20, 4  ;;  %v1389_v24 = vadd.f32 %v1388_v7, %v1382_v22 }
 0x155   : > { %v1370_v25 = vadd.f32 %v1369_v23, %v1368_v20  ;;  %v1390_v26 = vrot.slane %v1389_v24, 4 }
 0x157   : > { %v1371_v27 = vrot.slane %v1370_v25, 2  ;;  %v1391_v28 = vadd.f32 %v1390_v26, %v1389_v24 }
 0x159   : > { %v1372_v29 = vadd.f32 %v1371_v27, %v1370_v25  ;;  %v1392_v30 = vrot.slane %v1391_v28, 2 }
 0x15b   : > { %v1373_v31 = vrot.slane %v1372_v29, 1  ;;  %v1393_v19 = vadd.f32 %v1392_v30, %v1391_v28 }
 0x15d   : > { %v1394_v33 = vrot.slane %v1393_v19, 1  ;;  %v1374_v34 = vadd.f32 %v1373_v31, %v1372_v29 }
 0x15f   : > { %v1395_v36 = vadd.f32 %v1394_v33, %v1393_v19 }
 0x161   : > { %v1397_v37 = vsel %vm1396_vm0, %v1374_v34, %v1395_v36 }
 0x162   : > { %1398 = vst [vmem:[%s187_s26] sm:$0x3] %v1397_v37 }
 0x163 PF: > { %s14_s12 = sadd.s32 1, %s1996_s12  }
 0x164   : > { %p11_p5 = scmp.ge.s32.totalorder %s14_s12, 4  }
 0x166   :  { %13 = sbr.rel (!%p11_p5) target bundleno = 1 (0x1), region = 70 }

// kernel: forward.19
= control target key start
LH: loop header
LB: loop body
LE: loop exit
PB: predicated region body
PF: predicated region fallthrough
CT: control target
= control target key end

     0   :  { %10 = vsyncpa [#allocation3], 0  ;;  %s2700_s0 = inlined_call_operand.vmem [shape: bf16[128,1152], index: 0, kind: input, shape index: {}]   ;;  %s2701_s1 = inlined_call_operand.vmem [shape: bf16[1152,128], index: 1, kind: input, shape index: {}]   ;;  %s2702_s2 = inlined_call_operand.vmem [shape: f32[1,128], index: 2, kind: input, shape index: {}]   ;;  %s2703_s3 = inlined_call_operand.vmem [shape: bf16[128,128], index: 3, kind: input, shape index: {}]   ;;  %s2704_s4 = inlined_call_operand.vmem [shape: f32[128,1], index: 4, kind: input, shape index: {}]   ;;  %s2705_s5 = inlined_call_operand.hbm [shape: bf16[128,128], index: 5, kind: output, shape index: {}]  }
   0x1   :  { %12 = vsyncpa [#allocation3 + $0x1], 0  ;;  %s2289_s18 = smov 0   ;;  %s2291_s19 = smov 0  }
   0x2   :  { %s2293_s20 = smov 0   ;;  %s2295_s21 = smov 0  }
   0x3 LB: > { %s2310_s22 = sadd.s32 4294967295, %s2253_s21   ;;  %s1626_s23 = sadd.s32 4294967294, %s2253_s21   ;;  %s2253_s21 = sphi %s2295_s21, %s2711_s21   ;;  %s2249_s20 = sphi %s2293_s20, %s2710_s20   ;;  %s2245_s19 = sphi %s2291_s19, %s2709_s19   ;;  %s2241_s18 = sphi %s2289_s18, %s2708_s18  }
   0x4   : > { %s2314_s24 = sadd.s32 1, %s2253_s21   ;;  %s145_s25 = sadd.s32 1, %s2249_s20 }
   0x5   : > { %s142_s26 = ssub.s32 %s2253_s21, %s2314_s24  ;;  %p155_p0 = scmp.ne.s32.totalorder %s2249_s20, %s2245_s19 }
   0x6   : > { %p143_p1 = scmp.eq.s32.totalorder %s142_s26, 0  ;;  %p156_p2 = scmp.eq.s32.totalorder %s2310_s22, 1 }
   0x7   : > { %p161_p3 = scmp.ne.s32.totalorder %s2245_s19, %s2241_s18  ;;  %p162_p4 = scmp.eq.s32.totalorder %s1626_s23, 1 }
   0x8   : > { %s2325_s27 = scalar_select %p143_p1, %s2249_s20, %s145_s25  }
   0x9   : > { %p2327_p5 = por %p156_p2, %p155_p0  ;;  %p2331_p6 = por %p162_p4, %p161_p3 }
   0xa   : > { %p1629_p7 = scmp.ge.s32.totalorder %s2253_s21, 1  ;;  %p214_p8 = scmp.lt.s32.totalorder %s2253_s21, 3 }
   0xc   : > { %p215_p9 = pnand %p1629_p7, %p214_p8 }
   0xd   : > { %v2067_v0 = vld [vmem:[%s2701_s1 + $0x40] sm:$0xff] (!%p215_p9)   ;;  %v2255_v4 = vmov (!%p215_p9), 0   ;;  %v2071_v5 = vld [vmem:[%s2701_s1 + $0x48] sm:$0xff] (!%p215_p9)   ;;  %v2075_v9 = vld [vmem:[%s2701_s1 + $0x50] sm:$0xff] (!%p215_p9)   ;;  %s1631_s25 = sshll.u32 (!%p215_p9), %s2310_s22, 3  ;;  %s1767_s23 = sshll.u32 (!%p215_p9), %s2310_s22, 9 }
   0xe   : > { %218 = sbr.rel (%p215_p9) target bundleno = 351 (0x15f), region = 40  ;;  %v2068_v1 = vld [vmem:[%s2701_s1 + $0xc0] sm:$0xff] (!%p215_p9)   ;;  %1810 = vmatprep.subr.bf16.mxu0 (!%p215_p9), %v2067_v0  ;;  %2066 = vset.pattern.permute.xlu1 (!%p215_p9), %v2255_v4  ;;  %v2072_v6 = vld [vmem:[%s2701_s1 + $0xc8] sm:$0xff] (!%p215_p9)   ;;  %v2076_v10 = vld [vmem:[%s2701_s1 + $0xd0] sm:$0xff] (!%p215_p9)   ;;  %p254_p10 = scmp.lt.s32.totalorder (!%p215_p9), %s1631_s25, 15 }
   0xf   : > { %v2069_v2 = vld [vmem:[%s2701_s1] sm:$0xff] (!%p215_p9)   ;;  %1850 = vmatprep.subr.bf16.mxu1 (!%p215_p9), %v2068_v1  ;;  %2065 = vset.pattern.permute.xlu0 (!%p215_p9), %v2255_v4  ;;  %v2073_v7 = vld [vmem:[%s2701_s1 + $0x8] sm:$0xff] (!%p215_p9)   ;;  %v2077_v11 = vld [vmem:[%s2701_s1 + $0x10] sm:$0xff] (!%p215_p9)   ;;  %s2653_s9 = scalar_lea.hbm (!%p215_p9), %s2705_s5, %s1767_s23  ;;  %s2256_s12 = smov (!%p215_p9), [#allocation2]  }
  0x10   : > { %v2070_v3 = vld [vmem:[%s2701_s1 + $0x80] sm:$0xff] (!%p215_p9)   ;;  %1811 = vmatpush3.bf16.msra.mxu0 (!%p215_p9), %v2069_v2  ;;  %v2074_v8 = vld [vmem:[%s2701_s1 + $0x88] sm:$0xff] (!%p215_p9)   ;;  %v2078_v12 = vld [vmem:[%s2701_s1 + $0x90] sm:$0xff] (!%p215_p9)  }
  0x11   : > { %1851 = vmatpush3.bf16.msra.mxu1 (!%p215_p9), %v2070_v3  ;;  %1812 = vmatprep.subr.bf16.mxu0 (!%p215_p9), %v2071_v5  ;;  %v2079_v13 = vld [vmem:[%s2701_s1 + $0x58] sm:$0xff] (!%p215_p9)   ;;  %v2083_v17 = vld [vmem:[%s2701_s1 + $0x60] sm:$0xff] (!%p215_p9)   ;;  %v2087_v21 = vld [vmem:[%s2701_s1 + $0x68] sm:$0xff] (!%p215_p9)  }
  0x12   : > { %1852 = vmatprep.subr.bf16.mxu1 (!%p215_p9), %v2072_v6  ;;  %v2080_v14 = vld [vmem:[%s2701_s1 + $0xd8] sm:$0xff] (!%p215_p9)   ;;  %v2084_v18 = vld [vmem:[%s2701_s1 + $0xe0] sm:$0xff] (!%p215_p9)   ;;  %v2088_v22 = vld [vmem:[%s2701_s1 + $0xe8] sm:$0xff] (!%p215_p9)  }
  0x13   : > { %v2081_v15 = vld [vmem:[%s2701_s1 + $0x18] sm:$0xff] (!%p215_p9)   ;;  %v2085_v19 = vld [vmem:[%s2701_s1 + $0x20] sm:$0xff] (!%p215_p9)   ;;  %v2089_v23 = vld [vmem:[%s2701_s1 + $0x28] sm:$0xff] (!%p215_p9)  }
  0x14   : > { %1813 = vmatpush3.bf16.msra.mxu0 (!%p215_p9), %v2073_v7  ;;  %v2082_v16 = vld [vmem:[%s2701_s1 + $0x98] sm:$0xff] (!%p215_p9)   ;;  %v2086_v20 = vld [vmem:[%s2701_s1 + $0xa0] sm:$0xff] (!%p215_p9)   ;;  %v2090_v24 = vld [vmem:[%s2701_s1 + $0xa8] sm:$0xff] (!%p215_p9)  }
  0x15   : > { %1853 = vmatpush3.bf16.msra.mxu1 %v2074_v8  ;;  %1814 = vmatprep.subr.bf16.mxu0 %v2075_v9  ;;  %s2713_s25 = smov (!%p254_p10, %s1631_s25), 15  ;;  %v2091_v25 = vld [vmem:[%s2701_s1 + $0x70] sm:$0xff]   ;;  %v2095_v29 = vld [vmem:[%s2701_s1 + $0x78] sm:$0xff]   ;;  %v2105_v37 = vld [vmem:[%s2701_s1 + $0x140] sm:$0xff]  }
  0x16   : > { %1854 = vmatprep.subr.bf16.mxu1 %v2076_v10  ;;  %v2092_v26 = vld [vmem:[%s2701_s1 + $0xf0] sm:$0xff]   ;;  %s2022_s11 = smul.u32 36, %s2713_s25  ;;  %v2096_v30 = vld [vmem:[%s2701_s1 + $0xf8] sm:$0xff]   ;;  %v2106_v38 = vld [vmem:[%s2701_s1 + $0x1c0] sm:$0xff]   ;;  %s1636_s16 = sshll.u32 %s2713_s25, 3 }
  0x17   : > { %v2093_v27 = vld [vmem:[%s2701_s1 + $0x30] sm:$0xff]   ;;  %v2097_v31 = vld [vmem:[%s2701_s1 + $0x38] sm:$0xff]   ;;  %v2107_v39 = vld [vmem:[%s2701_s1 + $0x100] sm:$0xff]   ;;  %s2590_s6 = scalar_lea.vmem %s2704_s4, %s1636_s16 }
  0x18   : > { %1815 = vmatpush3.bf16.msra.mxu0 %v2077_v11  ;;  %v2094_v28 = vld [vmem:[%s2701_s1 + $0xb0] sm:$0xff]   ;;  %s2434_s7 = scalar_lea.vmem %s2700_s0, %s2022_s11  ;;  %v2098_v32 = vld [vmem:[%s2701_s1 + $0xb8] sm:$0xff]   ;;  %v2108_v40 = vld [vmem:[%s2701_s1 + $0x180] sm:$0xff]   ;;  %s2195_s11 = sshll.u32 %s2256_s12, 4  ;;  %s2196_s11 = int_to_ptr.vmem [resolvable:$false] %s2195_s11 }
  0x19   : > { %1855 = vmatpush3.bf16.msra.mxu1 %v2078_v12  ;;  %1816 = vmatprep.subr.bf16.mxu0 %v2079_v13  ;;  %v2099_v33 = vld [vmem:[%s2434_s7] ss:$36 sps:$4 sm:$0xff]   ;;  %v2102_v35 = vld [vmem:[%s2434_s7 + $0x8] ss:$36 sps:$4 sm:$0xff]   ;;  %v2115_v46 = vld [vmem:[%s2434_s7 + $0x54] ss:$36 sps:$4 sm:$0xff]  }
  0x1a   : > { %1856 = vmatprep.subr.bf16.mxu1 %v2080_v14  ;;  %v2101_v34 = vld [vmem:[%s2434_s7 + $0x4] ss:$36 sps:$4 sm:$0xff]   ;;  %v2104_v36 = vld [vmem:[%s2434_s7 + $0xc] ss:$36 sps:$4 sm:$0xff]   ;;  %v2123_v53 = vld [vmem:[%s2701_s1 + $0x158] sm:$0xff]   ;;  %s2197_s13 = scalar_lea.vmem %s2196_s11, 1024 }
  0x1b   : > { %1113 = vmatprep.mubr.bf16.mxu0 %v2101_v34  ;;  %1178 = vmatprep.mubr.bf16.mxu1 %v2104_v36  ;;  %v2109_v41 = vld [vmem:[%s2701_s1 + $0x148] sm:$0xff]   ;;  %v2118_v48 = vld [vmem:[%s2434_s7 + $0x50] ss:$36 sps:$4 sm:$0xff]   ;;  %v2124_v54 = vld [vmem:[%s2701_s1 + $0x1d8] sm:$0xff]  }
  0x1c   : > { %1817 = vmatpush3.bf16.msra.mxu0 %v2081_v15  ;;  %v2110_v42 = vld [vmem:[%s2701_s1 + $0x1c8] sm:$0xff]   ;;  %v2119_v49 = vld [vmem:[%s2701_s1 + $0x150] sm:$0xff]   ;;  %v2125_v55 = vld [vmem:[%s2701_s1 + $0x118] sm:$0xff]  }
  0x1d   : > { %1857 = vmatpush3.bf16.msra.mxu1 %v2082_v16  ;;  %1818 = vmatprep.subr.bf16.mxu0 %v2083_v17  ;;  %v2111_v43 = vld [vmem:[%s2701_s1 + $0x108] sm:$0xff]   ;;  %v2120_v50 = vld [vmem:[%s2701_s1 + $0x1d0] sm:$0xff]   ;;  %v2126_v56 = vld [vmem:[%s2701_s1 + $0x198] sm:$0xff]  }
  0x1e   : > { %1858 = vmatprep.subr.bf16.mxu1 %v2084_v18  ;;  %v2112_v44 = vld [vmem:[%s2701_s1 + $0x188] sm:$0xff]   ;;  %v2121_v51 = vld [vmem:[%s2701_s1 + $0x110] sm:$0xff]   ;;  %v2129_v58 = vld [vmem:[%s2434_s7 + $0x9c] ss:$36 sps:$4 sm:$0xff]  }
  0x1f   : > { %v2113_v45 = vld [vmem:[%s2434_s7 + $0x4c] ss:$36 sps:$4 sm:$0xff]   ;;  %v2127_v57 = vld [vmem:[%s2434_s7 + $0x94] ss:$36 sps:$4 sm:$0xff]   ;;  %v2133_v61 = vld [vmem:[%s2701_s1 + $0x160] sm:$0xff]  }
  0x20   : > { %1819 = vmatpush3.bf16.msra.mxu0 %v2085_v19  ;;  %v2117_v47 = vld [vmem:[%s2434_s7 + $0x48] ss:$36 sps:$4 sm:$0xff]   ;;  %v2122_v52 = vld [vmem:[%s2701_s1 + $0x190] sm:$0xff]   ;;  %v2132_v60 = vld [vmem:[%s2434_s7 + $0x98] ss:$36 sps:$4 sm:$0xff]  }
  0x21   : > { %1859 = vmatpush3.bf16.msra.mxu1 %v2086_v20  ;;  %1820 = vmatprep.subr.bf16.mxu0 %v2087_v21  ;;  %v2131_v59 = vld [vmem:[%s2434_s7 + $0x90] ss:$36 sps:$4 sm:$0xff]   ;;  %v2134_v62 = vld [vmem:[%s2701_s1 + $0x1e0] sm:$0xff]   ;;  %v2137_v1 = vld [vmem:[%s2701_s1 + $0x168] sm:$0xff]  }
  0x22   : > { %1860 = vmatprep.subr.bf16.mxu1 %v2088_v22  ;;  %v2135_v63 = vld [vmem:[%s2701_s1 + $0x120] sm:$0xff]   ;;  %v2138_v2 = vld [vmem:[%s2701_s1 + $0x1e8] sm:$0xff]   ;;  %v2145_v7 = vld [vmem:[%s2434_s7 + $0xd8] ss:$36 sps:$4 sm:$0xff]  }
  0x23   : > { %v2136_v0 = vld [vmem:[%s2701_s1 + $0x1a0] sm:$0xff]   ;;  %v2139_v3 = vld [vmem:[%s2701_s1 + $0x128] sm:$0xff]   ;;  %v2147_v9 = vld [vmem:[%s2701_s1 + $0x170] sm:$0xff]  }
  0x24   : > { %1821 = vmatpush3.bf16.msra.mxu0 %v2089_v23  ;;  %v2140_v4 = vld [vmem:[%s2701_s1 + $0x1a8] sm:$0xff]   ;;  %v2141_v5 = vld [vmem:[%s2434_s7 + $0xdc] ss:$36 sps:$4 sm:$0xff]   ;;  %v2148_v10 = vld [vmem:[%s2701_s1 + $0x1f0] sm:$0xff]  }
  0x25   : > { %1861 = vmatpush3.bf16.msra.mxu1 %v2090_v24  ;;  %1822 = vmatprep.subr.bf16.mxu0 %v2091_v25  ;;  %v2143_v6 = vld [vmem:[%s2434_s7 + $0xe4] ss:$36 sps:$4 sm:$0xff]   ;;  %v2149_v11 = vld [vmem:[%s2701_s1 + $0x130] sm:$0xff]   ;;  %v2151_v13 = vld [vmem:[%s2701_s1 + $0x178] sm:$0xff]  }
  0x26   : > { %1862 = vmatprep.subr.bf16.mxu1 %v2092_v26  ;;  %v2146_v8 = vld [vmem:[%s2434_s7 + $0xe0] ss:$36 sps:$4 sm:$0xff]   ;;  %v2150_v12 = vld [vmem:[%s2701_s1 + $0x1b0] sm:$0xff]   ;;  %v2152_v14 = vld [vmem:[%s2701_s1 + $0x1f8] sm:$0xff]  }
  0x27   : > { %v2153_v15 = vld [vmem:[%s2701_s1 + $0x138] sm:$0xff]   ;;  %v2155_v17 = vld [vmem:[%s2434_s7 + $0x10] ss:$36 sps:$4 sm:$0xff]   ;;  %v2161_v21 = vld [vmem:[%s2701_s1 + $0x200] sm:$0xff]  }
  0x28   : > { %1823 = vmatpush3.bf16.msra.mxu0 %v2093_v27  ;;  %v2154_v16 = vld [vmem:[%s2701_s1 + $0x1b8] sm:$0xff]   ;;  %v2162_v22 = vld [vmem:[%s2701_s1 + $0x208] sm:$0xff]   ;;  %v2168_v26 = vld [vmem:[%s2434_s7 + $0x60] ss:$36 sps:$4 sm:$0xff]  }
  0x29   : > { %1863 = vmatpush3.bf16.msra.mxu1 %v2094_v28  ;;  %1824 = vmatprep.subr.bf16.mxu0 %v2095_v29  ;;  %v2157_v18 = vld [vmem:[%s2434_s7 + $0x14] ss:$36 sps:$4 sm:$0xff]   ;;  %v2160_v20 = vld [vmem:[%s2434_s7 + $0x1c] ss:$36 sps:$4 sm:$0xff]   ;;  %v2165_v24 = vld [vmem:[%s2434_s7 + $0x64] ss:$36 sps:$4 sm:$0xff]  }
  0x2a   : > { %1864 = vmatprep.subr.bf16.mxu1 %v2096_v30  ;;  %v2158_v19 = vld [vmem:[%s2434_s7 + $0x18] ss:$36 sps:$4 sm:$0xff]   ;;  %v2169_v27 = vld [vmem:[%s2701_s1 + $0x210] sm:$0xff]   ;;  %v2171_v28 = vld [vmem:[%s2434_s7 + $0xa4] ss:$36 sps:$4 sm:$0xff]  }
  0x2b   : > { %v2163_v23 = vld [vmem:[%s2434_s7 + $0x5c] ss:$36 sps:$4 sm:$0xff]   ;;  %v2173_v29 = vld [vmem:[%s2434_s7 + $0xac] ss:$36 sps:$4 sm:$0xff]  }
  0x2c   : > { %1825 = vmatpush3.bf16.msra.mxu0 %v2097_v31  ;;  %v2167_v25 = vld [vmem:[%s2434_s7 + $0x58] ss:$36 sps:$4 sm:$0xff]   ;;  %v2175_v31 = vld [vmem:[%s2434_s7 + $0xa0] ss:$36 sps:$4 sm:$0xff]   ;;  %v2179_v34 = vld [vmem:[%s2434_s7 + $0xec] ss:$36 sps:$4 sm:$0xff]  }
  0x2d   : > { %1865 = vmatpush3.bf16.msra.mxu1 %v2098_v32  ;;  %1890 = vmatprep.subr.bf16.mxu0 %v2105_v37  ;;  %v2170_v30 = vld [vmem:[%s2701_s1 + $0x218] sm:$0xff]   ;;  %v2176_v32 = vld [vmem:[%s2434_s7 + $0xa8] ss:$36 sps:$4 sm:$0xff]   ;;  %v1432_v37 = vld [vmem:[%s2590_s6 + $0x10] sm:$0xff] }
  0x2e   : > { %1930 = vmatprep.subr.bf16.mxu1 %v2106_v38  ;;  %v2178_v36 = vld [vmem:[%s2701_s1 + $0x228] sm:$0xff]   ;;  %v1430_v38 = vld [vmem:[%s2590_s6] sm:$0xff]  ;;  %1450 = vperm.xlu1 %2066, %v1432_v37  }
  0x2f   : > { %1114 = vmatmul.mubr.bf16.vlgmr.msra.gmra.mrb[0].mxu0 %v2099_v33  ;;  %v2177_v33 = vld [vmem:[%s2701_s1 + $0x220] sm:$0xff]   ;;  %1440 = vperm.xlu0 %2065, %v1430_v38  }
  0x30   : > { %1179 = vmatmul.mubr.bf16.vlgmr.msra.gmra.mrb[0].mxu1 %v2102_v35  ;;  %1891 = vmatpush3.bf16.msra.mxu0 %v2107_v39  ;;  %v2181_v35 = vld [vmem:[%s2434_s7 + $0xf4] ss:$36 sps:$4 sm:$0xff]   ;;  %v2183_v39 = vld [vmem:[%s2434_s7 + $0xe8] ss:$36 sps:$4 sm:$0xff]  }
  0x31   : > { %1931 = vmatpush3.bf16.msra.mxu1 %v2108_v40  ;;  %1892 = vmatprep.subr.bf16.mxu0 %v2109_v41  ;;  %v2185_v40 = vld [vmem:[%s2701_s1 + $0x230] sm:$0xff]  }
  0x32   : > { %1932 = vmatprep.subr.bf16.mxu1 %v2110_v42  ;;  %1121 = vmatprep.mubr.bf16.mxu0 %v2113_v45  ;;  %v2184_v41 = vld [vmem:[%s2434_s7 + $0xf0] ss:$36 sps:$4 sm:$0xff]   ;;  %v2187_v42 = vld [vmem:[%s2434_s7 + $0x20] ss:$36 sps:$4 sm:$0xff]   ;;  %v1433_v45 = vld [vmem:[%s2590_s6 + $0x18] sm:$0xff] }
  0x33   : > { %1186 = vmatprep.mubr.bf16.mxu1 %v2115_v46  ;;  %v1431_v46 = vld [vmem:[%s2590_s6 + $0x8] sm:$0xff]  ;;  %1455 = vperm.xlu1 %2066, %v1433_v45  }
  0x34   : > { %1893 = vmatpush3.bf16.msra.mxu0 %v2111_v43  ;;  %v2188_v43 = vld [vmem:[%s2434_s7 + $0xb0] ss:$36 sps:$4 sm:$0xff]   ;;  %1445 = vperm.xlu0 %2065, %v1431_v46  }
  0x35   : > { %1933 = vmatpush3.bf16.msra.mxu1 %v2112_v44  ;;  %1894 = vmatprep.subr.bf16.mxu0 %v2119_v49  ;;  %v2186_v44 = vld [vmem:[%s2701_s1 + $0x238] sm:$0xff]  }
  0x36   : > { %1934 = vmatprep.subr.bf16.mxu1 %v2120_v50  ;;  %v2190_v49 = vld [vmem:[%s2434_s7 + $0xf8] ss:$36 sps:$4 sm:$0xff]   ;;  %v1434_v50 = vld [vmem:[%s2590_s6 + $0x20] sm:$0xff] }
  0x37   : > { %1122 = vmatmul.mubr.bf16.gmra.mrb[4].mxu0 %v2117_v47  ;;  %v2189_v47 = vld [vmem:[%s2434_s7 + $0x68] ss:$36 sps:$4 sm:$0xff]   ;;  %s1634_s7 = sshll.u32 %s2713_s25, 2  ;;  %s250_s25 = sand.u32 1, %s2245_s19  }
  0x38   : > { %1187 = vmatmul.mubr.bf16.gmra.mrb[4].mxu1 %v2118_v48  ;;  %1895 = vmatpush3.bf16.msra.mxu0 %v2121_v51  ;;  %v1435_v48 = vld [vmem:[%s2590_s6 + $0x28] sm:$0xff]  ;;  %v1437_v51 = vld [vmem:[%s2590_s6 + $0x38] sm:$0xff]  ;;  %s264_s16 = scalar_lea.vmem %s2703_s3, %s1634_s7  ;;  %s2641_s17 = sshll.u32 %s250_s25, 5 }
  0x39   : > { %1935 = vmatpush3.bf16.msra.mxu1 %v2122_v52  ;;  %1896 = vmatprep.subr.bf16.mxu0 %v2123_v53  ;;  %v1436_v52 = vld [vmem:[%s2590_s6 + $0x30] sm:$0xff]  ;;  %s252_s26 = scalar_lea.vmem [#allocation2], %s2641_s17  ;;  %s2659_s22 = scalar_lea.sflag [#allocation3], %s250_s25 }
  0x3a   : > { %1936 = vmatprep.subr.bf16.mxu1 %v2124_v54  ;;  %1129 = vmatprep.mubr.bf16.mxu0 %v2127_v57  ;;  %s1540_s30 = sshll.u32 %s252_s26, 4  ;;  %s2655_s30 = int_to_ptr.vmem [resolvable:$true] %s1540_s30 }
  0x3b   : > { %1194 = vmatprep.mubr.bf16.mxu1 %v2129_v58  ;;  %1465 = vperm.xlu1 %2066, %v1435_v48   ;;  %s2191_s10 = scalar_lea.vmem %s2655_s30, 512  ;;  %p2198_p0 = scmp.lt.s32.totalorder %s2655_s30, %s2196_s11 }
  0x3c   : > { %1897 = vmatpush3.bf16.msra.mxu0 %v2125_v55  ;;  %1460 = vperm.xlu0 %2065, %v1434_v50   ;;  %v1637_v55 = vld [vmem:[%s2702_s2] ss:$0 sm:$0xff]  ;;  %p2192_p11 = scmp.ne.s32.totalorder %s2655_s30, %s2191_s10  ;;  %p2199_p1 = scmp.lt.s32.totalorder %s2197_s13, %s2191_s10 }
  0x3d   : > { %1937 = vmatpush3.bf16.msra.mxu1 %v2126_v56  ;;  %1898 = vmatprep.subr.bf16.mxu0 %v2133_v61 }
  0x3e   : > { %1938 = vmatprep.subr.bf16.mxu1 %v2134_v62  ;;  %p2193_p12 = pnand %p2192_p11, %p2327_p5  ;;  %p2200_p2 = por %p2199_p1, %p2198_p0 }
  0x3f   : > { %1130 = vmatmul.mubr.bf16.gmra.mrb[8].mxu0 %v2131_v59  ;;  %1475 = vperm.xlu1 %2066, %v1437_v51  }
  0x40   : > { %1195 = vmatmul.mubr.bf16.gmra.mrb[8].mxu1 %v2132_v60  ;;  %1899 = vmatpush3.bf16.msra.mxu0 %v2135_v63  ;;  %p2194_p13 = pneg %p2193_p12 }
  0x41   : > { %1939 = vmatpush3.bf16.msra.mxu1 %v2136_v0  ;;  %1900 = vmatprep.subr.bf16.mxu0 %v2137_v1 }
  0x42   : > { %1940 = vmatprep.subr.bf16.mxu1 %v2138_v2  ;;  %1137 = vmatprep.mubr.bf16.mxu0 %v2141_v5  ;;  %p2201_p3 = pnand %p2200_p2, %p2194_p13 }
  0x43   : > { %1202 = vmatprep.mubr.bf16.mxu1 %v2143_v6  ;;  %1470 = vperm.xlu0 %2065, %v1436_v52  }
  0x44   : > { %1901 = vmatpush3.bf16.msra.mxu0 %v2139_v3 }
  0x45   : > { %1941 = vmatpush3.bf16.msra.mxu1 %v2140_v4  ;;  %1902 = vmatprep.subr.bf16.mxu0 %v2147_v9 }
  0x46   : > { %1942 = vmatprep.subr.bf16.mxu1 %v2148_v10 }
  0x47   : > { %1138 = vmatmul.mubr.bf16.gmra.mrb[12].mxu0 %v2145_v7 }
  0x48   : > { %1203 = vmatmul.mubr.bf16.gmra.mrb[12].mxu1 %v2146_v8  ;;  %1903 = vmatpush3.bf16.msra.mxu0 %v2149_v11 }
  0x49   : > { %1943 = vmatpush3.bf16.msra.mxu1 %v2150_v12  ;;  %1904 = vmatprep.subr.bf16.mxu0 %v2151_v13 }
  0x4a   : > { %1944 = vmatprep.subr.bf16.mxu1 %v2152_v14  ;;  %1243 = vmatprep.mubr.bf16.mxu0 %v2157_v18 }
  0x4b   : > { %1308 = vmatprep.mubr.bf16.mxu1 %v2160_v20 }
  0x4c   : > { %1905 = vmatpush3.bf16.msra.mxu0 %v2153_v15 }
  0x4d   : > { %1945 = vmatpush3.bf16.msra.mxu1 %v2154_v16  ;;  %1982 = vmatprep.subr.bf16.mxu0 %v2161_v21 }
  0x4e   : > { %2006 = vmatprep.subr.bf16.mxu1 %v2161_v21 }
  0x4f   : > { %1244 = vmatmul.mubr.bf16.vlgmr.msra.gmra.mrb[16].mxu0 %v2155_v17 }
  0x50   : > { %1309 = vmatmul.mubr.bf16.vlgmr.msra.gmra.mrb[16].mxu1 %v2158_v19  ;;  %1983 = vmatpush3.bf16.msra.mxu0 %v2161_v21 }
  0x51   : > { %2014 = vmatpush3.bf16.msra.mxu1 %v2161_v21  ;;  %1984 = vmatprep.subr.bf16.mxu0 %v2162_v22 }
  0x52   : > { %2007 = vmatprep.subr.bf16.mxu1 %v2162_v22  ;;  %1251 = vmatprep.mubr.bf16.mxu0 %v2163_v23 }
  0x53   : > { %1316 = vmatprep.mubr.bf16.mxu1 %v2165_v24 }
  0x54   : > { %1985 = vmatpush3.bf16.msra.mxu0 %v2162_v22 }
  0x55   : > { %2015 = vmatpush3.bf16.msra.mxu1 %v2162_v22  ;;  %1986 = vmatprep.subr.bf16.mxu0 %v2169_v27 }
  0x56   : > { %2008 = vmatprep.subr.bf16.mxu1 %v2169_v27 }
  0x57   : > { %1252 = vmatmul.mubr.bf16.gmra.mrb[20].mxu0 %v2167_v25 }
  0x58   : > { %1317 = vmatmul.mubr.bf16.gmra.mrb[20].mxu1 %v2168_v26  ;;  %1259 = vmatprep.mubr.bf16.mxu0 %v2171_v28 }
  0x59   : > { %1987 = vmatpush3.bf16.msra.mxu0 %v2169_v27  ;;  %1324 = vmatprep.mubr.bf16.mxu1 %v2173_v29 }
  0x5a   : > { %2016 = vmatpush3.bf16.msra.mxu1 %v2169_v27  ;;  %1988 = vmatprep.subr.bf16.mxu0 %v2170_v30 }
  0x5b   : > { %2009 = vmatprep.subr.bf16.mxu1 %v2170_v30 }
  0x5d   : > { %1989 = vmatpush3.bf16.msra.mxu0 %v2170_v30 }
  0x5e   : > { %2017 = vmatpush3.bf16.msra.mxu1 %v2170_v30  ;;  %1990 = vmatprep.subr.bf16.mxu0 %v2177_v33 }
  0x5f   : > { %1260 = vmatmul.mubr.bf16.gmra.mrb[24].mxu0 %v2175_v31  ;;  %2010 = vmatprep.subr.bf16.mxu1 %v2177_v33 }
  0x60   : > { %1325 = vmatmul.mubr.bf16.gmra.mrb[24].mxu1 %v2176_v32  ;;  %1267 = vmatprep.mubr.bf16.mxu0 %v2179_v34 }
  0x61   : > { %1991 = vmatpush3.bf16.msra.mxu0 %v2177_v33  ;;  %1332 = vmatprep.mubr.bf16.mxu1 %v2181_v35 }
  0x62   : > { %2018 = vmatpush3.bf16.msra.mxu1 %v2177_v33  ;;  %1992 = vmatprep.subr.bf16.mxu0 %v2178_v36 }
  0x63   : > { %2011 = vmatprep.subr.bf16.mxu1 %v2178_v36 }
  0x65   : > { %1993 = vmatpush3.bf16.msra.mxu0 %v2178_v36 }
  0x66   : > { %2019 = vmatpush3.bf16.msra.mxu1 %v2178_v36  ;;  %1994 = vmatprep.subr.bf16.mxu0 %v2185_v40 }
  0x67   : > { %1268 = vmatmul.mubr.bf16.gmra.mrb[28].mxu0 %v2183_v39  ;;  %2012 = vmatprep.subr.bf16.mxu1 %v2185_v40 }
  0x68   : > { %1333 = vmatmul.mubr.bf16.gmra.mrb[28].mxu1 %v2184_v41  ;;  %1998 = vmatprep.mubr.bf16.mxu0 %v2187_v42 }
  0x69   : > { %1995 = vmatpush3.bf16.msra.mxu0 %v2185_v40  ;;  %2002 = vmatprep.mubr.bf16.mxu1 %v2188_v43 }
  0x6a   : > { %2020 = vmatpush3.bf16.msra.mxu1 %v2185_v40  ;;  %1996 = vmatprep.subr.bf16.mxu0 %v2186_v44 }
  0x6b   : > { %2013 = vmatprep.subr.bf16.mxu1 %v2186_v44 }
  0x6d   : > { %1997 = vmatpush3.bf16.msra.mxu0 %v2186_v44 }
  0x6e   : > { %2021 = vmatpush3.bf16.msra.mxu1 %v2186_v44 }
  0x70   : > { %1999 = vmatmul.mubr.bf16.vlgmr.msra.gmra.mrb[32].mxu0 %v2189_v47 }
  0x71   : > { %2003 = vmatmul.mubr.bf16.vlgmr.msra.gmra.mrb[32].mxu1 %v2190_v49 }
 0x102   : > { %v1826_v53 = vpop.f32.mrb[0].mxu0 }
 0x103   : > { %v1866_v54 = vpop.f32.mrb[0].mxu1  ;;  %v1827_v56 = vpop.f32.mrb[1].mxu0 }
 0x104   : > { %v1828_v57 = vadd.f32 %v1827_v56, %v1826_v53  ;;  %v1867_v58 = vpop.f32.mrb[1].mxu1  ;;  %v1829_v59 = vpop.f32.mrb[2].mxu0 }
 0x105   : > { %v1868_v60 = vadd.f32 %v1867_v58, %v1866_v54  ;;  %v1869_v61 = vpop.f32.mrb[2].mxu1  ;;  %v1830_v62 = vpop.f32.mrb[3].mxu0 }
 0x106   : > { %v1116_v63 = vadd.f32 %v1828_v57, %v1637_v55  ;;  %v1831_v0 = vadd.f32 %v1830_v62, %v1829_v59  ;;  %v1870_v1 = vpop.f32.mrb[3].mxu1 }
 0x107   : > { %v1871_v2 = vadd.f32 %v1870_v1, %v1869_v61 }
 0x108   : > { %v1181_v3 = vadd.f32 %v1868_v60, %v1116_v63  ;;  %v1119_v4 = vadd.f32 %v1831_v0, %v1637_v55 }
 0x10a   : > { %v1184_v5 = vadd.f32 %v1871_v2, %v1119_v4  ;;  %v1832_v6 = vpop.f32.mrb[4].mxu0 }
 0x10b   : > { %v1872_v7 = vpop.f32.mrb[4].mxu1  ;;  %v1833_v8 = vpop.f32.mrb[5].mxu0 }
 0x10c   : > { %v1834_v9 = vadd.f32 %v1833_v8, %v1832_v6  ;;  %v1873_v10 = vpop.f32.mrb[5].mxu1  ;;  %v1835_v11 = vpop.f32.mrb[6].mxu0 }
 0x10d   : > { %v1874_v12 = vadd.f32 %v1873_v10, %v1872_v7  ;;  %v1875_v13 = vpop.f32.mrb[6].mxu1  ;;  %v1836_v14 = vpop.f32.mrb[7].mxu0 }
 0x10e   : > { %v1124_v15 = vadd.f32 %v1834_v9, %v1637_v55  ;;  %v1837_v16 = vadd.f32 %v1836_v14, %v1835_v11  ;;  %v1876_v17 = vpop.f32.mrb[7].mxu1 }
 0x10f   : > { %v1877_v18 = vadd.f32 %v1876_v17, %v1875_v13 }
 0x110   : > { %v1189_v19 = vadd.f32 %v1874_v12, %v1124_v15  ;;  %v1127_v20 = vadd.f32 %v1837_v16, %v1637_v55 }
 0x112   : > { %v1192_v21 = vadd.f32 %v1877_v18, %v1127_v20  ;;  %v1838_v22 = vpop.f32.mrb[8].mxu0 }
 0x113   : > { %v1878_v23 = vpop.f32.mrb[8].mxu1  ;;  %v1839_v24 = vpop.f32.mrb[9].mxu0 }
 0x114   : > { %v1840_v25 = vadd.f32 %v1839_v24, %v1838_v22  ;;  %v1879_v26 = vpop.f32.mrb[9].mxu1  ;;  %v1841_v27 = vpop.f32.mrb[10].mxu0 }
 0x115   : > { %v1880_v28 = vadd.f32 %v1879_v26, %v1878_v23  ;;  %v1881_v29 = vpop.f32.mrb[10].mxu1  ;;  %v1842_v30 = vpop.f32.mrb[11].mxu0 }
 0x116   : > { %v1132_v31 = vadd.f32 %v1840_v25, %v1637_v55  ;;  %v1843_v32 = vadd.f32 %v1842_v30, %v1841_v27  ;;  %v1882_v33 = vpop.f32.mrb[11].mxu1  ;;  %v2627_v25 = vpop.permute.xlu1 %1450 }
 0x117   : > { %v1883_v34 = vadd.f32 %v1882_v33, %v1881_v29 }
 0x118   : > { %v1197_v35 = vadd.f32 %v1880_v28, %v1132_v31  ;;  %v1135_v36 = vadd.f32 %v1843_v32, %v1637_v55 }
 0x11a   : > { %v2615_v37 = vadd.f32 %v1883_v34, %v1135_v36  ;;  %v1844_v38 = vpop.f32.mrb[12].mxu0 }
 0x11b   : > { %v1884_v39 = vpop.f32.mrb[12].mxu1  ;;  %v1845_v40 = vpop.f32.mrb[13].mxu0 }
 0x11c   : > { %v1885_v41 = vpop.f32.mrb[13].mxu1  ;;  %v1846_v42 = vadd.f32 %v1845_v40, %v1844_v38  ;;  %v1847_v44 = vpop.f32.mrb[14].mxu0 }
 0x11d   : > { %v1886_v43 = vadd.f32 %v1885_v41, %v1884_v39  ;;  %v1887_v45 = vpop.f32.mrb[14].mxu1  ;;  %v1848_v46 = vpop.f32.mrb[15].mxu0 }
 0x11e   : > { %v1888_v47 = vpop.f32.mrb[15].mxu1  ;;  %v1140_v48 = vadd.f32 %v1846_v42, %v1637_v55  ;;  %v1849_v49 = vadd.f32 %v1848_v46, %v1847_v44 }
 0x11f   : > { %v1889_v50 = vadd.f32 %v1888_v47, %v1887_v45 }
 0x120   : > { %v2617_v51 = vadd.f32 %v1886_v43, %v1140_v48  ;;  %v1143_v52 = vadd.f32 %v1849_v49, %v1637_v55  ;;  %v1456_v43 = vpop.permute.xlu1 %1455 }
 0x122   : > { %v2619_v53 = vadd.f32 %v1889_v50, %v1143_v52  ;;  %v1906_v54 = vpop.f32.mrb[16].mxu0 }
 0x123   : > { %v1907_v56 = vpop.f32.mrb[17].mxu0  ;;  %v1946_v57 = vpop.f32.mrb[16].mxu1 }
 0x124   : > { %v1908_v58 = vadd.f32 %v1907_v56, %v1906_v54  ;;  %v1909_v59 = vpop.f32.mrb[18].mxu0  ;;  %v1947_v60 = vpop.f32.mrb[17].mxu1 }
 0x125   : > { %v1910_v61 = vpop.f32.mrb[19].mxu0  ;;  %v1948_v63 = vadd.f32 %v1947_v60, %v1946_v57  ;;  %v1949_v0 = vpop.f32.mrb[18].mxu1 }
 0x126   : > { %v1246_v62 = vadd.f32 %v1908_v58, %v1181_v3  ;;  %v1911_v1 = vadd.f32 %v1910_v61, %v1909_v59  ;;  %v1950_v2 = vpop.f32.mrb[19].mxu1  ;;  %v1804_v59 = vld [vmem:[%s264_s16 + $0x8] sm:$0xff]   ;;  %v1806_v61 = vld [vmem:[%s264_s16 + $0x18] sm:$0xff]  }
 0x127   : > { %v1951_v6 = vadd.f32 %v1950_v2, %v1949_v0  ;;  %v1774_v2 = vunpack.c.l.bf16 %v1804_v59 }
 0x128   : > { %v1249_v4 = vadd.f32 %v1911_v1, %v1184_v5  ;;  %v2621_v7 = vadd.f32 %v1948_v63, %v1246_v62  ;;  %v1769_v62 = vld [vmem:[%s264_s16] sm:$0xff]   ;;  %v1805_v63 = vld [vmem:[%s264_s16 + $0x10] sm:$0xff]   ;;  %v1466_v1 = vpop.permute.xlu1 %1465 }
 0x12a   : > { %v1912_v8 = vpop.f32.mrb[20].mxu0  ;;  %v2623_v55 = vadd.f32 %v1951_v6, %v1249_v4 }
 0x12b   : > { %v1913_v9 = vpop.f32.mrb[21].mxu0  ;;  %v1952_v10 = vpop.f32.mrb[20].mxu1 }
 0x12c   : > { %v1914_v11 = vadd.f32 %v1913_v9, %v1912_v8  ;;  %v1915_v12 = vpop.f32.mrb[22].mxu0  ;;  %v1953_v13 = vpop.f32.mrb[21].mxu1  ;;  %v1770_v8 = vunpack.c.l.bf16 %v1769_v62 }
 0x12d   : > { %v1916_v14 = vpop.f32.mrb[23].mxu0  ;;  %v1954_v16 = vadd.f32 %v1953_v13, %v1952_v10  ;;  %v1955_v3 = vpop.f32.mrb[22].mxu1 }
 0x12e   : > { %v1254_v15 = vadd.f32 %v1914_v11, %v1189_v19  ;;  %v1917_v17 = vadd.f32 %v1916_v14, %v1915_v12  ;;  %v1956_v18 = vpop.f32.mrb[23].mxu1  ;;  %v1778_v12 = vunpack.c.l.bf16 %v1805_v63 }
 0x12f   : > { %v1957_v22 = vadd.f32 %v1956_v18, %v1955_v3  ;;  %v1783_v3 = vunpack.c.h.bf16 %v1806_v61 }
 0x130   : > { %v1257_v20 = vadd.f32 %v1917_v17, %v1192_v21  ;;  %v1319_v5 = vadd.f32 %v1954_v16, %v1254_v15  ;;  %v2629_v21 = vpop.permute.xlu0 %1440  ;;  %v1771_v17 = vunpack.c.h.bf16 %v1769_v62 }
 0x132   : > { %v1918_v23 = vpop.f32.mrb[24].mxu0  ;;  %v2625_v24 = vadd.f32 %v1957_v22, %v1257_v20 }
 0x133   : > { %v1919_v26 = vpop.f32.mrb[25].mxu0  ;;  %v1958_v27 = vpop.f32.mrb[24].mxu1 }
 0x134   : > { %v1920_v28 = vadd.f32 %v1919_v26, %v1918_v23  ;;  %v1921_v29 = vpop.f32.mrb[26].mxu0  ;;  %v1959_v30 = vpop.f32.mrb[25].mxu1  ;;  %v1779_v26 = vunpack.c.h.bf16 %v1805_v63 }
 0x135   : > { %v1922_v31 = vpop.f32.mrb[27].mxu0  ;;  %v1960_v32 = vadd.f32 %v1959_v30, %v1958_v27  ;;  %v1961_v33 = vpop.f32.mrb[26].mxu1 }
 0x136   : > { %v1262_v19 = vadd.f32 %v1920_v28, %v1197_v35  ;;  %v1923_v34 = vadd.f32 %v1922_v31, %v1921_v29  ;;  %v1962_v36 = vpop.f32.mrb[27].mxu1  ;;  %v1446_v49 = vpop.permute.xlu0 %1445 }
 0x137   : > { %v1963_v39 = vadd.f32 %v1962_v36, %v1961_v33  ;;  %v1476_v36 = vpop.permute.xlu1 %1475 }
 0x138   : > { %v1265_v38 = vadd.f32 %v1923_v34, %v2615_v37  ;;  %v1327_v40 = vadd.f32 %v1960_v32, %v1262_v19 }
 0x13a   : > { %v1924_v41 = vpop.f32.mrb[28].mxu0  ;;  %v1330_v42 = vadd.f32 %v1963_v39, %v1265_v38  ;;  %v1461_v4 = vpop.permute.xlu0 %1460 }
 0x13b   : > { %v1925_v44 = vpop.f32.mrb[29].mxu0  ;;  %v1964_v45 = vpop.f32.mrb[28].mxu1 }
 0x13c   : > { %v1926_v46 = vadd.f32 %v1925_v44, %v1924_v41  ;;  %v1927_v47 = vpop.f32.mrb[30].mxu0  ;;  %v1965_v48 = vpop.f32.mrb[29].mxu1 }
 0x13d   : > { %v1928_v35 = vpop.f32.mrb[31].mxu0  ;;  %v1966_v50 = vadd.f32 %v1965_v48, %v1964_v45  ;;  %v1967_v52 = vpop.f32.mrb[30].mxu1 }
 0x13e   : > { %v1270_v37 = vadd.f32 %v1926_v46, %v2617_v51  ;;  %v1929_v54 = vadd.f32 %v1928_v35, %v1927_v47  ;;  %v1968_v56 = vpop.f32.mrb[31].mxu1  ;;  %v1782_v51 = vunpack.c.l.bf16 %v1806_v61  ;;  %v1471_v38 = vpop.permute.xlu0 %1470 }
 0x13f   : > { %v1969_v58 = vadd.f32 %v1968_v56, %v1967_v52 }
 0x140   : > { %v1273_v57 = vadd.f32 %v1929_v54, %v2619_v53  ;;  %v1335_v60 = vadd.f32 %v1966_v50, %v1270_v37  ;;  %v1775_v53 = vunpack.c.h.bf16 %v1804_v59 }
 0x142   : > { %v1338_v0 = vadd.f32 %v1969_v58, %v1273_v57 }
 0x143   : > { %v2000_v6 = vpop.f32.mrb[32].mxu0 }
 0x144   : > { %v1384_v9 = vadd.f32 %v2000_v6, %v1319_v5  ;;  %v2004_v10 = vpop.f32.mrb[32].mxu1  ;;  %v1375_v11 = vpop.f32.mrb[33].mxu0 }
 0x145   : > { %v1400_v13 = vadd.f32 %v2004_v10, %v1335_v60  ;;  %v1376_v14 = vadd.f32 %v1375_v11, %v2621_v7  ;;  %v1391_v15 = vpop.f32.mrb[33].mxu1  ;;  %v2001_v16 = vpop.f32.mrb[34].mxu0 }
 0x146   : > { %v1424_v18 = vadd.f32 %v1774_v2, %v1384_v9  ;;  %v1392_v20 = vadd.f32 %v1391_v15, %v1327_v40  ;;  %v1387_v22 = vadd.f32 %v2001_v16, %v2625_v24  ;;  %v2005_v23 = vpop.f32.mrb[34].mxu1  ;;  %v1378_v5 = vpop.f32.mrb[35].mxu0 }
 0x147   : > { %v1428_v27 = vadd.f32 %v1782_v51, %v1400_v13  ;;  %v1422_v28 = vadd.f32 %v1770_v8, %v1376_v14  ;;  %v1403_v29 = vadd.f32 %v2005_v23, %v1338_v0  ;;  %v1379_v30 = vadd.f32 %v1378_v5, %v2623_v55  ;;  %v1394_v31 = vpop.f32.mrb[35].mxu1 }
 0x148   : > { %v1426_v7 = vadd.f32 %v1778_v12, %v1392_v20  ;;  %v1425_v19 = vadd.f32 %v1775_v53, %v1387_v22  ;;  %v1395_v32 = vadd.f32 %v1394_v31, %v1330_v42  ;;  %v1480_v24 = vmul.f32 %v2627_v25, %v1424_v18 }
 0x149   : > { %v1429_v33 = vadd.f32 %v1783_v3, %v1403_v29  ;;  %v1423_v34 = vadd.f32 %v1771_v17, %v1379_v30  ;;  %v1484_v41 = vmul.f32 %v1471_v38, %v1428_v27  ;;  %v1478_v44 = vmul.f32 %v2629_v21, %v1422_v28 }
 0x14a   : > { %v1481_v39 = vmul.f32 %v1456_v43, %v1425_v19  ;;  %v1427_v40 = vadd.f32 %v1779_v26, %v1395_v32  ;;  %v1482_v46 = vmul.f32 %v1461_v4, %v1426_v7 }
 0x14b   : > { %v1485_v55 = vmul.f32 %v1476_v36, %v1429_v33  ;;  %v1479_v45 = vmul.f32 %v1446_v49, %v1423_v34 }
 0x14c   : > { %v1792_v42 = vpack.c.bf16 %v1481_v39, %v1480_v24  ;;  %v1483_v47 = vmul.f32 %v1466_v1, %v1427_v40 }
 0x14d   : > { %v1802_v48 = vpack.c.bf16 %v1485_v55, %v1484_v41  ;;  %v1787_v35 = vpack.c.bf16 %v1479_v45, %v1478_v44 }
 0x14e   : > { %1807 = vst [vmem:[%s252_s26 + $0x8] sm:$0xff] %v1792_v42   ;;  %v1797_v25 = vpack.c.bf16 %v1483_v47, %v1482_v46 }
 0x14f   : > { %1809 = vst [vmem:[%s252_s26 + $0x18] sm:$0xff] %v1802_v48   ;;  %1788 = vst [vmem:[%s252_s26] sm:$0xff] %v1787_v35  }
 0x150   : > { %1808 = vst [vmem:[%s252_s26 + $0x10] sm:$0xff] %v1797_v25  }
 0x151   : > { %2204 = shalt.err (!%p2201_p3)
}
 0x152   : > { %s2205_s7 = scalar_lea.hbm %s2653_s9, 512  ;;  %s2209_s16 = scalar_lea.hbm %s2705_s5, 1024 }
 0x153   : > { %p2206_p4 = scmp.ne.s32.totalorder %s2653_s9, %s2205_s7  ;;  %p2210_p9 = scmp.lt.u32.totalorder %s2653_s9, %s2705_s5 }
 0x154   : > { %p2211_p10 = scmp.lt.u32.totalorder %s2209_s16, %s2205_s7  ;;  %p2213_p12 = scmp.lt.u32.totalorder %s2205_s7, %s2653_s9 }
 0x155   : > { %p2207_p7 = pnand %p2206_p4, %p2327_p5 }
 0x156   : > { %p2212_p11 = por %p2211_p10, %p2210_p9 }
 0x157   : > { %p2208_p8 = pneg %p2207_p7 }
 0x158   : > { %p2214_p13 = por %p2213_p12, %p2212_p11 }
 0x15a   : > { %p2215_p0 = pnand %p2214_p13, %p2208_p8 }
 0x15c   : > { %2218 = shalt.err (!%p2215_p0)
}
 0x15d   : > { %s2257_s23 = smov 64   ;;  %s2258_s26 = smov 4  }
 0x15e   : > { %2023 = dma.vmem_to_hbm [thread:$0]  (%p2327_p5), %s2655_s30, 512, %s2653_s9, %s2659_s22, %s2257_s23, %s2257_s23, %s2258_s26  }
 0x15f PF: > { %p2029_p1 = scmp.ge.s32.totalorder %s2253_s21, 2  ;;  %s1555_s6 = sand.u32 1, %s2241_s18  }
 0x160   : > { %s1556_s8 = scalar_lea.sflag [#allocation3], %s1555_s6 }
 0x161   : > { %p2026_p2 = pnand %p2029_p1, %p2331_p6 }
 0x163   : > { %2236 = dma.done.wait (!%p2026_p2), %s1556_s8, 512  }
 0x164   : > { %2238 = vsyncadd (!%p2026_p2), %s1556_s8, 4294966784  ;;  %p15_p3 = scmp.ge.s32.totalorder %s2314_s24, 4   ;;  %s2708_s18 = smov %s2245_s19 }
 0x165   : > { %s2709_s19 = smov %s2249_s20  ;;  %s2710_s20 = smov %s2325_s27 }
 0x166   : > { %s2711_s21 = smov %s2314_s24  ;;  %17 = sbr.rel (!%p15_p3) target bundleno = 3 (0x3), region = 81 }
 0x16d   :  { %1561 = vsyncpa [#allocation3], 1 }
 0x16e   :  { %1563 = vsyncpa [#allocation3 + $0x1], 1 }

</bundles_post_ra>
